<compile_context>
chip_gen: v7x
topology: tpu7x:2x2x1
jax: 0.10.0
libtpu: 0.0.40
codegen_flags: <defaults>
</compile_context>

<pallas_src>
import math

import jax
import jax.numpy as jnp
from jax.experimental import pallas as pl
from jax.experimental.pallas import tpu as pltpu


# ---------------- Pallas kernel ----------------

def _ffn_kernel(x_ref, w1_ref, b1_ref, w2_ref, b2_ref, o_ref):
    # h = ReLU(x @ W1 + b1)  -- hidden stays in VMEM/vregs, never hits HBM.
    h = jnp.dot(x_ref[...], w1_ref[...], preferred_element_type=jnp.float32)
    h = jnp.maximum(h + b1_ref[...], 0.0)
    # y = h @ W2 + b2
    y = jnp.dot(h.astype(w2_ref.dtype), w2_ref[...],
                preferred_element_type=jnp.float32)
    y = y + b2_ref[...]
    o_ref[...] = y.astype(o_ref.dtype)


# ---------------- wrapper ----------------

def _round_up(x, m):
    return (x + m - 1) // m * m


def _pick_tile_m(M, D, H, itemsize, vmem_budget=24 << 20, max_tile=512):
    """Largest row-tile (multiple of 8, <= max_tile) fitting the VMEM budget."""
    tile = min(max_tile, _round_up(M, 8))

    def vmem_need(t):
        # double-buffered in/out activation tiles + resident weights/biases
        # (input dtype) + f32 hidden activation and output accumulator.
        return (itemsize * (4 * t * D + D * H + H * D + H + D)
                + 4 * t * (H + 2 * D))

    while tile > 8 and vmem_need(tile) > vmem_budget:
        tile = max(8, _round_up(tile // 2, 8))
    return tile
    # TODO(synk): for very large D (weights alone >> VMEM) add a K/N-tiled
    # reduction grid axis with a VMEM f32 accumulator instead of resident
    # full (D, H) / (H, D) weight blocks.


def pallas_ffn(x2d, w1, b1, w2, b2):
    M, D = x2d.shape
    H = w1.shape[1]

    tile_m = _pick_tile_m(M, D, H, jnp.dtype(x2d.dtype).itemsize)
    Mp = _round_up(M, tile_m)
    if Mp != M:
        x2d = jnp.pad(x2d, ((0, Mp - M), (0, 0)))

    itemsize = jnp.dtype(x2d.dtype).itemsize
    cost = pl.CostEstimate(
        flops=2 * Mp * D * H * 2,                       # two matmuls
        transcendentals=0,
        bytes_accessed=itemsize * (2 * Mp * D           # x in + y out
                                   + D * H + H * D + H + D),  # weights/biases
    )

    out = pl.pallas_call(
        _ffn_kernel,
        out_shape=jax.ShapeDtypeStruct((Mp, D), x2d.dtype),
        grid=(Mp // tile_m,),
        in_specs=[
            pl.BlockSpec((tile_m, D), lambda i: (i, 0)),   # activation tile
            pl.BlockSpec((D, H), lambda i: (0, 0)),        # W1 resident
            pl.BlockSpec((1, H), lambda i: (0, 0)),        # b1 resident
            pl.BlockSpec((H, D), lambda i: (0, 0)),        # W2 resident
            pl.BlockSpec((1, D), lambda i: (0, 0)),        # b2 resident
        ],
        out_specs=pl.BlockSpec((tile_m, D), lambda i: (i, 0)),
        compiler_params=pltpu.CompilerParams(
            dimension_semantics=("parallel",),             # shard rows across TCs
        ),
        cost_estimate=cost,
    )(x2d, w1, b1, w2, b2)

    if Mp != M:
        out = out[:M]
    return out


# ---------------- FFN module in JAX ----------------

class FFN:
    """JAX/Pallas port of the PyTorch FFN module (inference forward)."""

    def __init__(self, features, exp_factor, dropout, key, dtype=jnp.float32):
        H = exp_factor * features
        k1, k2, k3, k4 = jax.random.split(key, 4)
        # nn.Linear default init: U(-1/sqrt(fan_in), +1/sqrt(fan_in)).
        lim1 = 1.0 / math.sqrt(features)
        lim2 = 1.0 / math.sqrt(H)
        # Weights stored already transposed for x @ W.
        self.w1 = jax.random.uniform(k1, (features, H), dtype, -lim1, lim1)
        self.b1 = jax.random.uniform(k2, (1, H), dtype, -lim1, lim1)
        self.w2 = jax.random.uniform(k3, (H, features), dtype, -lim2, lim2)
        self.b2 = jax.random.uniform(k4, (1, features), dtype, -lim2, lim2)
        self.dropout_p = dropout  # identity in eval mode (inference forward)

    def __call__(self, x, dim):
        *lead, D = x.shape
        x2d = x.reshape(-1, D)
        out2d = pallas_ffn(x2d, self.w1, self.b1, self.w2, self.b2)
        return out2d.reshape(*lead, D)


# ---------------- pure-JAX reference ----------------

def reference_forward(ffn, x):
    h = jnp.maximum(x @ ffn.w1 + ffn.b1, 0.0)
    return h @ ffn.w2 + ffn.b2


if __name__ == "__main__":
    key = jax.random.PRNGKey(0)
    k_params, k_x1, k_x2 = jax.random.split(key, 3)

    # Lane-dense demo shapes: features=128 (full 128-lane vregs), hidden=512.
    B, N, D, exp_factor = 2, 512, 128, 4
    ffn = FFN(features=D, exp_factor=exp_factor, dropout=0.1, key=k_params)

    # Main check: M = B*N = 1024 rows -> tile_m=512 -> grid=(2,) (pipelined).
    x = jax.random.normal(k_x1, (B, N, D), jnp.float32)
    out = jax.block_until_ready(ffn(x, dim=D))
    ref = reference_forward(ffn, x)
    assert out.shape == x.shape
    assert jnp.allclose(out, ref, atol=2e-4, rtol=2e-4), "mismatch vs reference"

    # Ragged-M check: 2*5 = 10 rows -> padded to a multiple of 8-row tiles.
    x2 = jax.random.normal(k_x2, (2, 5, D), jnp.float32)
    out2 = jax.block_until_ready(ffn(x2, dim=D))
    ref2 = reference_forward(ffn, x2)
    assert out2.shape == x2.shape
    assert jnp.allclose(out2, ref2, atol=2e-4, rtol=2e-4), "mismatch (padded path)"

    print("KERNEL_OK")
</pallas_src>

<mosaic_0001>
module attributes {stable_mosaic.version = 11 : i64} {
  func.func @_ffn_kernel(%arg0: i32, %arg1: memref<512x128xf32, #tpu.memory_space<vmem>>, %arg2: memref<128x512xf32, #tpu.memory_space<vmem>>, %arg3: memref<1x512xf32, #tpu.memory_space<vmem>>, %arg4: memref<512x128xf32, #tpu.memory_space<vmem>>, %arg5: memref<1x128xf32, #tpu.memory_space<vmem>>, %arg6: memref<512x128xf32, #tpu.memory_space<vmem>>) attributes {dimension_semantics = [#tpu.dimension_semantics<parallel>], iteration_bounds = array<i64: 2>, scalar_prefetch = 0 : i64, scratch_operands = 0 : i64, tpu.core_type = #tpu.core_type<tc>, window_params = [{transform_indices = @transform_0, window_bounds = array<i64: 512, 128>}, {pipeline_mode = #tpu.pipeline_mode<synchronous>, transform_indices = @transform_1, window_bounds = array<i64: 128, 512>}, {pipeline_mode = #tpu.pipeline_mode<synchronous>, transform_indices = @transform_2, window_bounds = array<i64: 1, 512>}, {pipeline_mode = #tpu.pipeline_mode<synchronous>, transform_indices = @transform_3, window_bounds = array<i64: 512, 128>}, {pipeline_mode = #tpu.pipeline_mode<synchronous>, transform_indices = @transform_4, window_bounds = array<i64: 1, 128>}, {transform_indices = @transform_5, window_bounds = array<i64: 512, 128>}]} {
    %c0 = arith.constant 0 : index
    %c0_0 = arith.constant 0 : index
    %0 = vector.load %arg1[%c0, %c0_0] : memref<512x128xf32, #tpu.memory_space<vmem>>, vector<512x128xf32>
    %c0_1 = arith.constant 0 : index
    %c0_2 = arith.constant 0 : index
    %1 = vector.load %arg2[%c0_1, %c0_2] : memref<128x512xf32, #tpu.memory_space<vmem>>, vector<128x512xf32>
    %cst = arith.constant dense<0.000000e+00> : vector<512x512xf32>
    %2 = tpu.matmul %0, %1, %cst {dimension_numbers = #tpu.dot_dimension_numbers<[1], [0], [0], [1], [0, 0, 1, 1], [], []>} : vector<512x128xf32>, vector<128x512xf32>, vector<512x512xf32> -> vector<512x512xf32>
    %c0_3 = arith.constant 0 : index
    %c0_4 = arith.constant 0 : index
    %3 = vector.load %arg3[%c0_3, %c0_4] : memref<1x512xf32, #tpu.memory_space<vmem>>, vector<1x512xf32>
    %4 = vector.broadcast %3 : vector<1x512xf32> to vector<512x512xf32>
    %5 = arith.addf %2, %4 : vector<512x512xf32>
    %cst_5 = arith.constant 0.000000e+00 : f32
    %6 = vector.broadcast %cst_5 : f32 to vector<512x512xf32>
    %7 = arith.maximumf %5, %6 : vector<512x512xf32>
    %c0_6 = arith.constant 0 : index
    %c0_7 = arith.constant 0 : index
    %8 = vector.load %arg4[%c0_6, %c0_7] : memref<512x128xf32, #tpu.memory_space<vmem>>, vector<512x128xf32>
    %cst_8 = arith.constant dense<0.000000e+00> : vector<512x128xf32>
    %9 = tpu.matmul %7, %8, %cst_8 {dimension_numbers = #tpu.dot_dimension_numbers<[1], [0], [0], [1], [0, 0, 1, 1], [], []>} : vector<512x512xf32>, vector<512x128xf32>, vector<512x128xf32> -> vector<512x128xf32>
    %c0_9 = arith.constant 0 : index
    %c0_10 = arith.constant 0 : index
    %10 = vector.load %arg5[%c0_9, %c0_10] : memref<1x128xf32, #tpu.memory_space<vmem>>, vector<1x128xf32>
    %11 = vector.broadcast %10 : vector<1x128xf32> to vector<512x128xf32>
    %12 = arith.addf %9, %11 : vector<512x128xf32>
    %c0_11 = arith.constant 0 : index
    %c0_12 = arith.constant 0 : index
    %13 = vector.load %arg6[%c0_11, %c0_12] : memref<512x128xf32, #tpu.memory_space<vmem>>, vector<512x128xf32>
    tpu.vector_store %arg6[%c0_11, %c0_12], %12 {strides = array<i32>} : memref<512x128xf32, #tpu.memory_space<vmem>>, vector<512x128xf32>,
    return
  }
  func.func @transform_0(%arg0: i32) -> (i32, i32) {
    %c0_i32 = arith.constant 0 : i32
    %c0_i32_0 = arith.constant 0 : i32
    return %arg0, %c0_i32 : i32, i32
  }
  func.func @transform_1(%arg0: i32) -> (i32, i32) {
    %c0_i32 = arith.constant 0 : i32
    %c0_i32_0 = arith.constant 0 : i32
    %c0_i32_1 = arith.constant 0 : i32
    return %c0_i32, %c0_i32_0 : i32, i32
  }
  func.func @transform_2(%arg0: i32) -> (i32, i32) {
    %c0_i32 = arith.constant 0 : i32
    %c0_i32_0 = arith.constant 0 : i32
    %c0_i32_1 = arith.constant 0 : i32
    return %c0_i32, %c0_i32_0 : i32, i32
  }
  func.func @transform_3(%arg0: i32) -> (i32, i32) {
    %c0_i32 = arith.constant 0 : i32
    %c0_i32_0 = arith.constant 0 : i32
    %c0_i32_1 = arith.constant 0 : i32
    return %c0_i32, %c0_i32_0 : i32, i32
  }
  func.func @transform_4(%arg0: i32) -> (i32, i32) {
    %c0_i32 = arith.constant 0 : i32
    %c0_i32_0 = arith.constant 0 : i32
    %c0_i32_1 = arith.constant 0 : i32
    return %c0_i32, %c0_i32_0 : i32, i32
  }
  func.func @transform_5(%arg0: i32) -> (i32, i32) {
    %c0_i32 = arith.constant 0 : i32
    %c0_i32_0 = arith.constant 0 : i32
    return %arg0, %c0_i32 : i32, i32
  }
}

</mosaic_0001>

<bundles_post_ra>
// kernel: tpu_custom_call.1
= control target key start
LH: loop header
LB: loop body
LE: loop exit
PB: predicated region body
PF: predicated region fallthrough
CT: control target
= control target key end

     0   :  { %10 = vsyncpa [#allocation3], 0  ;;  %s4810_s0 = inlined_call_operand.hbm [shape: f32[1024,128], index: 0, kind: input, shape index: {}]   ;;  %s4811_s1 = inlined_call_operand.hbm [shape: f32[128,512], index: 1, kind: input, shape index: {}]   ;;  %s4812_s2 = inlined_call_operand.vmem [shape: f32[1,512], index: 2, kind: input, shape index: {}]   ;;  %s4813_s3 = inlined_call_operand.hbm [shape: f32[512,128], index: 3, kind: input, shape index: {}]   ;;  %s4814_s4 = inlined_call_operand.vmem [shape: f32[1,128], index: 4, kind: input, shape index: {}]   ;;  %s4815_s5 = inlined_call_operand.hbm [shape: f32[1024,128], index: 5, kind: output, shape index: {}]  }
   0x1   :  { %12 = vsyncpa [#allocation3 + $0x1], 0 }
   0x2   :  { %13 = vsyncpa [#allocation6], 0 }
   0x3   :  { %14 = vsyncpa [#allocation4], 0 }
   0x4   :  { %16 = vsyncpa [#allocation4 + $0x1], 0  ;;  %s3174_s18 = smov 0   ;;  %s3176_s19 = smov 0  }
   0x5   :  { %s3178_s20 = smov 0   ;;  %s3180_s21 = smov 0  }
   0x6 LB: > { %s3195_s22 = sadd.s32 4294967295, %s3130_s21   ;;  %s2589_s23 = sadd.s32 4294967294, %s3130_s21   ;;  %s3130_s21 = sphi %s3180_s21, %s4835_s21   ;;  %s3126_s20 = sphi %s3178_s20, %s4834_s20   ;;  %s3122_s19 = sphi %s3176_s19, %s4833_s19   ;;  %s3118_s18 = sphi %s3174_s18, %s4832_s18  }
   0x7   : > { %p42_p0 = scmp.ne.s32.totalorder %s3122_s19, %s3118_s18  ;;  %p4816_p1 = scmp.eq.s32.totalorder %s3195_s22, 0 }
   0x8   : > { %p156_p3 = scmp.eq.s32.totalorder %s2589_s23, 1  ;;  %p2590_p5 = scmp.ge.s32.totalorder %s3130_s21, 1 }
   0x9   : > { %p3204_p4 = por %p4816_p1, %p42_p0  ;;  %p163_p7 = scmp.lt.s32.totalorder %s3130_s21, 3 }
   0xa   : > { %p3209_p6 = por %p156_p3, %p42_p0  ;;  %s3132_s27 = smov [#allocation5]  }
   0xb   : > { %s4819_s24 = scalar_select %p3204_p4, 1, 0 }
   0xc   : > { %s4820_s25 = scalar_select %p3209_p6, 1, 0 }
   0xd   : > { %p3214_p8 = pnand %p2590_p5, %p163_p7  ;;  %s175_s28 = sshll.u32 %s3132_s27, 4  ;;  %s3218_s28 = int_to_ptr.vmem [resolvable:$true] %s175_s28 }
   0xe   : > { %s3133_s30 = smov [#allocation7]   ;;  %s2974_s9 = scalar_lea.hbm %s4811_s1, 8192 }
   0xf   : > { %p2910_p9 = pneg %p3214_p8  ;;  %s191_s6 = sshll.u32 %s3133_s30, 4  ;;  %s3229_s6 = int_to_ptr.vmem [resolvable:$true] %s191_s6 }
  0x10   : > { %p2975_p12 = scmp.ne.s32.totalorder %s4811_s1, %s2974_s9  ;;  %p2981_p5 = scmp.lt.u32.totalorder %s2974_s9, %s4811_s1 }
  0x11   : > { %p3225_p11 = pnand %p2910_p9, %p4816_p1 }
  0x13   : > { %p2976_p13 = pneg %p3225_p11 }
  0x15   : > { %p2977_p0 = pnand %p2976_p13, %p2975_p12 }
  0x17   : > { %p2978_p3 = pneg %p2977_p0 }
  0x19   : > { %p2983_p7 = pnand %p2981_p5, %p2978_p3 }
  0x1b   : > { %2986 = shalt.err (!%p2983_p7)
}
  0x1c   : > { %s2987_s14 = scalar_lea.vmem %s3218_s28, 8192  ;;  %p2995_p2 = scmp.lt.s32.totalorder %s3218_s28, %s3218_s28 }
  0x1d   : > { %p2988_p9 = scmp.ne.s32.totalorder %s3218_s28, %s2987_s14  ;;  %p2996_p12 = scmp.lt.s32.totalorder %s2987_s14, %s2987_s14 }
  0x1f   : > { %p2990_p10 = pnand %p2988_p9, %p2976_p13  ;;  %p2997_p0 = por %p2996_p12, %p2995_p2 }
  0x21   : > { %p2991_p1 = pneg %p2990_p10 }
  0x23   : > { %p2998_p6 = pnand %p2997_p0, %p2991_p1 }
  0x25   : > { %3001 = shalt.err (!%p2998_p6)
}
  0x26   : > { %s3134_s15 = smov 512   ;;  %s3135_s16 = smov 32  }
  0x27   : > { %2913 = dma.hbm_to_vmem [thread:$0]  (!%p3225_p11), %s4811_s1, 8192, %s3218_s28, [#allocation6], %s3134_s15, %s3134_s15, %s3135_s16  }
  0x28   : > { %s3002_s7 = scalar_lea.hbm %s4813_s3, 8192 }
  0x29   : > { %p3003_p2 = scmp.ne.s32.totalorder %s4813_s3, %s3002_s7  ;;  %p3009_p10 = scmp.lt.u32.totalorder %s3002_s7, %s4813_s3 }
  0x2b   : > { %p3005_p1 = pnand %p3003_p2, %p2976_p13 }
  0x2d   : > { %p3006_p6 = pneg %p3005_p1 }
  0x2f   : > { %p3011_p3 = pnand %p3009_p10, %p3006_p6 }
  0x31   : > { %3014 = shalt.err (!%p3011_p3)
}
  0x32   : > { %s3015_s28 = scalar_lea.vmem %s3229_s6, 8192  ;;  %p3023_p12 = scmp.lt.s32.totalorder %s3229_s6, %s3229_s6 }
  0x33   : > { %p3016_p5 = scmp.ne.s32.totalorder %s3229_s6, %s3015_s28  ;;  %p3024_p0 = scmp.lt.s32.totalorder %s3015_s28, %s3015_s28 }
  0x35   : > { %p3018_p7 = pnand %p3016_p5, %p2976_p13  ;;  %p3025_p2 = por %p3024_p0, %p3023_p12 }
  0x37   : > { %p3019_p9 = pneg %p3018_p7 }
  0x39   : > { %p3026_p1 = pnand %p3025_p2, %p3019_p9 }
  0x3b   : > { %3029 = shalt.err (!%p3026_p1)
}
  0x3c   : > { %s3136_s12 = smov 128   ;;  %s3137_s13 = smov 8  }
  0x3d   : > { %2916 = dma.hbm_to_vmem [thread:$0]  (!%p3225_p11), %s4813_s3, 8192, %s3229_s6, [#allocation6], %s3136_s12, %s3136_s12, %s3137_s13  }
  0x3e   : > { %s3287_s16 = sadd.s32 1, %s3130_s21   ;;  %s29_s23 = sadd.s32 1, %s3126_s20 }
  0x3f   : > { %s26_s17 = ssub.s32 %s3130_s21, %s3287_s16  ;;  %p36_p6 = scmp.ne.s32.totalorder %s3126_s20, %s3122_s19 }
  0x40   : > { %p27_p13 = scmp.eq.s32.totalorder %s26_s17, 0  ;;  %p37_p10 = scmp.eq.s32.totalorder %s3130_s21, 0 }
  0x41   : > { %p4823_p5 = scmp.eq.s32.totalorder %s3195_s22, 1  ;;  %p2927_p9 = scmp.lt.s32.totalorder %s3130_s21, 2 }
  0x42   : > { %s3296_s27 = scalar_select %p27_p13, %s3126_s20, %s29_s23  }
  0x43   : > { %p38_p3 = por %p37_p10, %p36_p6  ;;  %p3300_p7 = por %p4823_p5, %p36_p6 }
  0x44   : > { %s208_s30 = sand.u32 1, %s3126_s20   ;;  %s2608_s6 = sshll.u32 %s3130_s21, 13 }
  0x45   : > { %s4824_s29 = scalar_select %p3300_p7, 1, 0 }
  0x46   : > { %s2594_s7 = sshll.u32 %s208_s30, 9  ;;  %s3310_s10 = scalar_lea.hbm %s4810_s0, %s2608_s6 }
  0x47   : > { %s212_s11 = scalar_lea.vmem [#allocation2], %s2594_s7  ;;  %p3314_p11 = pnand %p2927_p9, %p38_p3 }
  0x48   : > { %s219_s28 = sshll.u32 %s212_s11, 4  ;;  %s3318_s15 = scalar_lea.sflag [#allocation3], %s208_s30  ;;  %s3312_s28 = int_to_ptr.vmem [resolvable:$true] %s219_s28 }
  0x49   : > { %s3030_s17 = scalar_lea.hbm %s3310_s10, 8192  ;;  %p3032_p0 = pneg %p3314_p11 }
  0x4a   : > { %p3031_p12 = scmp.ne.s32.totalorder %s3310_s10, %s3030_s17  ;;  %s3035_s6 = scalar_lea.hbm %s4810_s0, 16384 }
  0x4b   : > { %p3036_p13 = scmp.lt.u32.totalorder %s3310_s10, %s4810_s0  ;;  %p3037_p6 = scmp.lt.u32.totalorder %s3035_s6, %s3030_s17 }
  0x4c   : > { %p3033_p2 = pnand %p3032_p0, %p3031_p12  ;;  %p3039_p3 = scmp.lt.u32.totalorder %s3030_s17, %s3310_s10 }
  0x4d   : > { %p3038_p10 = por %p3037_p6, %p3036_p13 }
  0x4e   : > { %p3034_p1 = pneg %p3033_p2 }
  0x4f   : > { %p3040_p5 = por %p3039_p3, %p3038_p10 }
  0x51   : > { %p3041_p9 = pnand %p3040_p5, %p3034_p1 }
  0x53   : > { %3044 = shalt.err (!%p3041_p9)
}
  0x54   : > { %s3045_s30 = scalar_lea.vmem %s3312_s28, 8192  ;;  %s3138_s11 = smov [#allocation2]  }
  0x55   : > { %p3046_p12 = scmp.ne.s32.totalorder %s3312_s28, %s3045_s30  ;;  %s3050_s23 = sshll.u32 %s3138_s11, 4  ;;  %s3051_s23 = int_to_ptr.vmem [resolvable:$false] %s3050_s23 }
  0x56   : > { %s3052_s7 = scalar_lea.vmem %s3051_s23, 16384  ;;  %p3053_p4 = scmp.lt.s32.totalorder %s3312_s28, %s3051_s23 }
  0x57   : > { %p3048_p2 = pnand %p3046_p12, %p3032_p0  ;;  %p3054_p13 = scmp.lt.s32.totalorder %s3052_s7, %s3045_s30 }
  0x59   : > { %p3049_p7 = pneg %p3048_p2  ;;  %p3055_p6 = por %p3054_p13, %p3053_p4 }
  0x5b   : > { %p3056_p10 = pnand %p3055_p6, %p3049_p7 }
  0x5d   : > { %3059 = shalt.err (!%p3056_p10)
}
  0x5e   : > { %2920 = dma.hbm_to_vmem [thread:$0]  (!%p3314_p11), %s3310_s10, 8192, %s3312_s28, %s3318_s15, %s3136_s12, %s3136_s12, %s3137_s13  }
  0x5f   : > { %231 = sbr.rel (%p3214_p8) target bundleno = 882 (0x372), region = 40  ;;  %s3352_s17 = sand.u32 (!%p3214_p8), 1, %s3122_s19  }
  0x60   : > { %s2598_s6 = sshll.u32 (!%p3214_p8), %s3352_s17, 9  ;;  %s234_s8 = scalar_lea.sflag (!%p3214_p8), [#allocation3], %s3352_s17 }
  0x61   : > { %s3358_s14 = scalar_lea.vmem (!%p3214_p8), [#allocation2], %s2598_s6  ;;  %p4826_p4 = scmp.ne.s32.totalorder (!%p3214_p8), %s4819_s24, 0 }
  0x66   : > { %3105 = dma.done.wait (%p4826_p4), %s234_s8, 8192  }
  0x67   : > { %3107 = vsyncadd (%p4826_p4), %s234_s8, 4294959104  ;;  %p4827_p7 = scmp.eq.s32.totalorder %s3195_s22, 0 }
  0x69   : > { %3109 = dma.done.wait (%p4827_p7), [#allocation6], 16384   ;;  %p4828_p8 = pmov %p4827_p7 }
  0x6a   : > { %v3139_v0 = vmov 0.0   ;;  %v339_v1 = vld [vmem:[#allocation5 + $0x8] sm:$0xff]  ;;  %v341_v3 = vld [vmem:[#allocation5 + $0x18] sm:$0xff]  ;;  %v338_v6 = vld [vmem:[#allocation5] sm:$0xff]  ;;  %s4575_s10 = scalar_lea.vmem [#allocation8], %s2598_s6  ;;  %s2609_s9 = sshll.u32 %s3195_s22, 13 }
  0x6b   : > { %3111 = vsyncadd (%p4828_p8), [#allocation6], 4294950912  ;;  %488 = vmatprep.mubr.f32.mxu0 %v3139_v0  ;;  %937 = vmatprep.mubr.f32.mxu1 %v3139_v0  ;;  %v343_v2 = vld [vmem:[#allocation5 + $0x28] sm:$0xff]  ;;  %v345_v5 = vld [vmem:[#allocation5 + $0x38] sm:$0xff]  ;;  %s2497_s30 = sshll.u32 %s4575_s10, 4  ;;  %s4763_s7 = scalar_lea.hbm %s4815_s5, %s2609_s9  ;;  %s4765_s30 = int_to_ptr.vmem [resolvable:$true] %s2497_s30 }
  0x6c   : > { %v2610_v4 = vpack.c.bf16 %v343_v2, %v339_v1  ;;  %v342_v7 = vld [vmem:[#allocation5 + $0x20] sm:$0xff]  ;;  %v2642_v8 = vpack.c.bf16 %v345_v5, %v341_v3  ;;  %v340_v10 = vld [vmem:[#allocation5 + $0x10] sm:$0xff]  ;;  %v347_v12 = vld [vmem:[#allocation5 + $0x48] sm:$0xff]  ;;  %s2484_s6 = scalar_lea.sflag [#allocation4], %s3352_s17  ;;  %s3060_s22 = scalar_lea.vmem %s4765_s30, 8192 }
  0x6d   : > { %v2612_v9 = vpack.c.bf16 %v342_v7, %v338_v6  ;;  %v344_v11 = vld [vmem:[#allocation5 + $0x30] sm:$0xff]  ;;  %v351_v14 = vld [vmem:[#allocation5 + $0x68] sm:$0xff]  ;;  %v349_v15 = vld [vmem:[#allocation5 + $0x58] sm:$0xff]  ;;  %p3061_p11 = scmp.ne.s32.totalorder %s4765_s30, %s3060_s22  ;;  %p4829_p0 = scmp.ne.s32.totalorder %s4824_s29, 0 }
  0x6e   : > { %2611 = vmatprep.subr.bf16.mxu0 %v2610_v4  ;;  %v2644_v13 = vpack.c.bf16 %v344_v11, %v340_v10  ;;  %v353_v16 = vld [vmem:[#allocation5 + $0x78] sm:$0xff]  ;;  %2643 = vmatprep.subr.bf16.mxu1 %v2642_v8  ;;  %v2614_v17 = vpack.c.bf16 %v351_v14, %v347_v12  ;;  %v346_v19 = vld [vmem:[#allocation5 + $0x40] sm:$0xff]  ;;  %v348_v21 = vld [vmem:[#allocation5 + $0x50] sm:$0xff]  ;;  %s3141_s8 = smov [#allocation8]  }
  0x6f   : > { %2613 = vmatpush1.bf16.msra.mxu0 %v2612_v9  ;;  %v2646_v18 = vpack.c.bf16 %v353_v16, %v349_v15  ;;  %v350_v20 = vld [vmem:[#allocation5 + $0x60] sm:$0xff]  ;;  %v352_v23 = vld [vmem:[#allocation5 + $0x70] sm:$0xff]  ;;  %v355_v24 = vld [vmem:[#allocation5 + $0x88] sm:$0xff]  ;;  %p3062_p1 = pnand %p3061_p11, %p4829_p0 }
  0x70   : > { %2645 = vmatpush1.bf16.msra.mxu1 %v2644_v13  ;;  %v2616_v22 = vpack.c.bf16 %v350_v20, %v346_v19  ;;  %v359_v25 = vld [vmem:[#allocation5 + $0xa8] sm:$0xff]  ;;  %2615 = vmatprep.subr.bf16.mxu0 %v2614_v17  ;;  %v2648_v26 = vpack.c.bf16 %v352_v23, %v348_v21  ;;  %v357_v28 = vld [vmem:[#allocation5 + $0x98] sm:$0xff]  ;;  %v354_v30 = vld [vmem:[#allocation5 + $0x80] sm:$0xff] }
  0x71   : > { %2647 = vmatprep.subr.bf16.mxu1 %v2646_v18  ;;  %v2618_v27 = vpack.c.bf16 %v359_v25, %v355_v24  ;;  %v361_v29 = vld [vmem:[#allocation5 + $0xb8] sm:$0xff]  ;;  %v358_v32 = vld [vmem:[#allocation5 + $0xa0] sm:$0xff]  ;;  %v356_v33 = vld [vmem:[#allocation5 + $0x90] sm:$0xff]  ;;  %p3063_p3 = pneg %p3062_p1 }
  0x72   : > { %v2650_v31 = vpack.c.bf16 %v361_v29, %v357_v28  ;;  %v360_v34 = vld [vmem:[#allocation5 + $0xb0] sm:$0xff]  ;;  %v2620_v35 = vpack.c.bf16 %v358_v32, %v354_v30  ;;  %v363_v36 = vld [vmem:[#allocation5 + $0xc8] sm:$0xff]  ;;  %v365_v38 = vld [vmem:[#allocation5 + $0xd8] sm:$0xff] }
  0x73   : > { %2617 = vmatpush1.bf16.msra.mxu0 %v2616_v22  ;;  %v367_v37 = vld [vmem:[#allocation5 + $0xe8] sm:$0xff]  ;;  %v2652_v39 = vpack.c.bf16 %v360_v34, %v356_v33  ;;  %v369_v41 = vld [vmem:[#allocation5 + $0xf8] sm:$0xff]  ;;  %v362_v42 = vld [vmem:[#allocation5 + $0xc0] sm:$0xff] }
  0x74   : > { %2649 = vmatpush1.bf16.msra.mxu1 %v2648_v26  ;;  %2619 = vmatprep.subr.bf16.mxu0 %v2618_v27  ;;  %v2622_v40 = vpack.c.bf16 %v367_v37, %v363_v36  ;;  %v366_v43 = vld [vmem:[#allocation5 + $0xe0] sm:$0xff]  ;;  %v2654_v44 = vpack.c.bf16 %v369_v41, %v365_v38  ;;  %v364_v45 = vld [vmem:[#allocation5 + $0xd0] sm:$0xff]  ;;  %v371_v47 = vld [vmem:[#allocation5 + $0x108] sm:$0xff] }
  0x75   : > { %2651 = vmatprep.subr.bf16.mxu1 %v2650_v31  ;;  %v368_v46 = vld [vmem:[#allocation5 + $0xf0] sm:$0xff]  ;;  %v375_v48 = vld [vmem:[#allocation5 + $0x128] sm:$0xff]  ;;  %v373_v49 = vld [vmem:[#allocation5 + $0x118] sm:$0xff]  ;;  %v2624_v51 = vpack.c.bf16 %v366_v43, %v362_v42 }
  0x76   : > { %v377_v50 = vld [vmem:[#allocation5 + $0x138] sm:$0xff]  ;;  %v2656_v52 = vpack.c.bf16 %v368_v46, %v364_v45  ;;  %v2626_v53 = vpack.c.bf16 %v375_v48, %v371_v47  ;;  %v370_v54 = vld [vmem:[#allocation5 + $0x100] sm:$0xff]  ;;  %v372_v56 = vld [vmem:[#allocation5 + $0x110] sm:$0xff] }
  0x77   : > { %2621 = vmatpush1.bf16.msra.mxu0 %v2620_v35  ;;  %v374_v55 = vld [vmem:[#allocation5 + $0x120] sm:$0xff]  ;;  %v2658_v57 = vpack.c.bf16 %v377_v50, %v373_v49  ;;  %v376_v58 = vld [vmem:[#allocation5 + $0x130] sm:$0xff]  ;;  %v379_v59 = vld [vmem:[#allocation5 + $0x148] sm:$0xff] }
  0x78   : > { %2653 = vmatpush1.bf16.msra.mxu1 %v2652_v39  ;;  %2623 = vmatprep.subr.bf16.mxu0 %v2622_v40  ;;  %v383_v60 = vld [vmem:[#allocation5 + $0x168] sm:$0xff]  ;;  %v381_v61 = vld [vmem:[#allocation5 + $0x158] sm:$0xff]  ;;  %v2628_v63 = vpack.c.bf16 %v374_v55, %v370_v54  ;;  %v2660_v1 = vpack.c.bf16 %v376_v58, %v372_v56  ;;  %v378_v3 = vld [vmem:[#allocation5 + $0x140] sm:$0xff]  ;;  %v3140_v40 = vmov 0.0|0.0  }
  0x79   : > { %2655 = vmatprep.subr.bf16.mxu1 %v2654_v44  ;;  %v385_v62 = vld [vmem:[#allocation5 + $0x178] sm:$0xff]  ;;  %v2630_v2 = vpack.c.bf16 %v383_v60, %v379_v59  ;;  %v382_v4 = vld [vmem:[#allocation5 + $0x160] sm:$0xff]  ;;  %v380_v5 = vld [vmem:[#allocation5 + $0x150] sm:$0xff] }
  0x7a   : > { %v2662_v6 = vpack.c.bf16 %v385_v62, %v381_v61  ;;  %v384_v7 = vld [vmem:[#allocation5 + $0x170] sm:$0xff]  ;;  %v387_v8 = vld [vmem:[#allocation5 + $0x188] sm:$0xff]  ;;  %v389_v10 = vld [vmem:[#allocation5 + $0x198] sm:$0xff]  ;;  %v2632_v12 = vpack.c.bf16 %v382_v4, %v378_v3 }
  0x7b   : > { %2625 = vmatpush1.bf16.msra.mxu0 %v2624_v51  ;;  %v391_v9 = vld [vmem:[#allocation5 + $0x1a8] sm:$0xff]  ;;  %v393_v11 = vld [vmem:[#allocation5 + $0x1b8] sm:$0xff]  ;;  %v2664_v13 = vpack.c.bf16 %v384_v7, %v380_v5  ;;  %v386_v15 = vld [vmem:[#allocation5 + $0x180] sm:$0xff] }
  0x7c   : > { %2657 = vmatpush1.bf16.msra.mxu1 %v2656_v52  ;;  %2627 = vmatprep.subr.bf16.mxu0 %v2626_v53  ;;  %v2634_v14 = vpack.c.bf16 %v391_v9, %v387_v8  ;;  %v390_v16 = vld [vmem:[#allocation5 + $0x1a0] sm:$0xff]  ;;  %v388_v17 = vld [vmem:[#allocation5 + $0x190] sm:$0xff]  ;;  %v2666_v18 = vpack.c.bf16 %v393_v11, %v389_v10  ;;  %v395_v20 = vld [vmem:[#allocation5 + $0x1c8] sm:$0xff] }
  0x7d   : > { %2659 = vmatprep.subr.bf16.mxu1 %v2658_v57  ;;  %v392_v19 = vld [vmem:[#allocation5 + $0x1b0] sm:$0xff]  ;;  %v399_v21 = vld [vmem:[#allocation5 + $0x1e8] sm:$0xff]  ;;  %v397_v22 = vld [vmem:[#allocation5 + $0x1d8] sm:$0xff]  ;;  %v2636_v24 = vpack.c.bf16 %v390_v16, %v386_v15 }
  0x7e   : > { %v401_v23 = vld [vmem:[#allocation5 + $0x1f8] sm:$0xff]  ;;  %v2668_v25 = vpack.c.bf16 %v392_v19, %v388_v17  ;;  %v2638_v26 = vpack.c.bf16 %v399_v21, %v395_v20  ;;  %v394_v27 = vld [vmem:[#allocation5 + $0x1c0] sm:$0xff]  ;;  %v396_v30 = vld [vmem:[#allocation5 + $0x1d0] sm:$0xff] }
  0x7f   : > { %2629 = vmatpush1.bf16.msra.mxu0 %v2628_v63  ;;  %v398_v28 = vld [vmem:[#allocation5 + $0x1e0] sm:$0xff]  ;;  %v2670_v29 = vpack.c.bf16 %v401_v23, %v397_v22  ;;  %v400_v31 = vld [vmem:[#allocation5 + $0x1f0] sm:$0xff]  ;;  %v1579_v35 = vld [vmem:[#allocation7 + $0x8] sm:$0xff] }
  0x80   : > { %2661 = vmatpush1.bf16.msra.mxu1 %v2660_v1  ;;  %2631 = vmatprep.subr.bf16.mxu0 %v2630_v2  ;;  %v2640_v32 = vpack.c.bf16 %v398_v28, %v394_v27  ;;  %v2672_v33 = vpack.c.bf16 %v400_v31, %v396_v30  ;;  %v1578_v34 = vld [vmem:[#allocation7] sm:$0xff]  ;;  %v1611_v37 = vld [vmem:[#allocation7 + $0x108] sm:$0xff]  ;;  %v1580_v42 = vld [vmem:[#allocation7 + $0x10] sm:$0xff] }
  0x81   : > { %2663 = vmatprep.subr.bf16.mxu1 %v2662_v6  ;;  %v1610_v36 = vld [vmem:[#allocation7 + $0x100] sm:$0xff]  ;;  %v2675_v39 = vpack.c.bf16 %v1579_v35, %v1578_v34  ;;  %v1581_v43 = vld [vmem:[#allocation7 + $0x18] sm:$0xff]  ;;  %v1612_v44 = vld [vmem:[#allocation7 + $0x110] sm:$0xff] }
  0x82   : > { %v274_v38 = vld [vmem:[%s3358_s14] sm:$0xff]  ;;  %v2723_v41 = vpack.c.bf16 %v1611_v37, %v1610_v36  ;;  %v1613_v45 = vld [vmem:[#allocation7 + $0x118] sm:$0xff]  ;;  %v275_v46 = vld [vmem:[%s3358_s14 + $0x8] sm:$0xff]  ;;  %v2678_v47 = vpack.c.bf16 %v1581_v43, %v1580_v42 }
  0x83   : > { %2633 = vmatpush1.bf16.msra.mxu0 %v2632_v12  ;;  %v2726_v48 = vpack.c.bf16 %v1613_v45, %v1612_v44  ;;  %v1582_v49 = vld [vmem:[#allocation7 + $0x20] sm:$0xff]  ;;  %v1583_v50 = vld [vmem:[#allocation7 + $0x28] sm:$0xff]  ;;  %v276_v53 = vld [vmem:[%s3358_s14 + $0x10] sm:$0xff] }
  0x84   : > { %2665 = vmatpush1.bf16.msra.mxu1 %v2664_v13  ;;  %2635 = vmatprep.subr.bf16.mxu0 %v2634_v14  ;;  %v1614_v51 = vld [vmem:[#allocation7 + $0x120] sm:$0xff]  ;;  %v1615_v52 = vld [vmem:[#allocation7 + $0x128] sm:$0xff]  ;;  %v2681_v54 = vpack.c.bf16 %v1583_v50, %v1582_v49  ;;  %v1584_v56 = vld [vmem:[#allocation7 + $0x30] sm:$0xff] }
  0x85   : > { %2667 = vmatprep.subr.bf16.mxu1 %v2666_v18  ;;  %v2729_v55 = vpack.c.bf16 %v1615_v52, %v1614_v51  ;;  %v1585_v57 = vld [vmem:[#allocation7 + $0x38] sm:$0xff]  ;;  %v1616_v58 = vld [vmem:[#allocation7 + $0x130] sm:$0xff]  ;;  %v1586_v63 = vld [vmem:[#allocation7 + $0x40] sm:$0xff] }
  0x86   : > { %v1617_v59 = vld [vmem:[#allocation7 + $0x138] sm:$0xff]  ;;  %v2684_v61 = vpack.c.bf16 %v1585_v57, %v1584_v56  ;;  %v1587_v1 = vld [vmem:[#allocation7 + $0x48] sm:$0xff]  ;;  %v1618_v2 = vld [vmem:[#allocation7 + $0x140] sm:$0xff] }
  0x87   : > { %2637 = vmatpush1.bf16.msra.mxu0 %v2636_v24  ;;  %v277_v60 = vld [vmem:[%s3358_s14 + $0x18] sm:$0xff]  ;;  %v2732_v62 = vpack.c.bf16 %v1617_v59, %v1616_v58  ;;  %v1619_v3 = vld [vmem:[#allocation7 + $0x148] sm:$0xff]  ;;  %v278_v4 = vld [vmem:[%s3358_s14 + $0x20] sm:$0xff]  ;;  %v2687_v5 = vpack.c.bf16 %v1587_v1, %v1586_v63 }
  0x88   : > { %2669 = vmatpush1.bf16.msra.mxu1 %v2668_v25  ;;  %2639 = vmatprep.subr.bf16.mxu0 %v2638_v26  ;;  %v2735_v6 = vpack.c.bf16 %v1619_v3, %v1618_v2  ;;  %v1588_v7 = vld [vmem:[#allocation7 + $0x50] sm:$0xff]  ;;  %v1589_v8 = vld [vmem:[#allocation7 + $0x58] sm:$0xff]  ;;  %v279_v11 = vld [vmem:[%s3358_s14 + $0x28] sm:$0xff] }
  0x89   : > { %2671 = vmatprep.subr.bf16.mxu1 %v2670_v29  ;;  %v1620_v9 = vld [vmem:[#allocation7 + $0x150] sm:$0xff]  ;;  %v1621_v10 = vld [vmem:[#allocation7 + $0x158] sm:$0xff]  ;;  %v2690_v12 = vpack.c.bf16 %v1589_v8, %v1588_v7  ;;  %v1590_v14 = vld [vmem:[#allocation7 + $0x60] sm:$0xff] }
  0x8a   : > { %v2738_v13 = vpack.c.bf16 %v1621_v10, %v1620_v9  ;;  %v1591_v15 = vld [vmem:[#allocation7 + $0x68] sm:$0xff]  ;;  %v1622_v16 = vld [vmem:[#allocation7 + $0x160] sm:$0xff]  ;;  %v280_v18 = vld [vmem:[%s3358_s14 + $0x30] sm:$0xff] }
  0x8b   : > { %2641 = vmatpush1.bf16.msra.mxu0 %v2640_v32  ;;  %v1623_v17 = vld [vmem:[#allocation7 + $0x168] sm:$0xff]  ;;  %v2693_v19 = vpack.c.bf16 %v1591_v15, %v1590_v14  ;;  %v1592_v21 = vld [vmem:[#allocation7 + $0x70] sm:$0xff]  ;;  %v1593_v22 = vld [vmem:[#allocation7 + $0x78] sm:$0xff] }
  0x8c   : > { %2673 = vmatpush1.bf16.msra.mxu1 %v2672_v33  ;;  %2722 = vmatprep.subr.bf16.mxu0 %v3140_v40  ;;  %v2741_v20 = vpack.c.bf16 %v1623_v17, %v1622_v16  ;;  %v1624_v23 = vld [vmem:[#allocation7 + $0x170] sm:$0xff]  ;;  %v1625_v24 = vld [vmem:[#allocation7 + $0x178] sm:$0xff]  ;;  %v2696_v26 = vpack.c.bf16 %v1593_v22, %v1592_v21  ;;  %v1594_v28 = vld [vmem:[#allocation7 + $0x80] sm:$0xff] }
  0x8d   : > { %2674 = vmatprep.subr.bf16.mxu1 %v3140_v40  ;;  %v281_v25 = vld [vmem:[%s3358_s14 + $0x38] sm:$0xff]  ;;  %v2744_v27 = vpack.c.bf16 %v1625_v24, %v1624_v23  ;;  %v1595_v29 = vld [vmem:[#allocation7 + $0x88] sm:$0xff]  ;;  %v1626_v30 = vld [vmem:[#allocation7 + $0x180] sm:$0xff] }
  0x8e   : > { %489 = vmatmul.mubr.f32.vlgmr.msra.gmra.mrb[0].mxu0 %v274_v38  ;;  %v1627_v31 = vld [vmem:[#allocation7 + $0x188] sm:$0xff]  ;;  %v282_v32 = vld [vmem:[%s3358_s14 + $0x40] sm:$0xff]  ;;  %v2699_v33 = vpack.c.bf16 %v1595_v29, %v1594_v28  ;;  %v1596_v35 = vld [vmem:[#allocation7 + $0x90] sm:$0xff] }
  0x8f   : > { %938 = vmatmul.mubr.f32.vlgmr.msra.gmra.mrb[0].mxu1 %v274_v38  ;;  %494 = vmatprep.mubr.f32.mxu0 %v3139_v0  ;;  %v2747_v34 = vpack.c.bf16 %v1627_v31, %v1626_v30  ;;  %v1597_v36 = vld [vmem:[#allocation7 + $0x98] sm:$0xff]  ;;  %v1628_v37 = vld [vmem:[#allocation7 + $0x190] sm:$0xff]  ;;  %v1598_v43 = vld [vmem:[#allocation7 + $0xa0] sm:$0xff] }
  0x90   : > { %2676 = vmatpush1.bf16.msra.mxu1 %v2675_v39  ;;  %943 = vmatprep.mubr.f32.mxu1 %v3139_v0  ;;  %v1629_v38 = vld [vmem:[#allocation7 + $0x198] sm:$0xff]  ;;  %v283_v39 = vld [vmem:[%s3358_s14 + $0x48] sm:$0xff]  ;;  %v1630_v45 = vld [vmem:[#allocation7 + $0x1a0] sm:$0xff] }
  0x91   : > { %2724 = vmatpush1.bf16.msra.mxu0 %v2723_v41  ;;  %2677 = vmatprep.subr.bf16.mxu1 %v3140_v40  ;;  %v2702_v41 = vpack.c.bf16 %v1597_v36, %v1596_v35  ;;  %v2750_v42 = vpack.c.bf16 %v1629_v38, %v1628_v37  ;;  %v1599_v44 = vld [vmem:[#allocation7 + $0xa8] sm:$0xff]  ;;  %v285_v50 = vld [vmem:[%s3358_s14 + $0x58] sm:$0xff]  ;;  %v286_v51 = vld [vmem:[%s3358_s14 + $0x60] sm:$0xff] }
  0x92   : > { %495 = vmatmul.mubr.f32.gmra.mrb[2].mxu0 %v275_v46  ;;  %2725 = vmatprep.subr.bf16.mxu0 %v3140_v40  ;;  %v287_v52 = vld [vmem:[%s3358_s14 + $0x68] sm:$0xff]  ;;  %v1632_v56 = vld [vmem:[#allocation7 + $0x1b0] sm:$0xff]  ;;  %v1633_v57 = vld [vmem:[#allocation7 + $0x1b8] sm:$0xff] }
  0x93   : > { %944 = vmatmul.mubr.f32.gmra.mrb[2].mxu1 %v275_v46  ;;  %500 = vmatprep.mubr.f32.mxu0 %v3139_v0  ;;  %v1631_v46 = vld [vmem:[#allocation7 + $0x1a8] sm:$0xff]  ;;  %v2756_v58 = vpack.c.bf16 %v1633_v57, %v1632_v56  ;;  %v288_v59 = vld [vmem:[%s3358_s14 + $0x70] sm:$0xff]  ;;  %v1602_v63 = vld [vmem:[#allocation7 + $0xc0] sm:$0xff] }
  0x94   : > { %949 = vmatprep.mubr.f32.mxu1 %v3139_v0  ;;  %2679 = vmatpush1.bf16.msra.mxu1 %v2678_v47  ;;  %v284_v47 = vld [vmem:[%s3358_s14 + $0x50] sm:$0xff]  ;;  %v2753_v49 = vpack.c.bf16 %v1631_v46, %v1630_v45  ;;  %v1603_v1 = vld [vmem:[#allocation7 + $0xc8] sm:$0xff]  ;;  %v1634_v3 = vld [vmem:[#allocation7 + $0x1c0] sm:$0xff] }
  0x95   : > { %2727 = vmatpush1.bf16.msra.mxu0 %v2726_v48  ;;  %2680 = vmatprep.subr.bf16.mxu1 %v3140_v40  ;;  %v2705_v48 = vpack.c.bf16 %v1599_v44, %v1598_v43  ;;  %v2711_v2 = vpack.c.bf16 %v1603_v1, %v1602_v63  ;;  %v293_v7 = vld [vmem:[%s3358_s14 + $0x98] sm:$0xff]  ;;  %v294_v8 = vld [vmem:[%s3358_s14 + $0xa0] sm:$0xff]  ;;  %v295_v9 = vld [vmem:[%s3358_s14 + $0xa8] sm:$0xff] }
  0x96   : > { %501 = vmatmul.mubr.f32.gmra.mrb[4].mxu0 %v276_v53  ;;  %2728 = vmatprep.subr.bf16.mxu0 %v3140_v40  ;;  %v1604_v10 = vld [vmem:[#allocation7 + $0xd0] sm:$0xff]  ;;  %v1637_v15 = vld [vmem:[#allocation7 + $0x1d8] sm:$0xff]  ;;  %v1607_v21 = vld [vmem:[#allocation7 + $0xe8] sm:$0xff] }
  0x97   : > { %950 = vmatmul.mubr.f32.gmra.mrb[4].mxu1 %v276_v53  ;;  %506 = vmatprep.mubr.f32.mxu0 %v3139_v0  ;;  %v1600_v53 = vld [vmem:[#allocation7 + $0xb0] sm:$0xff]  ;;  %v297_v17 = vld [vmem:[%s3358_s14 + $0xb8] sm:$0xff]  ;;  %v1638_v24 = vld [vmem:[#allocation7 + $0x1e0] sm:$0xff] }
  0x98   : > { %955 = vmatprep.mubr.f32.mxu1 %v3139_v0  ;;  %2682 = vmatpush1.bf16.msra.mxu1 %v2681_v54  ;;  %v1601_v54 = vld [vmem:[#allocation7 + $0xb8] sm:$0xff]  ;;  %v1636_v14 = vld [vmem:[#allocation7 + $0x1d0] sm:$0xff]  ;;  %v302_v28 = vld [vmem:[%s3358_s14 + $0xe0] sm:$0xff] }
  0x99   : > { %2730 = vmatpush1.bf16.msra.mxu0 %v2729_v55  ;;  %2683 = vmatprep.subr.bf16.mxu1 %v3140_v40  ;;  %v2708_v55 = vpack.c.bf16 %v1601_v54, %v1600_v53  ;;  %v2762_v16 = vpack.c.bf16 %v1637_v15, %v1636_v14  ;;  %v300_v22 = vld [vmem:[%s3358_s14 + $0xd0] sm:$0xff]  ;;  %v303_v29 = vld [vmem:[%s3358_s14 + $0xe8] sm:$0xff]  ;;  %v1609_v31 = vld [vmem:[#allocation7 + $0xf8] sm:$0xff] }
  0x9a   : > { %507 = vmatmul.mubr.f32.gmra.mrb[6].mxu0 %v277_v60  ;;  %2731 = vmatprep.subr.bf16.mxu0 %v3140_v40  ;;  %v1608_v30 = vld [vmem:[#allocation7 + $0xf0] sm:$0xff]  ;;  %v305_v36 = vld [vmem:[%s3358_s14 + $0xf8] sm:$0xff]  ;;  %v306_v37 = vld [vmem:[%s3358_s14 + $0x100] sm:$0xff] }
  0x9b   : > { %956 = vmatmul.mubr.f32.gmra.mrb[6].mxu1 %v277_v60  ;;  %512 = vmatprep.mubr.f32.mxu0 %v3139_v0  ;;  %v289_v60 = vld [vmem:[%s3358_s14 + $0x78] sm:$0xff]  ;;  %v307_v38 = vld [vmem:[%s3358_s14 + $0x108] sm:$0xff]  ;;  %v312_v44 = vld [vmem:[%s3358_s14 + $0x130] sm:$0xff] }
  0x9c   : > { %961 = vmatprep.mubr.f32.mxu1 %v3139_v0  ;;  %2685 = vmatpush1.bf16.msra.mxu1 %v2684_v61  ;;  %v290_v61 = vld [vmem:[%s3358_s14 + $0x80] sm:$0xff]  ;;  %v311_v43 = vld [vmem:[%s3358_s14 + $0x128] sm:$0xff]  ;;  %v313_v45 = vld [vmem:[%s3358_s14 + $0x138] sm:$0xff] }
  0x9d   : > { %2733 = vmatpush1.bf16.msra.mxu0 %v2732_v62  ;;  %2686 = vmatprep.subr.bf16.mxu1 %v3140_v40  ;;  %v291_v62 = vld [vmem:[%s3358_s14 + $0x88] sm:$0xff]  ;;  %v314_v46 = vld [vmem:[%s3358_s14 + $0x140] sm:$0xff]  ;;  %v321_v53 = vld [vmem:[%s3358_s14 + $0x178] sm:$0xff] }
  0x9e   : > { %513 = vmatmul.mubr.f32.gmra.mrb[8].mxu0 %v278_v4  ;;  %2734 = vmatprep.subr.bf16.mxu0 %v3140_v40  ;;  %v322_v54 = vld [vmem:[%s3358_s14 + $0x180] sm:$0xff]  ;;  %v324_v56 = vld [vmem:[%s3358_s14 + $0x190] sm:$0xff]  ;;  %v325_v57 = vld [vmem:[%s3358_s14 + $0x198] sm:$0xff] }
  0x9f   : > { %962 = vmatmul.mubr.f32.gmra.mrb[8].mxu1 %v278_v4  ;;  %518 = vmatprep.mubr.f32.mxu0 %v3139_v0  ;;  %v1635_v4 = vld [vmem:[#allocation7 + $0x1c8] sm:$0xff]  ;;  %v328_v1 = vld [vmem:[%s3358_s14 + $0x1b0] sm:$0xff] }
  0xa0   : > { %967 = vmatprep.mubr.f32.mxu1 %v3139_v0  ;;  %2688 = vmatpush1.bf16.msra.mxu1 %v2687_v5  ;;  %v2759_v5 = vpack.c.bf16 %v1635_v4, %v1634_v3 }
  0xa1   : > { %2736 = vmatpush1.bf16.msra.mxu0 %v2735_v6  ;;  %2689 = vmatprep.subr.bf16.mxu1 %v3140_v40  ;;  %v292_v6 = vld [vmem:[%s3358_s14 + $0x90] sm:$0xff] }
  0xa2   : > { %519 = vmatmul.mubr.f32.gmra.mrb[10].mxu0 %v279_v11  ;;  %2737 = vmatprep.subr.bf16.mxu0 %v3140_v40 }
  0xa3   : > { %968 = vmatmul.mubr.f32.gmra.mrb[10].mxu1 %v279_v11  ;;  %524 = vmatprep.mubr.f32.mxu0 %v3139_v0  ;;  %v1605_v11 = vld [vmem:[#allocation7 + $0xd8] sm:$0xff] }
  0xa4   : > { %973 = vmatprep.mubr.f32.mxu1 %v3139_v0  ;;  %2691 = vmatpush1.bf16.msra.mxu1 %v2690_v12  ;;  %v2714_v12 = vpack.c.bf16 %v1605_v11, %v1604_v10  ;;  %v330_v11 = vld [vmem:[%s3358_s14 + $0x1c0] sm:$0xff] }
  0xa5   : > { %2739 = vmatpush1.bf16.msra.mxu0 %v2738_v13  ;;  %2692 = vmatprep.subr.bf16.mxu1 %v3140_v40  ;;  %v296_v13 = vld [vmem:[%s3358_s14 + $0xb0] sm:$0xff] }
  0xa6   : > { %525 = vmatmul.mubr.f32.gmra.mrb[12].mxu0 %v280_v18  ;;  %2740 = vmatprep.subr.bf16.mxu0 %v3140_v40 }
  0xa7   : > { %974 = vmatmul.mubr.f32.gmra.mrb[12].mxu1 %v280_v18  ;;  %530 = vmatprep.mubr.f32.mxu0 %v3139_v0  ;;  %v298_v18 = vld [vmem:[%s3358_s14 + $0xc0] sm:$0xff] }
  0xa8   : > { %979 = vmatprep.mubr.f32.mxu1 %v3139_v0  ;;  %2694 = vmatpush1.bf16.msra.mxu1 %v2693_v19  ;;  %v299_v19 = vld [vmem:[%s3358_s14 + $0xc8] sm:$0xff] }
  0xa9   : > { %2742 = vmatpush1.bf16.msra.mxu0 %v2741_v20  ;;  %2695 = vmatprep.subr.bf16.mxu1 %v3140_v40  ;;  %v1606_v20 = vld [vmem:[#allocation7 + $0xe0] sm:$0xff] }
  0xaa   : > { %531 = vmatmul.mubr.f32.gmra.mrb[14].mxu0 %v281_v25  ;;  %2743 = vmatprep.subr.bf16.mxu0 %v3140_v40  ;;  %v2717_v23 = vpack.c.bf16 %v1607_v21, %v1606_v20  ;;  %v332_v21 = vld [vmem:[%s3358_s14 + $0x1d0] sm:$0xff] }
  0xab   : > { %980 = vmatmul.mubr.f32.gmra.mrb[14].mxu1 %v281_v25  ;;  %536 = vmatprep.mubr.f32.mxu0 %v3139_v0  ;;  %v1639_v25 = vld [vmem:[#allocation7 + $0x1e8] sm:$0xff] }
  0xac   : > { %985 = vmatprep.mubr.f32.mxu1 %v3139_v0  ;;  %2697 = vmatpush1.bf16.msra.mxu1 %v2696_v26  ;;  %v2765_v26 = vpack.c.bf16 %v1639_v25, %v1638_v24 }
  0xad   : > { %2745 = vmatpush1.bf16.msra.mxu0 %v2744_v27  ;;  %2698 = vmatprep.subr.bf16.mxu1 %v3140_v40  ;;  %v301_v27 = vld [vmem:[%s3358_s14 + $0xd8] sm:$0xff] }
  0xae   : > { %537 = vmatmul.mubr.f32.gmra.mrb[16].mxu0 %v282_v32  ;;  %2746 = vmatprep.subr.bf16.mxu0 %v3140_v40 }
  0xaf   : > { %986 = vmatmul.mubr.f32.gmra.mrb[16].mxu1 %v282_v32  ;;  %542 = vmatprep.mubr.f32.mxu0 %v3139_v0  ;;  %v2720_v32 = vpack.c.bf16 %v1609_v31, %v1608_v30 }
  0xb0   : > { %991 = vmatprep.mubr.f32.mxu1 %v3139_v0  ;;  %2700 = vmatpush1.bf16.msra.mxu1 %v2699_v33  ;;  %v1640_v33 = vld [vmem:[#allocation7 + $0x1f0] sm:$0xff] }
  0xb1   : > { %2748 = vmatpush1.bf16.msra.mxu0 %v2747_v34  ;;  %2701 = vmatprep.subr.bf16.mxu1 %v3140_v40  ;;  %v1641_v34 = vld [vmem:[#allocation7 + $0x1f8] sm:$0xff] }
  0xb2   : > { %543 = vmatmul.mubr.f32.gmra.mrb[18].mxu0 %v283_v39  ;;  %2749 = vmatprep.subr.bf16.mxu0 %v3140_v40  ;;  %v2768_v35 = vpack.c.bf16 %v1641_v34, %v1640_v33 }
  0xb3   : > { %992 = vmatmul.mubr.f32.gmra.mrb[18].mxu1 %v283_v39  ;;  %548 = vmatprep.mubr.f32.mxu0 %v3139_v0  ;;  %v308_v39 = vld [vmem:[%s3358_s14 + $0x110] sm:$0xff] }
  0xb4   : > { %997 = vmatprep.mubr.f32.mxu1 %v3139_v0  ;;  %2703 = vmatpush1.bf16.msra.mxu1 %v2702_v41  ;;  %v309_v41 = vld [vmem:[%s3358_s14 + $0x118] sm:$0xff] }
  0xb5   : > { %2751 = vmatpush1.bf16.msra.mxu0 %v2750_v42  ;;  %2704 = vmatprep.subr.bf16.mxu1 %v3140_v40  ;;  %v310_v42 = vld [vmem:[%s3358_s14 + $0x120] sm:$0xff] }
  0xb6   : > { %549 = vmatmul.mubr.f32.gmra.mrb[20].mxu0 %v284_v47  ;;  %2752 = vmatprep.subr.bf16.mxu0 %v3140_v40 }
  0xb7   : > { %998 = vmatmul.mubr.f32.gmra.mrb[20].mxu1 %v284_v47  ;;  %554 = vmatprep.mubr.f32.mxu0 %v3139_v0  ;;  %v315_v47 = vld [vmem:[%s3358_s14 + $0x148] sm:$0xff] }
  0xb8   : > { %1003 = vmatprep.mubr.f32.mxu1 %v3139_v0  ;;  %2706 = vmatpush1.bf16.msra.mxu1 %v2705_v48  ;;  %v316_v48 = vld [vmem:[%s3358_s14 + $0x150] sm:$0xff] }
  0xb9   : > { %2754 = vmatpush1.bf16.msra.mxu0 %v2753_v49  ;;  %2707 = vmatprep.subr.bf16.mxu1 %v3140_v40  ;;  %v317_v49 = vld [vmem:[%s3358_s14 + $0x158] sm:$0xff] }
  0xba   : > { %555 = vmatmul.mubr.f32.gmra.mrb[22].mxu0 %v285_v50  ;;  %2755 = vmatprep.subr.bf16.mxu0 %v3140_v40 }
  0xbb   : > { %1004 = vmatmul.mubr.f32.gmra.mrb[22].mxu1 %v285_v50  ;;  %560 = vmatprep.mubr.f32.mxu0 %v3139_v0  ;;  %v318_v50 = vld [vmem:[%s3358_s14 + $0x160] sm:$0xff] }
  0xbc   : > { %1009 = vmatprep.mubr.f32.mxu1 %v3139_v0  ;;  %2709 = vmatpush1.bf16.msra.mxu1 %v2708_v55  ;;  %v323_v55 = vld [vmem:[%s3358_s14 + $0x188] sm:$0xff] }
  0xbd   : > { %2757 = vmatpush1.bf16.msra.mxu0 %v2756_v58  ;;  %2710 = vmatprep.subr.bf16.mxu1 %v3140_v40  ;;  %v326_v58 = vld [vmem:[%s3358_s14 + $0x1a0] sm:$0xff] }
  0xbe   : > { %561 = vmatmul.mubr.f32.gmra.mrb[24].mxu0 %v286_v51  ;;  %2758 = vmatprep.subr.bf16.mxu0 %v3140_v40 }
  0xbf   : > { %1010 = vmatmul.mubr.f32.gmra.mrb[24].mxu1 %v286_v51  ;;  %566 = vmatprep.mubr.f32.mxu0 %v3139_v0  ;;  %v319_v51 = vld [vmem:[%s3358_s14 + $0x168] sm:$0xff] }
  0xc0   : > { %1015 = vmatprep.mubr.f32.mxu1 %v3139_v0  ;;  %2712 = vmatpush1.bf16.msra.mxu1 %v2711_v2 }
  0xc1   : > { %2760 = vmatpush1.bf16.msra.mxu0 %v2759_v5  ;;  %2713 = vmatprep.subr.bf16.mxu1 %v3140_v40 }
  0xc2   : > { %567 = vmatmul.mubr.f32.gmra.mrb[26].mxu0 %v287_v52  ;;  %2761 = vmatprep.subr.bf16.mxu0 %v3140_v40 }
  0xc3   : > { %1016 = vmatmul.mubr.f32.gmra.mrb[26].mxu1 %v287_v52  ;;  %572 = vmatprep.mubr.f32.mxu0 %v3139_v0  ;;  %v320_v52 = vld [vmem:[%s3358_s14 + $0x170] sm:$0xff] }
  0xc4   : > { %1021 = vmatprep.mubr.f32.mxu1 %v3139_v0  ;;  %2715 = vmatpush1.bf16.msra.mxu1 %v2714_v12 }
  0xc5   : > { %2716 = vmatprep.subr.bf16.mxu1 %v3140_v40  ;;  %2763 = vmatpush1.bf16.msra.mxu0 %v2762_v16  ;;  %v331_v16 = vld [vmem:[%s3358_s14 + $0x1c8] sm:$0xff] }
  0xc6   : > { %573 = vmatmul.mubr.f32.gmra.mrb[28].mxu0 %v288_v59  ;;  %2764 = vmatprep.subr.bf16.mxu0 %v3140_v40 }
  0xc7   : > { %1022 = vmatmul.mubr.f32.gmra.mrb[28].mxu1 %v288_v59  ;;  %578 = vmatprep.mubr.f32.mxu0 %v3139_v0  ;;  %v327_v59 = vld [vmem:[%s3358_s14 + $0x1a8] sm:$0xff] }
  0xc8   : > { %1027 = vmatprep.mubr.f32.mxu1 %v3139_v0  ;;  %2718 = vmatpush1.bf16.msra.mxu1 %v2717_v23 }
  0xc9   : > { %2719 = vmatprep.subr.bf16.mxu1 %v3140_v40  ;;  %2766 = vmatpush1.bf16.msra.mxu0 %v2765_v26 }
  0xca   : > { %579 = vmatmul.mubr.f32.gmra.mrb[30].mxu0 %v289_v60  ;;  %2767 = vmatprep.subr.bf16.mxu0 %v3140_v40  ;;  %v304_v40 = vld [vmem:[%s3358_s14 + $0xf0] sm:$0xff] }
  0xcb   : > { %1028 = vmatmul.mubr.f32.gmra.mrb[30].mxu1 %v289_v60  ;;  %584 = vmatprep.mubr.f32.mxu0 %v3139_v0 }
  0xcc   : > { %1033 = vmatprep.mubr.f32.mxu1 %v3139_v0  ;;  %2721 = vmatpush1.bf16.msra.mxu1 %v2720_v32  ;;  %v334_v32 = vld [vmem:[%s3358_s14 + $0x1e0] sm:$0xff] }
  0xcd   : > { %2769 = vmatpush1.bf16.msra.mxu0 %v2768_v35  ;;  %v402_v35 = vld [vmem:[%s4812_s2] sm:$0xf] }
  0xce   : > { %585 = vmatmul.mubr.f32.gmra.mrb[32].mxu0 %v290_v61 }
  0xcf   : > { %1034 = vmatmul.mubr.f32.gmra.mrb[32].mxu1 %v290_v61  ;;  %590 = vmatprep.mubr.f32.mxu0 %v3139_v0 }
  0xd0   : > { %1039 = vmatprep.mubr.f32.mxu1 %v3139_v0 }
  0xd2   : > { %591 = vmatmul.mubr.f32.gmra.mrb[34].mxu0 %v291_v62 }
  0xd3   : > { %1040 = vmatmul.mubr.f32.gmra.mrb[34].mxu1 %v291_v62  ;;  %596 = vmatprep.mubr.f32.mxu0 %v3139_v0 }
  0xd4   : > { %1045 = vmatprep.mubr.f32.mxu1 %v3139_v0 }
  0xd6   : > { %597 = vmatmul.mubr.f32.gmra.mrb[36].mxu0 %v292_v6 }
  0xd7   : > { %1046 = vmatmul.mubr.f32.gmra.mrb[36].mxu1 %v292_v6  ;;  %602 = vmatprep.mubr.f32.mxu0 %v3139_v0  ;;  %v329_v6 = vld [vmem:[%s3358_s14 + $0x1b8] sm:$0xff] }
  0xd8   : > { %1051 = vmatprep.mubr.f32.mxu1 %v3139_v0 }
  0xda   : > { %603 = vmatmul.mubr.f32.gmra.mrb[38].mxu0 %v293_v7 }
  0xdb   : > { %1052 = vmatmul.mubr.f32.gmra.mrb[38].mxu1 %v293_v7  ;;  %608 = vmatprep.mubr.f32.mxu0 %v3139_v0 }
  0xdc   : > { %1057 = vmatprep.mubr.f32.mxu1 %v3139_v0 }
  0xde   : > { %609 = vmatmul.mubr.f32.gmra.mrb[40].mxu0 %v294_v8 }
  0xdf   : > { %1058 = vmatmul.mubr.f32.gmra.mrb[40].mxu1 %v294_v8  ;;  %614 = vmatprep.mubr.f32.mxu0 %v3139_v0 }
  0xe0   : > { %1063 = vmatprep.mubr.f32.mxu1 %v3139_v0 }
  0xe2   : > { %615 = vmatmul.mubr.f32.gmra.mrb[42].mxu0 %v295_v9 }
  0xe3   : > { %1064 = vmatmul.mubr.f32.gmra.mrb[42].mxu1 %v295_v9  ;;  %620 = vmatprep.mubr.f32.mxu0 %v3139_v0 }
  0xe4   : > { %1069 = vmatprep.mubr.f32.mxu1 %v3139_v0 }
  0xe6   : > { %621 = vmatmul.mubr.f32.gmra.mrb[44].mxu0 %v296_v13 }
  0xe7   : > { %1070 = vmatmul.mubr.f32.gmra.mrb[44].mxu1 %v296_v13  ;;  %626 = vmatprep.mubr.f32.mxu0 %v3139_v0 }
  0xe8   : > { %1075 = vmatprep.mubr.f32.mxu1 %v3139_v0 }
  0xea   : > { %627 = vmatmul.mubr.f32.gmra.mrb[46].mxu0 %v297_v17 }
  0xeb   : > { %1076 = vmatmul.mubr.f32.gmra.mrb[46].mxu1 %v297_v17  ;;  %632 = vmatprep.mubr.f32.mxu0 %v3139_v0 }
  0xec   : > { %1081 = vmatprep.mubr.f32.mxu1 %v3139_v0 }
  0xee   : > { %633 = vmatmul.mubr.f32.gmra.mrb[48].mxu0 %v298_v18 }
  0xef   : > { %1082 = vmatmul.mubr.f32.gmra.mrb[48].mxu1 %v298_v18  ;;  %638 = vmatprep.mubr.f32.mxu0 %v3139_v0 }
  0xf0   : > { %1087 = vmatprep.mubr.f32.mxu1 %v3139_v0 }
  0xf2   : > { %639 = vmatmul.mubr.f32.gmra.mrb[50].mxu0 %v299_v19 }
  0xf3   : > { %1088 = vmatmul.mubr.f32.gmra.mrb[50].mxu1 %v299_v19  ;;  %644 = vmatprep.mubr.f32.mxu0 %v3139_v0 }
  0xf4   : > { %1093 = vmatprep.mubr.f32.mxu1 %v3139_v0 }
  0xf6   : > { %645 = vmatmul.mubr.f32.gmra.mrb[52].mxu0 %v300_v22 }
  0xf7   : > { %1094 = vmatmul.mubr.f32.gmra.mrb[52].mxu1 %v300_v22  ;;  %650 = vmatprep.mubr.f32.mxu0 %v3139_v0  ;;  %v404_v22 = vlaneseq }
  0xf8   : > { %1099 = vmatprep.mubr.f32.mxu1 %v3139_v0 }
  0xfa   : > { %651 = vmatmul.mubr.f32.gmra.mrb[54].mxu0 %v301_v27 }
  0xfb   : > { %1100 = vmatmul.mubr.f32.gmra.mrb[54].mxu1 %v301_v27  ;;  %656 = vmatprep.mubr.f32.mxu0 %v3139_v0  ;;  %v333_v27 = vld [vmem:[%s3358_s14 + $0x1d8] sm:$0xff] }
  0xfc   : > { %1105 = vmatprep.mubr.f32.mxu1 %v3139_v0 }
  0xfe   : > { %657 = vmatmul.mubr.f32.gmra.mrb[56].mxu0 %v302_v28 }
  0xff   : > { %1106 = vmatmul.mubr.f32.gmra.mrb[56].mxu1 %v302_v28  ;;  %662 = vmatprep.mubr.f32.mxu0 %v3139_v0  ;;  %v405_v28 = vshrl.u32 %v404_v22, 7 }
 0x100   : > { %1111 = vmatprep.mubr.f32.mxu1 %v3139_v0 }
 0x101   : > { %v418_v33 = vsub.s32 3, %v405_v28 }
 0x102   : > { %663 = vmatmul.mubr.f32.gmra.mrb[58].mxu0 %v303_v29 }
 0x103   : > { %1112 = vmatmul.mubr.f32.gmra.mrb[58].mxu1 %v303_v29  ;;  %668 = vmatprep.mubr.f32.mxu0 %v3139_v0 }
 0x104   : > { %1117 = vmatprep.mubr.f32.mxu1 %v3139_v0 }
 0x106   : > { %669 = vmatmul.mubr.f32.gmra.mrb[60].mxu0 %v304_v40 }
 0x107   : > { %1118 = vmatmul.mubr.f32.gmra.mrb[60].mxu1 %v304_v40  ;;  %674 = vmatprep.mubr.f32.mxu0 %v3139_v0 }
 0x108   : > { %1123 = vmatprep.mubr.f32.mxu1 %v3139_v0 }
 0x10a   : > { %675 = vmatmul.mubr.f32.gmra.mrb[62].mxu0 %v305_v36 }
 0x10b   : > { %1124 = vmatmul.mubr.f32.gmra.mrb[62].mxu1 %v305_v36  ;;  %680 = vmatprep.mubr.f32.mxu0 %v3139_v0  ;;  %v410_v36 = vsub.s32 1, %v405_v28 }
 0x10c   : > { %1129 = vmatprep.mubr.f32.mxu1 %v3139_v0 }
 0x10e   : > { %681 = vmatmul.mubr.f32.gmra.mrb[64].mxu0 %v306_v37 }
 0x10f   : > { %1130 = vmatmul.mubr.f32.gmra.mrb[64].mxu1 %v306_v37  ;;  %686 = vmatprep.mubr.f32.mxu0 %v3139_v0 }
 0x110   : > { %1135 = vmatprep.mubr.f32.mxu1 %v3139_v0 }
 0x112   : > { %687 = vmatmul.mubr.f32.gmra.mrb[66].mxu0 %v307_v38 }
 0x113   : > { %1136 = vmatmul.mubr.f32.gmra.mrb[66].mxu1 %v307_v38  ;;  %692 = vmatprep.mubr.f32.mxu0 %v3139_v0 }
 0x114   : > { %1141 = vmatprep.mubr.f32.mxu1 %v3139_v0 }
 0x116   : > { %693 = vmatmul.mubr.f32.gmra.mrb[68].mxu0 %v308_v39 }
 0x117   : > { %1142 = vmatmul.mubr.f32.gmra.mrb[68].mxu1 %v308_v39  ;;  %698 = vmatprep.mubr.f32.mxu0 %v3139_v0 }
 0x118   : > { %1147 = vmatprep.mubr.f32.mxu1 %v3139_v0 }
 0x11a   : > { %699 = vmatmul.mubr.f32.gmra.mrb[70].mxu0 %v309_v41 }
 0x11b   : > { %1148 = vmatmul.mubr.f32.gmra.mrb[70].mxu1 %v309_v41  ;;  %704 = vmatprep.mubr.f32.mxu0 %v3139_v0  ;;  %v335_v41 = vld [vmem:[%s3358_s14 + $0x1e8] sm:$0xff] }
 0x11c   : > { %1153 = vmatprep.mubr.f32.mxu1 %v3139_v0 }
 0x11e   : > { %705 = vmatmul.mubr.f32.gmra.mrb[72].mxu0 %v310_v42 }
 0x11f   : > { %1154 = vmatmul.mubr.f32.gmra.mrb[72].mxu1 %v310_v42  ;;  %710 = vmatprep.mubr.f32.mxu0 %v3139_v0  ;;  %v414_v42 = vsub.s32 2, %v405_v28 }
 0x120   : > { %1159 = vmatprep.mubr.f32.mxu1 %v3139_v0 }
 0x122   : > { %711 = vmatmul.mubr.f32.gmra.mrb[74].mxu0 %v311_v43 }
 0x123   : > { %1160 = vmatmul.mubr.f32.gmra.mrb[74].mxu1 %v311_v43  ;;  %716 = vmatprep.mubr.f32.mxu0 %v3139_v0  ;;  %v3653_v43 = vrot.slane %v402_v35, %v418_v33 }
 0x124   : > { %1165 = vmatprep.mubr.f32.mxu1 %v3139_v0 }
 0x126   : > { %717 = vmatmul.mubr.f32.gmra.mrb[76].mxu0 %v312_v44 }
 0x127   : > { %1166 = vmatmul.mubr.f32.gmra.mrb[76].mxu1 %v312_v44  ;;  %722 = vmatprep.mubr.f32.mxu0 %v3139_v0  ;;  %v406_v44 = vsub.s32 0, %v405_v28 }
 0x128   : > { %1171 = vmatprep.mubr.f32.mxu1 %v3139_v0 }
 0x12a   : > { %723 = vmatmul.mubr.f32.gmra.mrb[78].mxu0 %v313_v45 }
 0x12b   : > { %1172 = vmatmul.mubr.f32.gmra.mrb[78].mxu1 %v313_v45  ;;  %728 = vmatprep.mubr.f32.mxu0 %v3139_v0 }
 0x12c   : > { %1177 = vmatprep.mubr.f32.mxu1 %v3139_v0 }
 0x12e   : > { %729 = vmatmul.mubr.f32.gmra.mrb[80].mxu0 %v314_v46 }
 0x12f   : > { %1178 = vmatmul.mubr.f32.gmra.mrb[80].mxu1 %v314_v46  ;;  %734 = vmatprep.mubr.f32.mxu0 %v3139_v0  ;;  %v3657_v46 = vrot.slane %v402_v35, %v410_v36 }
 0x130   : > { %1183 = vmatprep.mubr.f32.mxu1 %v3139_v0 }
 0x132   : > { %735 = vmatmul.mubr.f32.gmra.mrb[82].mxu0 %v315_v47 }
 0x133   : > { %1184 = vmatmul.mubr.f32.gmra.mrb[82].mxu1 %v315_v47  ;;  %740 = vmatprep.mubr.f32.mxu0 %v3139_v0 }
 0x134   : > { %1189 = vmatprep.mubr.f32.mxu1 %v3139_v0 }
 0x136   : > { %741 = vmatmul.mubr.f32.gmra.mrb[84].mxu0 %v316_v48 }
 0x137   : > { %1190 = vmatmul.mubr.f32.gmra.mrb[84].mxu1 %v316_v48  ;;  %746 = vmatprep.mubr.f32.mxu0 %v3139_v0 }
 0x138   : > { %1195 = vmatprep.mubr.f32.mxu1 %v3139_v0 }
 0x13a   : > { %747 = vmatmul.mubr.f32.gmra.mrb[86].mxu0 %v317_v49 }
 0x13b   : > { %1196 = vmatmul.mubr.f32.gmra.mrb[86].mxu1 %v317_v49  ;;  %752 = vmatprep.mubr.f32.mxu0 %v3139_v0 }
 0x13c   : > { %1201 = vmatprep.mubr.f32.mxu1 %v3139_v0 }
 0x13e   : > { %753 = vmatmul.mubr.f32.gmra.mrb[88].mxu0 %v318_v50 }
 0x13f   : > { %1202 = vmatmul.mubr.f32.gmra.mrb[88].mxu1 %v318_v50  ;;  %758 = vmatprep.mubr.f32.mxu0 %v3139_v0  ;;  %v336_v50 = vld [vmem:[%s3358_s14 + $0x1f0] sm:$0xff] }
 0x140   : > { %1207 = vmatprep.mubr.f32.mxu1 %v3139_v0 }
 0x142   : > { %759 = vmatmul.mubr.f32.gmra.mrb[90].mxu0 %v319_v51 }
 0x143   : > { %1208 = vmatmul.mubr.f32.gmra.mrb[90].mxu1 %v319_v51  ;;  %764 = vmatprep.mubr.f32.mxu0 %v3139_v0  ;;  %v3667_v51 = vrot.slane %v402_v35, %v414_v42 }
 0x144   : > { %1213 = vmatprep.mubr.f32.mxu1 %v3139_v0 }
 0x146   : > { %765 = vmatmul.mubr.f32.gmra.mrb[92].mxu0 %v320_v52 }
 0x147   : > { %1214 = vmatmul.mubr.f32.gmra.mrb[92].mxu1 %v320_v52  ;;  %770 = vmatprep.mubr.f32.mxu0 %v3139_v0 }
 0x148   : > { %1219 = vmatprep.mubr.f32.mxu1 %v3139_v0 }
 0x14a   : > { %771 = vmatmul.mubr.f32.gmra.mrb[94].mxu0 %v321_v53 }
 0x14b   : > { %1220 = vmatmul.mubr.f32.gmra.mrb[94].mxu1 %v321_v53  ;;  %776 = vmatprep.mubr.f32.mxu0 %v3139_v0  ;;  %v3672_v53 = vrot.slane %v402_v35, %v406_v44 }
 0x14c   : > { %1225 = vmatprep.mubr.f32.mxu1 %v3139_v0 }
 0x14e   : > { %777 = vmatmul.mubr.f32.gmra.mrb[96].mxu0 %v322_v54 }
 0x14f   : > { %1226 = vmatmul.mubr.f32.gmra.mrb[96].mxu1 %v322_v54  ;;  %782 = vmatprep.mubr.f32.mxu0 %v3139_v0 }
 0x150   : > { %1231 = vmatprep.mubr.f32.mxu1 %v3139_v0 }
 0x152   : > { %783 = vmatmul.mubr.f32.gmra.mrb[98].mxu0 %v323_v55 }
 0x153   : > { %1232 = vmatmul.mubr.f32.gmra.mrb[98].mxu1 %v323_v55  ;;  %788 = vmatprep.mubr.f32.mxu0 %v3139_v0 }
 0x154   : > { %1237 = vmatprep.mubr.f32.mxu1 %v3139_v0 }
 0x156   : > { %789 = vmatmul.mubr.f32.gmra.mrb[100].mxu0 %v324_v56 }
 0x157   : > { %1238 = vmatmul.mubr.f32.gmra.mrb[100].mxu1 %v324_v56  ;;  %794 = vmatprep.mubr.f32.mxu0 %v3139_v0 }
 0x158   : > { %1243 = vmatprep.mubr.f32.mxu1 %v3139_v0 }
 0x15a   : > { %795 = vmatmul.mubr.f32.gmra.mrb[102].mxu0 %v325_v57 }
 0x15b   : > { %1244 = vmatmul.mubr.f32.gmra.mrb[102].mxu1 %v325_v57  ;;  %800 = vmatprep.mubr.f32.mxu0 %v3139_v0 }
 0x15c   : > { %1249 = vmatprep.mubr.f32.mxu1 %v3139_v0 }
 0x15e   : > { %801 = vmatmul.mubr.f32.gmra.mrb[104].mxu0 %v326_v58 }
 0x15f   : > { %1250 = vmatmul.mubr.f32.gmra.mrb[104].mxu1 %v326_v58  ;;  %806 = vmatprep.mubr.f32.mxu0 %v3139_v0 }
 0x160   : > { %1255 = vmatprep.mubr.f32.mxu1 %v3139_v0 }
 0x161   : > { %v3562_v60 = vpop.f32.mrb[0].mxu0 }
 0x162   : > { %v3564_v61 = vpop.f32.mrb[0].mxu1  ;;  %807 = vmatmul.mubr.f32.gmra.mrb[106].mxu0 %v327_v59  ;;  %v3566_v62 = vpop.f32.mrb[1].mxu0 }
 0x163   : > { %v3568_v63 = vpop.f32.mrb[1].mxu1  ;;  %1256 = vmatmul.mubr.f32.gmra.mrb[106].mxu1 %v327_v59  ;;  %812 = vmatprep.mubr.f32.mxu0 %v3139_v0  ;;  %v493_v55 = vadd.f32 %v3566_v62, %v3657_v46  ;;  %v337_v59 = vld [vmem:[%s3358_s14 + $0x1f8] sm:$0xff]  ;;  %v491_v62 = vadd.f32 %v3562_v60, %v3672_v53  ;;  %s3064_s14 = sshll.u32 %s3141_s8, 4  ;;  %s3065_s14 = int_to_ptr.vmem [resolvable:$false] %s3064_s14 }
 0x164   : > { %1261 = vmatprep.mubr.f32.mxu1 %v3139_v0  ;;  %v942_v52 = vadd.f32 %v3568_v63, %v3653_v43  ;;  %v940_v63 = vadd.f32 %v3564_v61, %v3667_v51  ;;  %s3066_s24 = scalar_lea.vmem %s3065_s14, 16384  ;;  %p3067_p5 = scmp.lt.s32.totalorder %s4765_s30, %s3065_s14 }
 0x165   : > { %v3573_v2 = vpop.f32.mrb[2].mxu0  ;;  %p3068_p9 = scmp.lt.s32.totalorder %s3066_s24, %s3060_s22 }
 0x166   : > { %v3575_v3 = vpop.f32.mrb[2].mxu1  ;;  %813 = vmatmul.mubr.f32.gmra.mrb[108].mxu0 %v328_v1  ;;  %v3577_v4 = vpop.f32.mrb[3].mxu0 }
 0x167   : > { %v3579_v5 = vpop.f32.mrb[3].mxu1  ;;  %1262 = vmatmul.mubr.f32.gmra.mrb[108].mxu1 %v328_v1  ;;  %818 = vmatprep.mubr.f32.mxu0 %v3139_v0  ;;  %v1325_v1 = vmax.f32 %v942_v52, 0.0  ;;  %v946_v60 = vadd.f32 %v3575_v3, %v3667_v51  ;;  %p3069_p12 = por %p3068_p9, %p3067_p5 }
 0x168   : > { %1267 = vmatprep.mubr.f32.mxu1 %v3139_v0 }
 0x169   : > { %v3584_v7 = vpop.f32.mrb[4].mxu0  ;;  %v1328_v44 = vmax.f32 %v946_v60, 0.0  ;;  %p3070_p2 = pnand %p3069_p12, %p3063_p3 }
 0x16a   : > { %v3586_v8 = vpop.f32.mrb[4].mxu1  ;;  %819 = vmatmul.mubr.f32.gmra.mrb[110].mxu0 %v329_v6  ;;  %v3588_v9 = vpop.f32.mrb[5].mxu0  ;;  %v503_v52 = vadd.f32 %v3584_v7, %v3672_v53 }
 0x16b   : > { %v3590_v10 = vpop.f32.mrb[5].mxu1  ;;  %1268 = vmatmul.mubr.f32.gmra.mrb[110].mxu1 %v329_v6  ;;  %824 = vmatprep.mubr.f32.mxu0 %v3139_v0  ;;  %v948_v6 = vadd.f32 %v3579_v5, %v3653_v43  ;;  %v1322_v5 = vmax.f32 %v491_v62, 0.0  ;;  %v505_v36 = vadd.f32 %v3588_v9, %v3657_v46 }
 0x16c   : > { %1273 = vmatprep.mubr.f32.mxu1 %v3139_v0 }
 0x16d   : > { %v3595_v12 = vpop.f32.mrb[6].mxu0  ;;  %v1329_v28 = vmax.f32 %v948_v6, 0.0 }
 0x16e   : > { %v3597_v13 = vpop.f32.mrb[6].mxu1  ;;  %825 = vmatmul.mubr.f32.gmra.mrb[112].mxu0 %v330_v11  ;;  %v3599_v14 = vpop.f32.mrb[7].mxu0 }
 0x16f   : > { %v3601_v15 = vpop.f32.mrb[7].mxu1  ;;  %1274 = vmatmul.mubr.f32.gmra.mrb[112].mxu1 %v330_v11  ;;  %830 = vmatprep.mubr.f32.mxu0 %v3139_v0  ;;  %v958_v7 = vadd.f32 %v3597_v13, %v3667_v51 }
 0x170   : > { %1279 = vmatprep.mubr.f32.mxu1 %v3139_v0  ;;  %v960_v9 = vadd.f32 %v3601_v15, %v3653_v43  ;;  %v1330_v15 = vmax.f32 %v503_v52, 0.0 }
 0x171   : > { %v3606_v17 = vpop.f32.mrb[8].mxu0 }
 0x172   : > { %v3608_v18 = vpop.f32.mrb[8].mxu1  ;;  %831 = vmatmul.mubr.f32.gmra.mrb[114].mxu0 %v331_v16  ;;  %v3610_v19 = vpop.f32.mrb[9].mxu0 }
 0x173   : > { %v3612_v20 = vpop.f32.mrb[9].mxu1  ;;  %1280 = vmatmul.mubr.f32.gmra.mrb[114].mxu1 %v331_v16  ;;  %836 = vmatprep.mubr.f32.mxu0 %v3139_v0  ;;  %v1323_v16 = vmax.f32 %v493_v55, 0.0 }
 0x174   : > { %1285 = vmatprep.mubr.f32.mxu1 %v3139_v0 }
 0x175   : > { %v3617_v23 = vpop.f32.mrb[10].mxu0 }
 0x176   : > { %v3619_v24 = vpop.f32.mrb[10].mxu1  ;;  %837 = vmatmul.mubr.f32.gmra.mrb[116].mxu0 %v332_v21  ;;  %v3621_v25 = vpop.f32.mrb[11].mxu0 }
 0x177   : > { %v3623_v26 = vpop.f32.mrb[11].mxu1  ;;  %1286 = vmatmul.mubr.f32.gmra.mrb[116].mxu1 %v332_v21  ;;  %842 = vmatprep.mubr.f32.mxu0 %v3139_v0  ;;  %v499_v21 = vadd.f32 %v3577_v4, %v3657_v46  ;;  %v954_v4 = vadd.f32 %v3590_v10, %v3653_v43 }
 0x178   : > { %1291 = vmatprep.mubr.f32.mxu1 %v3139_v0 }
 0x179   : > { %v3628_v29 = vpop.f32.mrb[12].mxu0  ;;  %v1327_v35 = vmax.f32 %v499_v21, 0.0  ;;  %v509_v21 = vadd.f32 %v3595_v12, %v3672_v53  ;;  %v964_v12 = vadd.f32 %v3608_v18, %v3667_v51 }
 0x17a   : > { %v3630_v30 = vpop.f32.mrb[12].mxu1  ;;  %843 = vmatmul.mubr.f32.gmra.mrb[118].mxu0 %v333_v27  ;;  %v3632_v31 = vpop.f32.mrb[13].mxu0 }
 0x17b   : > { %v3634_v40 = vpop.f32.mrb[13].mxu1  ;;  %1292 = vmatmul.mubr.f32.gmra.mrb[118].mxu1 %v333_v27  ;;  %848 = vmatprep.mubr.f32.mxu0 %v3139_v0 }
 0x17c   : > { %1297 = vmatprep.mubr.f32.mxu1 %v3139_v0 }
 0x17d   : > { %v3639_v34 = vpop.f32.mrb[14].mxu0 }
 0x17e   : > { %v3644_v37 = vpop.f32.mrb[14].mxu1  ;;  %849 = vmatmul.mubr.f32.gmra.mrb[120].mxu0 %v334_v32  ;;  %v3646_v38 = vpop.f32.mrb[15].mxu0 }
 0x17f   : > { %v3648_v39 = vpop.f32.mrb[15].mxu1  ;;  %1298 = vmatmul.mubr.f32.gmra.mrb[120].mxu1 %v334_v32  ;;  %854 = vmatprep.mubr.f32.mxu0 %v3139_v0  ;;  %v497_v32 = vadd.f32 %v3573_v2, %v3672_v53  ;;  %v952_v2 = vadd.f32 %v3586_v8, %v3667_v51 }
 0x180   : > { %1303 = vmatprep.mubr.f32.mxu1 %v3139_v0 }
 0x181   : > { %v3655_v45 = vpop.f32.mrb[16].mxu0  ;;  %v1326_v10 = vmax.f32 %v497_v32, 0.0  ;;  %v1332_v6 = vmax.f32 %v952_v2, 0.0 }
 0x182   : > { %v3659_v47 = vpop.f32.mrb[16].mxu1  ;;  %855 = vmatmul.mubr.f32.gmra.mrb[122].mxu0 %v335_v41  ;;  %v3661_v48 = vpop.f32.mrb[17].mxu0 }
 0x183   : > { %v3663_v49 = vpop.f32.mrb[17].mxu1  ;;  %1304 = vmatmul.mubr.f32.gmra.mrb[122].mxu1 %v335_v41  ;;  %860 = vmatprep.mubr.f32.mxu0 %v3139_v0 }
 0x184   : > { %1309 = vmatprep.mubr.f32.mxu1 %v3139_v0 }
 0x185   : > { %v3674_v54 = vpop.f32.mrb[18].mxu0 }
 0x186   : > { %v3678_v56 = vpop.f32.mrb[18].mxu1  ;;  %861 = vmatmul.mubr.f32.gmra.mrb[124].mxu0 %v336_v50  ;;  %v3680_v57 = vpop.f32.mrb[19].mxu0 }
 0x187   : > { %v3682_v58 = vpop.f32.mrb[19].mxu1  ;;  %1310 = vmatmul.mubr.f32.gmra.mrb[124].mxu1 %v336_v50  ;;  %866 = vmatprep.mubr.f32.mxu0 %v3139_v0  ;;  %v1333_v50 = vmax.f32 %v954_v4, 0.0  ;;  %v1336_v4 = vmax.f32 %v958_v7, 0.0 }
 0x188   : > { %1315 = vmatprep.mubr.f32.mxu1 %v3139_v0  ;;  %v1324_v0 = vmax.f32 %v940_v63, 0.0  ;;  %v511_v63 = vadd.f32 %v3599_v14, %v3657_v46  ;;  %v966_v14 = vadd.f32 %v3612_v20, %v3653_v43  ;;  %v1334_v20 = vmax.f32 %v509_v21, 0.0 }
 0x189   : > { %v3693_v11 = vpop.f32.mrb[20].mxu0 }
 0x18a   : > { %v3697_v22 = vpop.f32.mrb[20].mxu1  ;;  %867 = vmatmul.mubr.f32.gmra.mrb[126].mxu0 %v337_v59  ;;  %v3699_v27 = vpop.f32.mrb[21].mxu0  ;;  %v1335_v60 = vmax.f32 %v511_v63, 0.0  ;;  %v521_v63 = vadd.f32 %v3617_v23, %v3672_v53  ;;  %v976_v23 = vadd.f32 %v3630_v30, %v3667_v51 }
 0x18b   : > { %v3701_v61 = vpop.f32.mrb[21].mxu1  ;;  %1316 = vmatmul.mubr.f32.gmra.mrb[126].mxu1 %v337_v59  ;;  %2098 = vmatprep.mubr.f32.mxu0 %v1325_v1  ;;  %v1331_v59 = vmax.f32 %v505_v36, 0.0  ;;  %v515_v36 = vadd.f32 %v3606_v17, %v3672_v53  ;;  %v970_v17 = vadd.f32 %v3619_v24, %v3667_v51 }
 0x18c   : > { %1713 = vmatprep.mubr.f32.mxu1 %v1323_v16  ;;  %v1337_v16 = vmax.f32 %v960_v9, 0.0  ;;  %v1340_v9 = vmax.f32 %v964_v12, 0.0 }
 0x18d   : > { %v3709_v33 = vpop.f32.mrb[22].mxu0 }
 0x18e   : > { %v3713_v41 = vpop.f32.mrb[22].mxu1  ;;  %2099 = vmatmul.mubr.f32.vlgmr.msra.gmra.mrb[128].mxu0 %v1324_v0  ;;  %v3715_v42 = vpop.f32.mrb[23].mxu0 }
 0x18f   : > { %v3717_v3 = vpop.f32.mrb[23].mxu1  ;;  %1714 = vmatmul.mubr.f32.vlgmr.msra.gmra.mrb[128].mxu1 %v1322_v5  ;;  %2103 = vmatprep.mubr.f32.mxu0 %v1329_v28  ;;  %v517_v5 = vadd.f32 %v3610_v19, %v3657_v46  ;;  %v972_v19 = vadd.f32 %v3623_v26, %v3653_v43  ;;  %v1338_v26 = vmax.f32 %v515_v36, 0.0 }
 0x190   : > { %1718 = vmatprep.mubr.f32.mxu1 %v1327_v35  ;;  %v1341_v35 = vmax.f32 %v966_v14, 0.0  ;;  %v1344_v14 = vmax.f32 %v970_v17, 0.0 }
 0x191   : > { %v3725_v55 = vpop.f32.mrb[24].mxu0  ;;  %v1339_v2 = vmax.f32 %v517_v5, 0.0  ;;  %v527_v5 = vadd.f32 %v3628_v29, %v3672_v53  ;;  %v982_v29 = vadd.f32 %v3644_v37, %v3667_v51 }
 0x192   : > { %v3729_v1 = vpop.f32.mrb[24].mxu1  ;;  %2104 = vmatmul.mubr.f32.gmra.mrb[130].mxu0 %v1328_v44  ;;  %v3731_v62 = vpop.f32.mrb[25].mxu0 }
 0x193   : > { %v3733_v8 = vpop.f32.mrb[25].mxu1  ;;  %1719 = vmatmul.mubr.f32.gmra.mrb[130].mxu1 %v1326_v10  ;;  %2108 = vmatprep.mubr.f32.mxu0 %v1333_v50  ;;  %v523_v10 = vadd.f32 %v3621_v25, %v3657_v46  ;;  %v978_v25 = vadd.f32 %v3634_v40, %v3653_v43  ;;  %v1342_v40 = vmax.f32 %v521_v63, 0.0 }
 0x194   : > { %1723 = vmatprep.mubr.f32.mxu1 %v1331_v59  ;;  %v1345_v59 = vmax.f32 %v972_v19, 0.0  ;;  %v1348_v19 = vmax.f32 %v976_v23, 0.0 }
 0x195   : > { %v3741_v0 = vpop.f32.mrb[26].mxu0  ;;  %v1343_v7 = vmax.f32 %v523_v10, 0.0  ;;  %v533_v10 = vadd.f32 %v3639_v34, %v3672_v53  ;;  %v988_v34 = vadd.f32 %v3659_v47, %v3667_v51 }
 0x196   : > { %v3745_v28 = vpop.f32.mrb[26].mxu1  ;;  %2109 = vmatmul.mubr.f32.gmra.mrb[132].mxu0 %v1332_v6  ;;  %v3747_v32 = vpop.f32.mrb[27].mxu0 }
 0x197   : > { %v3749_v13 = vpop.f32.mrb[27].mxu1  ;;  %1724 = vmatmul.mubr.f32.gmra.mrb[132].mxu1 %v1330_v15  ;;  %2113 = vmatprep.mubr.f32.mxu0 %v1337_v16  ;;  %v529_v15 = vadd.f32 %v3632_v31, %v3657_v46  ;;  %v984_v31 = vadd.f32 %v3648_v39, %v3653_v43  ;;  %v1346_v39 = vmax.f32 %v527_v5, 0.0 }
 0x198   : > { %1728 = vmatprep.mubr.f32.mxu1 %v1335_v60  ;;  %v1349_v60 = vmax.f32 %v978_v25, 0.0  ;;  %v1352_v25 = vmax.f32 %v982_v29, 0.0 }
 0x199   : > { %v3757_v44 = vpop.f32.mrb[28].mxu0  ;;  %v1347_v12 = vmax.f32 %v529_v15, 0.0  ;;  %v539_v15 = vadd.f32 %v3655_v45, %v3672_v53  ;;  %v994_v45 = vadd.f32 %v3678_v56, %v3667_v51 }
 0x19a   : > { %v3761_v50 = vpop.f32.mrb[28].mxu1  ;;  %2114 = vmatmul.mubr.f32.gmra.mrb[134].mxu0 %v1336_v4  ;;  %v3763_v52 = vpop.f32.mrb[29].mxu0 }
 0x19b   : > { %v3765_v18 = vpop.f32.mrb[29].mxu1  ;;  %1729 = vmatmul.mubr.f32.gmra.mrb[134].mxu1 %v1334_v20  ;;  %2118 = vmatprep.mubr.f32.mxu0 %v1341_v35  ;;  %v535_v20 = vadd.f32 %v3646_v38, %v3657_v46  ;;  %v990_v38 = vadd.f32 %v3663_v49, %v3653_v43  ;;  %v1350_v49 = vmax.f32 %v533_v10, 0.0 }
 0x19c   : > { %1733 = vmatprep.mubr.f32.mxu1 %v1339_v2  ;;  %v1353_v2 = vmax.f32 %v984_v31, 0.0  ;;  %v1356_v31 = vmax.f32 %v988_v34, 0.0 }
 0x19d   : > { %v3773_v6 = vpop.f32.mrb[30].mxu0  ;;  %v1351_v17 = vmax.f32 %v535_v20, 0.0  ;;  %v545_v20 = vadd.f32 %v3674_v54, %v3672_v53  ;;  %v1000_v54 = vadd.f32 %v3697_v22, %v3667_v51 }
 0x19e   : > { %v3777_v16 = vpop.f32.mrb[30].mxu1  ;;  %2119 = vmatmul.mubr.f32.gmra.mrb[136].mxu0 %v1340_v9  ;;  %v3779_v21 = vpop.f32.mrb[31].mxu0 }
 0x19f   : > { %v3781_v24 = vpop.f32.mrb[31].mxu1  ;;  %1734 = vmatmul.mubr.f32.gmra.mrb[136].mxu1 %v1338_v26  ;;  %2123 = vmatprep.mubr.f32.mxu0 %v1345_v59  ;;  %v541_v26 = vadd.f32 %v3661_v48, %v3657_v46  ;;  %v996_v48 = vadd.f32 %v3682_v58, %v3653_v43  ;;  %v1354_v58 = vmax.f32 %v539_v15, 0.0 }
 0x1a0   : > { %1738 = vmatprep.mubr.f32.mxu1 %v1343_v7  ;;  %v1357_v7 = vmax.f32 %v990_v38, 0.0  ;;  %v1360_v38 = vmax.f32 %v994_v45, 0.0 }
 0x1a1   : > { %v3789_v4 = vpop.f32.mrb[32].mxu0  ;;  %v1355_v23 = vmax.f32 %v541_v26, 0.0  ;;  %v551_v26 = vadd.f32 %v3693_v11, %v3672_v53  ;;  %v1006_v11 = vadd.f32 %v3713_v41, %v3667_v51 }
 0x1a2   : > { %v3793_v35 = vpop.f32.mrb[32].mxu1  ;;  %2124 = vmatmul.mubr.f32.gmra.mrb[138].mxu0 %v1344_v14  ;;  %v3795_v36 = vpop.f32.mrb[33].mxu0 }
 0x1a3   : > { %v3797_v30 = vpop.f32.mrb[33].mxu1  ;;  %1739 = vmatmul.mubr.f32.gmra.mrb[138].mxu1 %v1342_v40  ;;  %2128 = vmatprep.mubr.f32.mxu0 %v1349_v60  ;;  %v547_v40 = vadd.f32 %v3680_v57, %v3657_v46  ;;  %v1002_v57 = vadd.f32 %v3701_v61, %v3653_v43  ;;  %v1358_v61 = vmax.f32 %v545_v20, 0.0 }
 0x1a4   : > { %1743 = vmatprep.mubr.f32.mxu1 %v1347_v12  ;;  %v1361_v12 = vmax.f32 %v996_v48, 0.0  ;;  %v1364_v48 = vmax.f32 %v1000_v54, 0.0 }
 0x1a5   : > { %v3805_v9 = vpop.f32.mrb[34].mxu0  ;;  %v1359_v29 = vmax.f32 %v547_v40, 0.0  ;;  %v557_v40 = vadd.f32 %v3709_v33, %v3672_v53  ;;  %v1012_v33 = vadd.f32 %v3729_v1, %v3667_v51 }
 0x1a6   : > { %v3809_v59 = vpop.f32.mrb[34].mxu1  ;;  %2129 = vmatmul.mubr.f32.gmra.mrb[140].mxu0 %v1348_v19  ;;  %v3811_v63 = vpop.f32.mrb[35].mxu0 }
 0x1a7   : > { %v3813_v37 = vpop.f32.mrb[35].mxu1  ;;  %1744 = vmatmul.mubr.f32.gmra.mrb[140].mxu1 %v1346_v39  ;;  %2133 = vmatprep.mubr.f32.mxu0 %v1353_v2  ;;  %v553_v39 = vadd.f32 %v3699_v27, %v3657_v46  ;;  %v1008_v27 = vadd.f32 %v3717_v3, %v3653_v43  ;;  %v1362_v3 = vmax.f32 %v551_v26, 0.0 }
 0x1a8   : > { %1748 = vmatprep.mubr.f32.mxu1 %v1351_v17  ;;  %v1365_v17 = vmax.f32 %v1002_v57, 0.0  ;;  %v1368_v57 = vmax.f32 %v1006_v11, 0.0 }
 0x1a9   : > { %v3821_v14 = vpop.f32.mrb[36].mxu0  ;;  %v1363_v34 = vmax.f32 %v553_v39, 0.0  ;;  %v563_v39 = vadd.f32 %v3725_v55, %v3672_v53  ;;  %v1018_v55 = vadd.f32 %v3745_v28, %v3667_v51 }
 0x1aa   : > { %v3825_v60 = vpop.f32.mrb[36].mxu1  ;;  %2134 = vmatmul.mubr.f32.gmra.mrb[142].mxu0 %v1352_v25  ;;  %v3827_v5 = vpop.f32.mrb[37].mxu0 }
 0x1ab   : > { %v3829_v47 = vpop.f32.mrb[37].mxu1  ;;  %1749 = vmatmul.mubr.f32.gmra.mrb[142].mxu1 %v1350_v49  ;;  %2138 = vmatprep.mubr.f32.mxu0 %v1357_v7  ;;  %v559_v49 = vadd.f32 %v3715_v42, %v3657_v46  ;;  %v1014_v42 = vadd.f32 %v3733_v8, %v3653_v43  ;;  %v1366_v8 = vmax.f32 %v557_v40, 0.0 }
 0x1ac   : > { %1753 = vmatprep.mubr.f32.mxu1 %v1355_v23  ;;  %v1369_v23 = vmax.f32 %v1008_v27, 0.0  ;;  %v1372_v27 = vmax.f32 %v1012_v33, 0.0 }
 0x1ad   : > { %v3837_v19 = vpop.f32.mrb[38].mxu0  ;;  %v1367_v45 = vmax.f32 %v559_v49, 0.0  ;;  %v569_v49 = vadd.f32 %v3741_v0, %v3672_v53  ;;  %v1024_v0 = vadd.f32 %v3761_v50, %v3667_v51 }
 0x1ae   : > { %v3841_v2 = vpop.f32.mrb[38].mxu1  ;;  %2139 = vmatmul.mubr.f32.gmra.mrb[144].mxu0 %v1356_v31  ;;  %v3843_v10 = vpop.f32.mrb[39].mxu0 }
 0x1af   : > { %v3845_v56 = vpop.f32.mrb[39].mxu1  ;;  %1754 = vmatmul.mubr.f32.gmra.mrb[144].mxu1 %v1354_v58  ;;  %2143 = vmatprep.mubr.f32.mxu0 %v1361_v12  ;;  %v565_v58 = vadd.f32 %v3731_v62, %v3657_v46  ;;  %v1020_v62 = vadd.f32 %v3749_v13, %v3653_v43  ;;  %v1370_v13 = vmax.f32 %v563_v39, 0.0 }
 0x1b0   : > { %1758 = vmatprep.mubr.f32.mxu1 %v1359_v29  ;;  %v1373_v29 = vmax.f32 %v1014_v42, 0.0  ;;  %v1376_v42 = vmax.f32 %v1018_v55, 0.0 }
 0x1b1   : > { %v3853_v25 = vpop.f32.mrb[40].mxu0  ;;  %v1371_v54 = vmax.f32 %v565_v58, 0.0  ;;  %v575_v58 = vadd.f32 %v3757_v44, %v3672_v53  ;;  %v1030_v44 = vadd.f32 %v3777_v16, %v3667_v51 }
 0x1b2   : > { %v3857_v7 = vpop.f32.mrb[40].mxu1  ;;  %2144 = vmatmul.mubr.f32.gmra.mrb[146].mxu0 %v1360_v38  ;;  %v3859_v15 = vpop.f32.mrb[41].mxu0 }
 0x1b3   : > { %v3861_v22 = vpop.f32.mrb[41].mxu1  ;;  %1759 = vmatmul.mubr.f32.gmra.mrb[146].mxu1 %v1358_v61  ;;  %2148 = vmatprep.mubr.f32.mxu0 %v1365_v17  ;;  %v571_v61 = vadd.f32 %v3747_v32, %v3657_v46  ;;  %v1026_v32 = vadd.f32 %v3765_v18, %v3653_v43  ;;  %v1374_v18 = vmax.f32 %v569_v49, 0.0 }
 0x1b4   : > { %1763 = vmatprep.mubr.f32.mxu1 %v1363_v34  ;;  %v1377_v34 = vmax.f32 %v1020_v62, 0.0  ;;  %v1380_v62 = vmax.f32 %v1024_v0, 0.0 }
 0x1b5   : > { %v3869_v31 = vpop.f32.mrb[42].mxu0  ;;  %v1375_v11 = vmax.f32 %v571_v61, 0.0  ;;  %v581_v61 = vadd.f32 %v3773_v6, %v3672_v53  ;;  %v1036_v6 = vadd.f32 %v3793_v35, %v3667_v51 }
 0x1b6   : > { %v3873_v12 = vpop.f32.mrb[42].mxu1  ;;  %2149 = vmatmul.mubr.f32.gmra.mrb[148].mxu0 %v1364_v48  ;;  %v3875_v20 = vpop.f32.mrb[43].mxu0 }
 0x1b7   : > { %v3877_v41 = vpop.f32.mrb[43].mxu1  ;;  %1764 = vmatmul.mubr.f32.gmra.mrb[148].mxu1 %v1362_v3  ;;  %2153 = vmatprep.mubr.f32.mxu0 %v1369_v23  ;;  %v577_v3 = vadd.f32 %v3763_v52, %v3657_v46  ;;  %v1032_v52 = vadd.f32 %v3781_v24, %v3653_v43  ;;  %v1378_v24 = vmax.f32 %v575_v58, 0.0 }
 0x1b8   : > { %1768 = vmatprep.mubr.f32.mxu1 %v1367_v45  ;;  %v1381_v45 = vmax.f32 %v1026_v32, 0.0  ;;  %v1384_v32 = vmax.f32 %v1030_v44, 0.0 }
 0x1b9   : > { %v3885_v38 = vpop.f32.mrb[44].mxu0  ;;  %v1379_v33 = vmax.f32 %v577_v3, 0.0  ;;  %v587_v3 = vadd.f32 %v3789_v4, %v3672_v53  ;;  %v1042_v4 = vadd.f32 %v3809_v59, %v3667_v51 }
 0x1ba   : > { %v3889_v17 = vpop.f32.mrb[44].mxu1  ;;  %2154 = vmatmul.mubr.f32.gmra.mrb[150].mxu0 %v1368_v57  ;;  %v3891_v26 = vpop.f32.mrb[45].mxu0 }
 0x1bb   : > { %v3893_v1 = vpop.f32.mrb[45].mxu1  ;;  %1769 = vmatmul.mubr.f32.gmra.mrb[150].mxu1 %v1366_v8  ;;  %2158 = vmatprep.mubr.f32.mxu0 %v1373_v29  ;;  %v583_v8 = vadd.f32 %v3779_v21, %v3657_v46  ;;  %v1038_v21 = vadd.f32 %v3797_v30, %v3653_v43  ;;  %v1382_v30 = vmax.f32 %v581_v61, 0.0 }
 0x1bc   : > { %1773 = vmatprep.mubr.f32.mxu1 %v1371_v54  ;;  %v1385_v54 = vmax.f32 %v1032_v52, 0.0  ;;  %v1388_v52 = vmax.f32 %v1036_v6, 0.0 }
 0x1bd   : > { %v3901_v48 = vpop.f32.mrb[46].mxu0  ;;  %v1383_v55 = vmax.f32 %v583_v8, 0.0  ;;  %v593_v8 = vadd.f32 %v3805_v9, %v3672_v53  ;;  %v1048_v9 = vadd.f32 %v3825_v60, %v3667_v51 }
 0x1be   : > { %v3905_v23 = vpop.f32.mrb[46].mxu1  ;;  %2159 = vmatmul.mubr.f32.gmra.mrb[152].mxu0 %v1372_v27  ;;  %v3907_v40 = vpop.f32.mrb[47].mxu0 }
 0x1bf   : > { %v3909_v28 = vpop.f32.mrb[47].mxu1  ;;  %1774 = vmatmul.mubr.f32.gmra.mrb[152].mxu1 %v1370_v13  ;;  %2163 = vmatprep.mubr.f32.mxu0 %v1377_v34  ;;  %v589_v13 = vadd.f32 %v3795_v36, %v3657_v46  ;;  %v1044_v36 = vadd.f32 %v3813_v37, %v3653_v43  ;;  %v1386_v37 = vmax.f32 %v587_v3, 0.0 }
 0x1c0   : > { %1778 = vmatprep.mubr.f32.mxu1 %v1375_v11  ;;  %v1389_v11 = vmax.f32 %v1038_v21, 0.0  ;;  %v1392_v21 = vmax.f32 %v1042_v4, 0.0 }
 0x1c1   : > { %v3917_v57 = vpop.f32.mrb[48].mxu0  ;;  %v1387_v0 = vmax.f32 %v589_v13, 0.0  ;;  %v599_v13 = vadd.f32 %v3821_v14, %v3672_v53  ;;  %v1054_v14 = vadd.f32 %v3841_v2, %v3667_v51 }
 0x1c2   : > { %v3921_v29 = vpop.f32.mrb[48].mxu1  ;;  %2164 = vmatmul.mubr.f32.gmra.mrb[154].mxu0 %v1376_v42  ;;  %v3923_v39 = vpop.f32.mrb[49].mxu0 }
 0x1c3   : > { %v3925_v50 = vpop.f32.mrb[49].mxu1  ;;  %1779 = vmatmul.mubr.f32.gmra.mrb[154].mxu1 %v1374_v18  ;;  %2168 = vmatprep.mubr.f32.mxu0 %v1381_v45  ;;  %v595_v18 = vadd.f32 %v3811_v63, %v3657_v46  ;;  %v1050_v63 = vadd.f32 %v3829_v47, %v3653_v43  ;;  %v1390_v47 = vmax.f32 %v593_v8, 0.0 }
 0x1c4   : > { %1783 = vmatprep.mubr.f32.mxu1 %v1379_v33  ;;  %v1393_v33 = vmax.f32 %v1044_v36, 0.0  ;;  %v1396_v36 = vmax.f32 %v1048_v9, 0.0 }
 0x1c5   : > { %v3933_v27 = vpop.f32.mrb[50].mxu0  ;;  %v1391_v44 = vmax.f32 %v595_v18, 0.0  ;;  %v605_v18 = vadd.f32 %v3837_v19, %v3672_v53  ;;  %v1060_v19 = vadd.f32 %v3857_v7, %v3667_v51 }
 0x1c6   : > { %v3937_v34 = vpop.f32.mrb[50].mxu1  ;;  %2169 = vmatmul.mubr.f32.gmra.mrb[156].mxu0 %v1380_v62  ;;  %v3939_v49 = vpop.f32.mrb[51].mxu0 }
 0x1c7   : > { %v3941_v16 = vpop.f32.mrb[51].mxu1  ;;  %1784 = vmatmul.mubr.f32.gmra.mrb[156].mxu1 %v1378_v24  ;;  %2173 = vmatprep.mubr.f32.mxu0 %v1385_v54  ;;  %v601_v24 = vadd.f32 %v3827_v5, %v3657_v46  ;;  %v1056_v5 = vadd.f32 %v3845_v56, %v3653_v43  ;;  %v1394_v56 = vmax.f32 %v599_v13, 0.0 }
 0x1c8   : > { %1788 = vmatprep.mubr.f32.mxu1 %v1383_v55  ;;  %v1397_v55 = vmax.f32 %v1050_v63, 0.0  ;;  %v1400_v63 = vmax.f32 %v1054_v14, 0.0 }
 0x1c9   : > { %v3949_v42 = vpop.f32.mrb[52].mxu0  ;;  %v1395_v6 = vmax.f32 %v601_v24, 0.0  ;;  %v611_v24 = vadd.f32 %v3853_v25, %v3672_v53  ;;  %v1066_v25 = vadd.f32 %v3873_v12, %v3667_v51 }
 0x1ca   : > { %v3953_v45 = vpop.f32.mrb[52].mxu1  ;;  %2174 = vmatmul.mubr.f32.gmra.mrb[158].mxu0 %v1384_v32  ;;  %v3955_v58 = vpop.f32.mrb[53].mxu0 }
 0x1cb   : > { %v3957_v35 = vpop.f32.mrb[53].mxu1  ;;  %1789 = vmatmul.mubr.f32.gmra.mrb[158].mxu1 %v1382_v30  ;;  %2178 = vmatprep.mubr.f32.mxu0 %v1389_v11  ;;  %v607_v30 = vadd.f32 %v3843_v10, %v3657_v46  ;;  %v1062_v10 = vadd.f32 %v3861_v22, %v3653_v43  ;;  %v1398_v22 = vmax.f32 %v605_v18, 0.0 }
 0x1cc   : > { %1793 = vmatprep.mubr.f32.mxu1 %v1387_v0  ;;  %v1401_v0 = vmax.f32 %v1056_v5, 0.0  ;;  %v1404_v5 = vmax.f32 %v1060_v19, 0.0 }
 0x1cd   : > { %v3965_v62 = vpop.f32.mrb[54].mxu0  ;;  %v1399_v4 = vmax.f32 %v607_v30, 0.0  ;;  %v617_v30 = vadd.f32 %v3869_v31, %v3672_v53  ;;  %v1072_v31 = vadd.f32 %v3889_v17, %v3667_v51 }
 0x1ce   : > { %v3969_v54 = vpop.f32.mrb[54].mxu1  ;;  %2179 = vmatmul.mubr.f32.gmra.mrb[160].mxu0 %v1388_v52  ;;  %v3971_v61 = vpop.f32.mrb[55].mxu0 }
 0x1cf   : > { %v3973_v59 = vpop.f32.mrb[55].mxu1  ;;  %1794 = vmatmul.mubr.f32.gmra.mrb[160].mxu1 %v1386_v37  ;;  %2183 = vmatprep.mubr.f32.mxu0 %v1393_v33  ;;  %v613_v37 = vadd.f32 %v3859_v15, %v3657_v46  ;;  %v1068_v15 = vadd.f32 %v3877_v41, %v3653_v43  ;;  %v1402_v41 = vmax.f32 %v611_v24, 0.0 }
 0x1d0   : > { %1798 = vmatprep.mubr.f32.mxu1 %v1391_v44  ;;  %v1405_v44 = vmax.f32 %v1062_v10, 0.0  ;;  %v1408_v10 = vmax.f32 %v1066_v25, 0.0 }
 0x1d1   : > { %v3981_v32 = vpop.f32.mrb[56].mxu0  ;;  %v1403_v9 = vmax.f32 %v613_v37, 0.0  ;;  %v623_v37 = vadd.f32 %v3885_v38, %v3672_v53  ;;  %v1078_v38 = vadd.f32 %v3905_v23, %v3667_v51 }
 0x1d2   : > { %v3985_v11 = vpop.f32.mrb[56].mxu1  ;;  %2184 = vmatmul.mubr.f32.gmra.mrb[162].mxu0 %v1392_v21  ;;  %v3987_v3 = vpop.f32.mrb[57].mxu0 }
 0x1d3   : > { %v3989_v60 = vpop.f32.mrb[57].mxu1  ;;  %1799 = vmatmul.mubr.f32.gmra.mrb[162].mxu1 %v1390_v47  ;;  %2188 = vmatprep.mubr.f32.mxu0 %v1397_v55  ;;  %v619_v47 = vadd.f32 %v3875_v20, %v3657_v46  ;;  %v1074_v20 = vadd.f32 %v3893_v1, %v3653_v43  ;;  %v1406_v1 = vmax.f32 %v617_v30, 0.0 }
 0x1d4   : > { %1803 = vmatprep.mubr.f32.mxu1 %v1395_v6  ;;  %v1409_v6 = vmax.f32 %v1068_v15, 0.0  ;;  %v1412_v15 = vmax.f32 %v1072_v31, 0.0 }
 0x1d5   : > { %v3997_v52 = vpop.f32.mrb[58].mxu0  ;;  %v1407_v14 = vmax.f32 %v619_v47, 0.0  ;;  %v629_v47 = vadd.f32 %v3901_v48, %v3672_v53  ;;  %v1084_v48 = vadd.f32 %v3921_v29, %v3667_v51 }
 0x1d6   : > { %v4001_v33 = vpop.f32.mrb[58].mxu1  ;;  %2189 = vmatmul.mubr.f32.gmra.mrb[164].mxu0 %v1396_v36  ;;  %v4003_v8 = vpop.f32.mrb[59].mxu0 }
 0x1d7   : > { %v4005_v2 = vpop.f32.mrb[59].mxu1  ;;  %1804 = vmatmul.mubr.f32.gmra.mrb[164].mxu1 %v1394_v56  ;;  %2193 = vmatprep.mubr.f32.mxu0 %v1401_v0  ;;  %v625_v56 = vadd.f32 %v3891_v26, %v3657_v46  ;;  %v1080_v26 = vadd.f32 %v3909_v28, %v3653_v43  ;;  %v1410_v28 = vmax.f32 %v623_v37, 0.0 }
 0x1d8   : > { %1808 = vmatprep.mubr.f32.mxu1 %v1399_v4  ;;  %v1413_v4 = vmax.f32 %v1074_v20, 0.0  ;;  %v1416_v20 = vmax.f32 %v1078_v38, 0.0 }
 0x1d9   : > { %v4013_v21 = vpop.f32.mrb[60].mxu0  ;;  %v1411_v19 = vmax.f32 %v625_v56, 0.0  ;;  %v635_v56 = vadd.f32 %v3917_v57, %v3672_v53  ;;  %v1090_v57 = vadd.f32 %v3937_v34, %v3667_v51 }
 0x1da   : > { %v4017_v55 = vpop.f32.mrb[60].mxu1  ;;  %2194 = vmatmul.mubr.f32.gmra.mrb[166].mxu0 %v1400_v63  ;;  %v4019_v13 = vpop.f32.mrb[61].mxu0 }
 0x1db   : > { %v4021_v7 = vpop.f32.mrb[61].mxu1  ;;  %1809 = vmatmul.mubr.f32.gmra.mrb[166].mxu1 %v1398_v22  ;;  %2198 = vmatprep.mubr.f32.mxu0 %v1405_v44  ;;  %v631_v22 = vadd.f32 %v3907_v40, %v3657_v46  ;;  %v1086_v40 = vadd.f32 %v3925_v50, %v3653_v43  ;;  %v1414_v50 = vmax.f32 %v629_v47, 0.0 }
 0x1dc   : > { %1813 = vmatprep.mubr.f32.mxu1 %v1403_v9  ;;  %v1417_v9 = vmax.f32 %v1080_v26, 0.0  ;;  %v1420_v26 = vmax.f32 %v1084_v48, 0.0 }
 0x1dd   : > { %v4029_v36 = vpop.f32.mrb[62].mxu0  ;;  %v1415_v25 = vmax.f32 %v631_v22, 0.0  ;;  %v641_v22 = vadd.f32 %v3933_v27, %v3672_v53  ;;  %v1096_v27 = vadd.f32 %v3953_v45, %v3667_v51 }
 0x1de   : > { %v4033_v0 = vpop.f32.mrb[62].mxu1  ;;  %2199 = vmatmul.mubr.f32.gmra.mrb[168].mxu0 %v1404_v5  ;;  %v4035_v18 = vpop.f32.mrb[63].mxu0 }
 0x1df   : > { %v4037_v12 = vpop.f32.mrb[63].mxu1  ;;  %1814 = vmatmul.mubr.f32.gmra.mrb[168].mxu1 %v1402_v41  ;;  %2203 = vmatprep.mubr.f32.mxu0 %v1409_v6  ;;  %v637_v41 = vadd.f32 %v3923_v39, %v3657_v46  ;;  %v1092_v39 = vadd.f32 %v3941_v16, %v3653_v43  ;;  %v1418_v16 = vmax.f32 %v635_v56, 0.0 }
 0x1e0   : > { %1818 = vmatprep.mubr.f32.mxu1 %v1407_v14  ;;  %v1421_v14 = vmax.f32 %v1086_v40, 0.0  ;;  %v1424_v40 = vmax.f32 %v1090_v57, 0.0 }
 0x1e1   : > { %v4045_v63 = vpop.f32.mrb[64].mxu0  ;;  %v1419_v31 = vmax.f32 %v637_v41, 0.0  ;;  %v647_v41 = vadd.f32 %v3949_v42, %v3672_v53  ;;  %v1102_v42 = vadd.f32 %v3969_v54, %v3667_v51 }
 0x1e2   : > { %v4049_v44 = vpop.f32.mrb[64].mxu1  ;;  %2204 = vmatmul.mubr.f32.gmra.mrb[170].mxu0 %v1408_v10  ;;  %v4051_v24 = vpop.f32.mrb[65].mxu0 }
 0x1e3   : > { %v4053_v17 = vpop.f32.mrb[65].mxu1  ;;  %1819 = vmatmul.mubr.f32.gmra.mrb[170].mxu1 %v1406_v1  ;;  %2208 = vmatprep.mubr.f32.mxu0 %v1413_v4  ;;  %v643_v1 = vadd.f32 %v3939_v49, %v3657_v46  ;;  %v1098_v49 = vadd.f32 %v3957_v35, %v3653_v43  ;;  %v1422_v35 = vmax.f32 %v641_v22, 0.0 }
 0x1e4   : > { %1823 = vmatprep.mubr.f32.mxu1 %v1411_v19  ;;  %v1425_v19 = vmax.f32 %v1092_v39, 0.0  ;;  %v1428_v39 = vmax.f32 %v1096_v27, 0.0 }
 0x1e5   : > { %v4061_v5 = vpop.f32.mrb[66].mxu0  ;;  %v1423_v38 = vmax.f32 %v643_v1, 0.0  ;;  %v653_v1 = vadd.f32 %v3965_v62, %v3672_v53  ;;  %v1108_v62 = vadd.f32 %v3985_v11, %v3667_v51 }
 0x1e6   : > { %v4065_v6 = vpop.f32.mrb[66].mxu1  ;;  %2209 = vmatmul.mubr.f32.gmra.mrb[172].mxu0 %v1412_v15  ;;  %v4067_v30 = vpop.f32.mrb[67].mxu0 }
 0x1e7   : > { %v4069_v23 = vpop.f32.mrb[67].mxu1  ;;  %1824 = vmatmul.mubr.f32.gmra.mrb[172].mxu1 %v1410_v28  ;;  %2213 = vmatprep.mubr.f32.mxu0 %v1417_v9  ;;  %v649_v28 = vadd.f32 %v3955_v58, %v3657_v46  ;;  %v1104_v58 = vadd.f32 %v3973_v59, %v3653_v43  ;;  %v1426_v59 = vmax.f32 %v647_v41, 0.0 }
 0x1e8   : > { %1828 = vmatprep.mubr.f32.mxu1 %v1415_v25  ;;  %v1429_v25 = vmax.f32 %v1098_v49, 0.0  ;;  %v1432_v49 = vmax.f32 %v1102_v42, 0.0 }
 0x1e9   : > { %v4077_v10 = vpop.f32.mrb[68].mxu0  ;;  %v1427_v48 = vmax.f32 %v649_v28, 0.0  ;;  %v659_v28 = vadd.f32 %v3981_v32, %v3672_v53  ;;  %v1114_v32 = vadd.f32 %v4001_v33, %v3667_v51 }
 0x1ea   : > { %v4081_v4 = vpop.f32.mrb[68].mxu1  ;;  %2214 = vmatmul.mubr.f32.gmra.mrb[174].mxu0 %v1416_v20  ;;  %v4083_v37 = vpop.f32.mrb[69].mxu0 }
 0x1eb   : > { %v4085_v29 = vpop.f32.mrb[69].mxu1  ;;  %1829 = vmatmul.mubr.f32.gmra.mrb[174].mxu1 %v1414_v50  ;;  %2218 = vmatprep.mubr.f32.mxu0 %v1421_v14  ;;  %v655_v50 = vadd.f32 %v3971_v61, %v3657_v46  ;;  %v1110_v61 = vadd.f32 %v3989_v60, %v3653_v43  ;;  %v1430_v60 = vmax.f32 %v653_v1, 0.0 }
 0x1ec   : > { %1833 = vmatprep.mubr.f32.mxu1 %v1419_v31  ;;  %v1433_v31 = vmax.f32 %v1104_v58, 0.0  ;;  %v1436_v58 = vmax.f32 %v1108_v62, 0.0 }
 0x1ed   : > { %v4093_v15 = vpop.f32.mrb[70].mxu0  ;;  %v1431_v57 = vmax.f32 %v655_v50, 0.0  ;;  %v665_v50 = vadd.f32 %v3997_v52, %v3672_v53  ;;  %v1120_v52 = vadd.f32 %v4017_v55, %v3667_v51 }
 0x1ee   : > { %v4097_v9 = vpop.f32.mrb[70].mxu1  ;;  %2219 = vmatmul.mubr.f32.gmra.mrb[176].mxu0 %v1420_v26  ;;  %v4099_v47 = vpop.f32.mrb[71].mxu0 }
 0x1ef   : > { %v4101_v34 = vpop.f32.mrb[71].mxu1  ;;  %1834 = vmatmul.mubr.f32.gmra.mrb[176].mxu1 %v1418_v16  ;;  %2223 = vmatprep.mubr.f32.mxu0 %v1425_v19  ;;  %v661_v16 = vadd.f32 %v3987_v3, %v3657_v46  ;;  %v1116_v3 = vadd.f32 %v4005_v2, %v3653_v43  ;;  %v1434_v2 = vmax.f32 %v659_v28, 0.0 }
 0x1f0   : > { %1838 = vmatprep.mubr.f32.mxu1 %v1423_v38  ;;  %v1437_v38 = vmax.f32 %v1110_v61, 0.0  ;;  %v1440_v61 = vmax.f32 %v1114_v32, 0.0 }
 0x1f1   : > { %v4109_v20 = vpop.f32.mrb[72].mxu0  ;;  %v1435_v27 = vmax.f32 %v661_v16, 0.0  ;;  %v671_v16 = vadd.f32 %v4013_v21, %v3672_v53  ;;  %v1126_v21 = vadd.f32 %v4033_v0, %v3667_v51 }
 0x1f2   : > { %v4113_v14 = vpop.f32.mrb[72].mxu1  ;;  %2224 = vmatmul.mubr.f32.gmra.mrb[178].mxu0 %v1424_v40  ;;  %v4115_v56 = vpop.f32.mrb[73].mxu0 }
 0x1f3   : > { %v4117_v45 = vpop.f32.mrb[73].mxu1  ;;  %1839 = vmatmul.mubr.f32.gmra.mrb[178].mxu1 %v1422_v35  ;;  %2228 = vmatprep.mubr.f32.mxu0 %v1429_v25  ;;  %v667_v35 = vadd.f32 %v4003_v8, %v3657_v46  ;;  %v1122_v8 = vadd.f32 %v4021_v7, %v3653_v43  ;;  %v1438_v7 = vmax.f32 %v665_v50, 0.0 }
 0x1f4   : > { %1843 = vmatprep.mubr.f32.mxu1 %v1427_v48  ;;  %v1441_v48 = vmax.f32 %v1116_v3, 0.0  ;;  %v1444_v3 = vmax.f32 %v1120_v52, 0.0 }
 0x1f5   : > { %v4125_v26 = vpop.f32.mrb[74].mxu0  ;;  %v1439_v42 = vmax.f32 %v667_v35, 0.0  ;;  %v677_v35 = vadd.f32 %v4029_v36, %v3672_v53  ;;  %v1132_v36 = vadd.f32 %v4049_v44, %v3667_v51 }
 0x1f6   : > { %v4129_v19 = vpop.f32.mrb[74].mxu1  ;;  %2229 = vmatmul.mubr.f32.gmra.mrb[180].mxu0 %v1428_v39  ;;  %v4131_v22 = vpop.f32.mrb[75].mxu0 }
 0x1f7   : > { %v4133_v54 = vpop.f32.mrb[75].mxu1  ;;  %1844 = vmatmul.mubr.f32.gmra.mrb[180].mxu1 %v1426_v59  ;;  %2233 = vmatprep.mubr.f32.mxu0 %v1433_v31  ;;  %v673_v59 = vadd.f32 %v4019_v13, %v3657_v46  ;;  %v1128_v13 = vadd.f32 %v4037_v12, %v3653_v43  ;;  %v1442_v12 = vmax.f32 %v671_v16, 0.0 }
 0x1f8   : > { %1848 = vmatprep.mubr.f32.mxu1 %v1431_v57  ;;  %v1445_v57 = vmax.f32 %v1122_v8, 0.0  ;;  %v1448_v8 = vmax.f32 %v1126_v21, 0.0 }
 0x1f9   : > { %v4141_v40 = vpop.f32.mrb[76].mxu0  ;;  %v1443_v62 = vmax.f32 %v673_v59, 0.0  ;;  %v683_v59 = vadd.f32 %v4045_v63, %v3672_v53  ;;  %v1138_v63 = vadd.f32 %v4065_v6, %v3667_v51 }
 0x1fa   : > { %v4145_v25 = vpop.f32.mrb[76].mxu1  ;;  %2234 = vmatmul.mubr.f32.gmra.mrb[182].mxu0 %v1432_v49  ;;  %v4147_v41 = vpop.f32.mrb[77].mxu0 }
 0x1fb   : > { %v4149_v11 = vpop.f32.mrb[77].mxu1  ;;  %1849 = vmatmul.mubr.f32.gmra.mrb[182].mxu1 %v1430_v60  ;;  %2238 = vmatprep.mubr.f32.mxu0 %v1437_v38  ;;  %v679_v60 = vadd.f32 %v4035_v18, %v3657_v46  ;;  %v1134_v18 = vadd.f32 %v4053_v17, %v3653_v43  ;;  %v1446_v17 = vmax.f32 %v677_v35, 0.0 }
 0x1fc   : > { %1853 = vmatprep.mubr.f32.mxu1 %v1435_v27  ;;  %v1449_v27 = vmax.f32 %v1128_v13, 0.0  ;;  %v1452_v13 = vmax.f32 %v1132_v36, 0.0 }
 0x1fd   : > { %v4157_v39 = vpop.f32.mrb[78].mxu0  ;;  %v1447_v32 = vmax.f32 %v679_v60, 0.0  ;;  %v689_v60 = vadd.f32 %v4061_v5, %v3672_v53  ;;  %v1144_v5 = vadd.f32 %v4081_v4, %v3667_v51 }
 0x1fe   : > { %v4161_v31 = vpop.f32.mrb[78].mxu1  ;;  %2239 = vmatmul.mubr.f32.gmra.mrb[184].mxu0 %v1436_v58  ;;  %v4163_v1 = vpop.f32.mrb[79].mxu0 }
 0x1ff   : > { %v4165_v33 = vpop.f32.mrb[79].mxu1  ;;  %1854 = vmatmul.mubr.f32.gmra.mrb[184].mxu1 %v1434_v2  ;;  %2243 = vmatprep.mubr.f32.mxu0 %v1441_v48  ;;  %v685_v2 = vadd.f32 %v4051_v24, %v3657_v46  ;;  %v1140_v24 = vadd.f32 %v4069_v23, %v3653_v43  ;;  %v1450_v23 = vmax.f32 %v683_v59, 0.0 }
 0x200   : > { %1858 = vmatprep.mubr.f32.mxu1 %v1439_v42  ;;  %v1453_v42 = vmax.f32 %v1134_v18, 0.0  ;;  %v1456_v18 = vmax.f32 %v1138_v63, 0.0 }
 0x201   : > { %v4173_v49 = vpop.f32.mrb[80].mxu0  ;;  %v1451_v52 = vmax.f32 %v685_v2, 0.0  ;;  %v695_v2 = vadd.f32 %v4077_v10, %v3672_v53  ;;  %v1150_v10 = vadd.f32 %v4097_v9, %v3667_v51 }
 0x202   : > { %v4177_v38 = vpop.f32.mrb[80].mxu1  ;;  %2244 = vmatmul.mubr.f32.gmra.mrb[186].mxu0 %v1440_v61  ;;  %v4179_v28 = vpop.f32.mrb[81].mxu0 }
 0x203   : > { %v4181_v55 = vpop.f32.mrb[81].mxu1  ;;  %1859 = vmatmul.mubr.f32.gmra.mrb[186].mxu1 %v1438_v7  ;;  %2248 = vmatprep.mubr.f32.mxu0 %v1445_v57  ;;  %v691_v7 = vadd.f32 %v4067_v30, %v3657_v46  ;;  %v1146_v30 = vadd.f32 %v4085_v29, %v3653_v43  ;;  %v1454_v29 = vmax.f32 %v689_v60, 0.0 }
 0x204   : > { %1863 = vmatprep.mubr.f32.mxu1 %v1443_v62  ;;  %v1457_v62 = vmax.f32 %v1140_v24, 0.0  ;;  %v1460_v24 = vmax.f32 %v1144_v5, 0.0 }
 0x205   : > { %v4189_v58 = vpop.f32.mrb[82].mxu0  ;;  %v1455_v21 = vmax.f32 %v691_v7, 0.0  ;;  %v701_v7 = vadd.f32 %v4093_v15, %v3672_v53  ;;  %v1156_v15 = vadd.f32 %v4113_v14, %v3667_v51 }
 0x206   : > { %v4193_v48 = vpop.f32.mrb[82].mxu1  ;;  %2249 = vmatmul.mubr.f32.gmra.mrb[188].mxu0 %v1444_v3  ;;  %v4195_v50 = vpop.f32.mrb[83].mxu0 }
 0x207   : > { %v4197_v0 = vpop.f32.mrb[83].mxu1  ;;  %1864 = vmatmul.mubr.f32.gmra.mrb[188].mxu1 %v1442_v12  ;;  %2253 = vmatprep.mubr.f32.mxu0 %v1449_v27  ;;  %v697_v12 = vadd.f32 %v4083_v37, %v3657_v46  ;;  %v1152_v37 = vadd.f32 %v4101_v34, %v3653_v43  ;;  %v1458_v34 = vmax.f32 %v695_v2, 0.0 }
 0x208   : > { %1868 = vmatprep.mubr.f32.mxu1 %v1447_v32  ;;  %v1461_v32 = vmax.f32 %v1146_v30, 0.0  ;;  %v1464_v30 = vmax.f32 %v1150_v10, 0.0 }
 0x209   : > { %v4205_v61 = vpop.f32.mrb[84].mxu0  ;;  %v1459_v36 = vmax.f32 %v697_v12, 0.0  ;;  %v707_v12 = vadd.f32 %v4109_v20, %v3672_v53  ;;  %v1162_v20 = vadd.f32 %v4129_v19, %v3667_v51 }
 0x20a   : > { %v4209_v57 = vpop.f32.mrb[84].mxu1  ;;  %2254 = vmatmul.mubr.f32.gmra.mrb[190].mxu0 %v1448_v8  ;;  %v4211_v16 = vpop.f32.mrb[85].mxu0 }
 0x20b   : > { %v4213_v44 = vpop.f32.mrb[85].mxu1  ;;  %1869 = vmatmul.mubr.f32.gmra.mrb[190].mxu1 %v1446_v17  ;;  %2258 = vmatprep.mubr.f32.mxu0 %v1453_v42  ;;  %v703_v17 = vadd.f32 %v4099_v47, %v3657_v46  ;;  %v1158_v47 = vadd.f32 %v4117_v45, %v3653_v43  ;;  %v1462_v45 = vmax.f32 %v701_v7, 0.0 }
 0x20c   : > { %1873 = vmatprep.mubr.f32.mxu1 %v1451_v52  ;;  %v1465_v52 = vmax.f32 %v1152_v37, 0.0  ;;  %v1468_v37 = vmax.f32 %v1156_v15, 0.0 }
 0x20d   : > { %v4221_v3 = vpop.f32.mrb[86].mxu0  ;;  %v1463_v63 = vmax.f32 %v703_v17, 0.0  ;;  %v713_v17 = vadd.f32 %v4125_v26, %v3672_v53  ;;  %v1168_v26 = vadd.f32 %v4145_v25, %v3667_v51 }
 0x20e   : > { %v4225_v27 = vpop.f32.mrb[86].mxu1  ;;  %2259 = vmatmul.mubr.f32.gmra.mrb[192].mxu0 %v1452_v13  ;;  %v4227_v35 = vpop.f32.mrb[87].mxu0 }
 0x20f   : > { %v4229_v6 = vpop.f32.mrb[87].mxu1  ;;  %1874 = vmatmul.mubr.f32.gmra.mrb[192].mxu1 %v1450_v23  ;;  %2263 = vmatprep.mubr.f32.mxu0 %v1457_v62  ;;  %v709_v23 = vadd.f32 %v4115_v56, %v3657_v46  ;;  %v1164_v56 = vadd.f32 %v4133_v54, %v3653_v43  ;;  %v1466_v54 = vmax.f32 %v707_v12, 0.0 }
 0x210   : > { %1878 = vmatprep.mubr.f32.mxu1 %v1455_v21  ;;  %v1469_v21 = vmax.f32 %v1158_v47, 0.0  ;;  %v1472_v47 = vmax.f32 %v1162_v20, 0.0 }
 0x211   : > { %v4237_v8 = vpop.f32.mrb[88].mxu0  ;;  %v1467_v5 = vmax.f32 %v709_v23, 0.0  ;;  %v719_v23 = vadd.f32 %v4141_v40, %v3672_v53  ;;  %v1174_v40 = vadd.f32 %v4161_v31, %v3667_v51 }
 0x212   : > { %v4241_v42 = vpop.f32.mrb[88].mxu1  ;;  %2264 = vmatmul.mubr.f32.gmra.mrb[194].mxu0 %v1456_v18  ;;  %v4243_v59 = vpop.f32.mrb[89].mxu0 }
 0x213   : > { %v4245_v4 = vpop.f32.mrb[89].mxu1  ;;  %1879 = vmatmul.mubr.f32.gmra.mrb[194].mxu1 %v1454_v29  ;;  %2268 = vmatprep.mubr.f32.mxu0 %v1461_v32  ;;  %v715_v29 = vadd.f32 %v4131_v22, %v3657_v46  ;;  %v1170_v22 = vadd.f32 %v4149_v11, %v3653_v43  ;;  %v1470_v11 = vmax.f32 %v713_v17, 0.0 }
 0x214   : > { %1883 = vmatprep.mubr.f32.mxu1 %v1459_v36  ;;  %v1473_v36 = vmax.f32 %v1164_v56, 0.0  ;;  %v1476_v56 = vmax.f32 %v1168_v26, 0.0 }
 0x215   : > { %v4253_v13 = vpop.f32.mrb[90].mxu0  ;;  %v1471_v10 = vmax.f32 %v715_v29, 0.0  ;;  %v725_v29 = vadd.f32 %v4157_v39, %v3672_v53  ;;  %v1180_v39 = vadd.f32 %v4177_v38, %v3667_v51 }
 0x216   : > { %v4257_v62 = vpop.f32.mrb[90].mxu1  ;;  %2269 = vmatmul.mubr.f32.gmra.mrb[196].mxu0 %v1460_v24  ;;  %v4259_v60 = vpop.f32.mrb[91].mxu0 }
 0x217   : > { %v4261_v9 = vpop.f32.mrb[91].mxu1  ;;  %1884 = vmatmul.mubr.f32.gmra.mrb[196].mxu1 %v1458_v34  ;;  %2273 = vmatprep.mubr.f32.mxu0 %v1465_v52  ;;  %v721_v34 = vadd.f32 %v4147_v41, %v3657_v46  ;;  %v1176_v41 = vadd.f32 %v4165_v33, %v3653_v43  ;;  %v1474_v33 = vmax.f32 %v719_v23, 0.0 }
 0x218   : > { %1888 = vmatprep.mubr.f32.mxu1 %v1463_v63  ;;  %v1477_v63 = vmax.f32 %v1170_v22, 0.0  ;;  %v1480_v22 = vmax.f32 %v1174_v40, 0.0 }
 0x219   : > { %v4269_v18 = vpop.f32.mrb[92].mxu0  ;;  %v1475_v15 = vmax.f32 %v721_v34, 0.0  ;;  %v731_v34 = vadd.f32 %v4173_v49, %v3672_v53  ;;  %v1186_v49 = vadd.f32 %v4193_v48, %v3667_v51 }
 0x21a   : > { %v4273_v32 = vpop.f32.mrb[92].mxu1  ;;  %2274 = vmatmul.mubr.f32.gmra.mrb[198].mxu0 %v1464_v30  ;;  %v4275_v2 = vpop.f32.mrb[93].mxu0 }
 0x21b   : > { %v4277_v14 = vpop.f32.mrb[93].mxu1  ;;  %1889 = vmatmul.mubr.f32.gmra.mrb[198].mxu1 %v1462_v45  ;;  %2278 = vmatprep.mubr.f32.mxu0 %v1469_v21  ;;  %v727_v45 = vadd.f32 %v4163_v1, %v3657_v46  ;;  %v1182_v1 = vadd.f32 %v4181_v55, %v3653_v43  ;;  %v1478_v55 = vmax.f32 %v725_v29, 0.0 }
 0x21c   : > { %1893 = vmatprep.mubr.f32.mxu1 %v1467_v5  ;;  %v1481_v5 = vmax.f32 %v1176_v41, 0.0  ;;  %v1484_v41 = vmax.f32 %v1180_v39, 0.0 }
 0x21d   : > { %v4285_v24 = vpop.f32.mrb[94].mxu0  ;;  %v1479_v20 = vmax.f32 %v727_v45, 0.0  ;;  %v737_v45 = vadd.f32 %v4189_v58, %v3672_v53  ;;  %v1192_v58 = vadd.f32 %v4209_v57, %v3667_v51 }
 0x21e   : > { %v4289_v52 = vpop.f32.mrb[94].mxu1  ;;  %2279 = vmatmul.mubr.f32.gmra.mrb[200].mxu0 %v1468_v37  ;;  %v4291_v7 = vpop.f32.mrb[95].mxu0 }
 0x21f   : > { %v4293_v19 = vpop.f32.mrb[95].mxu1  ;;  %1894 = vmatmul.mubr.f32.gmra.mrb[200].mxu1 %v1466_v54  ;;  %2283 = vmatprep.mubr.f32.mxu0 %v1473_v36  ;;  %v733_v54 = vadd.f32 %v4179_v28, %v3657_v46  ;;  %v1188_v28 = vadd.f32 %v4197_v0, %v3653_v43  ;;  %v1482_v0 = vmax.f32 %v731_v34, 0.0 }
 0x220   : > { %1898 = vmatprep.mubr.f32.mxu1 %v1471_v10  ;;  %v1485_v10 = vmax.f32 %v1182_v1, 0.0  ;;  %v1488_v1 = vmax.f32 %v1186_v49, 0.0 }
 0x221   : > { %v4301_v30 = vpop.f32.mrb[96].mxu0  ;;  %v1483_v26 = vmax.f32 %v733_v54, 0.0  ;;  %v743_v54 = vadd.f32 %v4205_v61, %v3672_v53  ;;  %v1198_v61 = vadd.f32 %v4225_v27, %v3667_v51 }
 0x222   : > { %v4305_v21 = vpop.f32.mrb[96].mxu1  ;;  %2284 = vmatmul.mubr.f32.gmra.mrb[202].mxu0 %v1472_v47  ;;  %v4307_v12 = vpop.f32.mrb[97].mxu0 }
 0x223   : > { %v4309_v25 = vpop.f32.mrb[97].mxu1  ;;  %1899 = vmatmul.mubr.f32.gmra.mrb[202].mxu1 %v1470_v11  ;;  %2288 = vmatprep.mubr.f32.mxu0 %v1477_v63  ;;  %v739_v11 = vadd.f32 %v4195_v50, %v3657_v46  ;;  %v1194_v50 = vadd.f32 %v4213_v44, %v3653_v43  ;;  %v1486_v44 = vmax.f32 %v737_v45, 0.0 }
 0x224   : > { %1903 = vmatprep.mubr.f32.mxu1 %v1475_v15  ;;  %v1489_v15 = vmax.f32 %v1188_v28, 0.0  ;;  %v1492_v28 = vmax.f32 %v1192_v58, 0.0 }
 0x225   : > { %v4317_v37 = vpop.f32.mrb[98].mxu0  ;;  %v1487_v40 = vmax.f32 %v739_v11, 0.0  ;;  %v749_v11 = vadd.f32 %v4221_v3, %v3672_v53  ;;  %v1204_v3 = vadd.f32 %v4241_v42, %v3667_v51 }
 0x226   : > { %v4321_v36 = vpop.f32.mrb[98].mxu1  ;;  %2289 = vmatmul.mubr.f32.gmra.mrb[204].mxu0 %v1476_v56  ;;  %v4323_v17 = vpop.f32.mrb[99].mxu0 }
 0x227   : > { %v4325_v31 = vpop.f32.mrb[99].mxu1  ;;  %1904 = vmatmul.mubr.f32.gmra.mrb[204].mxu1 %v1474_v33  ;;  %2293 = vmatprep.mubr.f32.mxu0 %v1481_v5  ;;  %v745_v33 = vadd.f32 %v4211_v16, %v3657_v46  ;;  %v1200_v16 = vadd.f32 %v4229_v6, %v3653_v43  ;;  %v1490_v6 = vmax.f32 %v743_v54, 0.0 }
 0x228   : > { %1908 = vmatprep.mubr.f32.mxu1 %v1479_v20  ;;  %v1493_v20 = vmax.f32 %v1194_v50, 0.0  ;;  %v1496_v50 = vmax.f32 %v1198_v61, 0.0 }
 0x229   : > { %v4333_v47 = vpop.f32.mrb[100].mxu0  ;;  %v1491_v39 = vmax.f32 %v745_v33, 0.0  ;;  %v755_v33 = vadd.f32 %v4237_v8, %v3672_v53  ;;  %v1210_v8 = vadd.f32 %v4257_v62, %v3667_v51 }
 0x22a   : > { %v4337_v63 = vpop.f32.mrb[100].mxu1  ;;  %2294 = vmatmul.mubr.f32.gmra.mrb[206].mxu0 %v1480_v22  ;;  %v4339_v23 = vpop.f32.mrb[101].mxu0 }
 0x22b   : > { %v4341_v38 = vpop.f32.mrb[101].mxu1  ;;  %1909 = vmatmul.mubr.f32.gmra.mrb[206].mxu1 %v1478_v55  ;;  %2298 = vmatprep.mubr.f32.mxu0 %v1485_v10  ;;  %v751_v55 = vadd.f32 %v4227_v35, %v3657_v46  ;;  %v1206_v35 = vadd.f32 %v4245_v4, %v3653_v43  ;;  %v1494_v4 = vmax.f32 %v749_v11, 0.0 }
 0x22c   : > { %1913 = vmatprep.mubr.f32.mxu1 %v1483_v26  ;;  %v1497_v26 = vmax.f32 %v1200_v16, 0.0  ;;  %v1500_v16 = vmax.f32 %v1204_v3, 0.0 }
 0x22d   : > { %v4349_v56 = vpop.f32.mrb[102].mxu0  ;;  %v1495_v49 = vmax.f32 %v751_v55, 0.0  ;;  %v761_v55 = vadd.f32 %v4253_v13, %v3672_v53  ;;  %v1216_v13 = vadd.f32 %v4273_v32, %v3667_v51 }
 0x22e   : > { %v4353_v5 = vpop.f32.mrb[102].mxu1  ;;  %2299 = vmatmul.mubr.f32.gmra.mrb[208].mxu0 %v1484_v41  ;;  %v4355_v29 = vpop.f32.mrb[103].mxu0 }
 0x22f   : > { %v4357_v48 = vpop.f32.mrb[103].mxu1  ;;  %1914 = vmatmul.mubr.f32.gmra.mrb[208].mxu1 %v1482_v0  ;;  %2303 = vmatprep.mubr.f32.mxu0 %v1489_v15  ;;  %v757_v0 = vadd.f32 %v4243_v59, %v3657_v46  ;;  %v1212_v59 = vadd.f32 %v4261_v9, %v3653_v43  ;;  %v1498_v9 = vmax.f32 %v755_v33, 0.0 }
 0x230   : > { %1918 = vmatprep.mubr.f32.mxu1 %v1487_v40  ;;  %v1501_v40 = vmax.f32 %v1206_v35, 0.0  ;;  %v1504_v35 = vmax.f32 %v1210_v8, 0.0 }
 0x231   : > { %v4365_v22 = vpop.f32.mrb[104].mxu0  ;;  %v1499_v58 = vmax.f32 %v757_v0, 0.0  ;;  %v767_v0 = vadd.f32 %v4269_v18, %v3672_v53  ;;  %v1222_v18 = vadd.f32 %v4289_v52, %v3667_v51 }
 0x232   : > { %v4369_v10 = vpop.f32.mrb[104].mxu1  ;;  %2304 = vmatmul.mubr.f32.gmra.mrb[210].mxu0 %v1488_v1  ;;  %v4371_v34 = vpop.f32.mrb[105].mxu0 }
 0x233   : > { %v4373_v57 = vpop.f32.mrb[105].mxu1  ;;  %1919 = vmatmul.mubr.f32.gmra.mrb[210].mxu1 %v1486_v44  ;;  %2308 = vmatprep.mubr.f32.mxu0 %v1493_v20  ;;  %v763_v44 = vadd.f32 %v4259_v60, %v3657_v46  ;;  %v1218_v60 = vadd.f32 %v4277_v14, %v3653_v43  ;;  %v1502_v14 = vmax.f32 %v761_v55, 0.0 }
 0x234   : > { %1923 = vmatprep.mubr.f32.mxu1 %v1491_v39  ;;  %v1505_v39 = vmax.f32 %v1212_v59, 0.0  ;;  %v1508_v59 = vmax.f32 %v1216_v13, 0.0 }
 0x235   : > { %v4381_v41 = vpop.f32.mrb[106].mxu0  ;;  %v1503_v61 = vmax.f32 %v763_v44, 0.0  ;;  %v773_v44 = vadd.f32 %v4285_v24, %v3672_v53  ;;  %v1228_v24 = vadd.f32 %v4305_v21, %v3667_v51 }
 0x236   : > { %v4385_v15 = vpop.f32.mrb[106].mxu1  ;;  %2309 = vmatmul.mubr.f32.gmra.mrb[212].mxu0 %v1492_v28  ;;  %v4387_v45 = vpop.f32.mrb[107].mxu0 }
 0x237   : > { %v4389_v27 = vpop.f32.mrb[107].mxu1  ;;  %1924 = vmatmul.mubr.f32.gmra.mrb[212].mxu1 %v1490_v6  ;;  %2313 = vmatprep.mubr.f32.mxu0 %v1497_v26  ;;  %v769_v6 = vadd.f32 %v4275_v2, %v3657_v46  ;;  %v1224_v2 = vadd.f32 %v4293_v19, %v3653_v43  ;;  %v1506_v19 = vmax.f32 %v767_v0, 0.0 }
 0x238   : > { %1928 = vmatprep.mubr.f32.mxu1 %v1495_v49  ;;  %v1509_v49 = vmax.f32 %v1218_v60, 0.0  ;;  %v1512_v60 = vmax.f32 %v1222_v18, 0.0 }
 0x239   : > { %v4397_v1 = vpop.f32.mrb[108].mxu0  ;;  %v1507_v3 = vmax.f32 %v769_v6, 0.0  ;;  %v779_v6 = vadd.f32 %v4301_v30, %v3672_v53  ;;  %v1234_v30 = vadd.f32 %v4321_v36, %v3667_v51 }
 0x23a   : > { %v4401_v20 = vpop.f32.mrb[108].mxu1  ;;  %2314 = vmatmul.mubr.f32.gmra.mrb[214].mxu0 %v1496_v50  ;;  %v4403_v54 = vpop.f32.mrb[109].mxu0 }
 0x23b   : > { %v4405_v42 = vpop.f32.mrb[109].mxu1  ;;  %1929 = vmatmul.mubr.f32.gmra.mrb[214].mxu1 %v1494_v4  ;;  %2318 = vmatprep.mubr.f32.mxu0 %v1501_v40  ;;  %v775_v4 = vadd.f32 %v4291_v7, %v3657_v46  ;;  %v1230_v7 = vadd.f32 %v4309_v25, %v3653_v43  ;;  %v1510_v25 = vmax.f32 %v773_v44, 0.0 }
 0x23c   : > { %1933 = vmatprep.mubr.f32.mxu1 %v1499_v58  ;;  %v1513_v58 = vmax.f32 %v1224_v2, 0.0  ;;  %v1516_v2 = vmax.f32 %v1228_v24, 0.0 }
 0x23d   : > { %v4413_v28 = vpop.f32.mrb[110].mxu0  ;;  %v1511_v8 = vmax.f32 %v775_v4, 0.0  ;;  %v785_v4 = vadd.f32 %v4317_v37, %v3672_v53  ;;  %v1240_v37 = vadd.f32 %v4337_v63, %v3667_v51 }
 0x23e   : > { %v4417_v26 = vpop.f32.mrb[110].mxu1  ;;  %2319 = vmatmul.mubr.f32.gmra.mrb[216].mxu0 %v1500_v16  ;;  %v4419_v11 = vpop.f32.mrb[111].mxu0 }
 0x23f   : > { %v4421_v62 = vpop.f32.mrb[111].mxu1  ;;  %1934 = vmatmul.mubr.f32.gmra.mrb[216].mxu1 %v1498_v9  ;;  %2323 = vmatprep.mubr.f32.mxu0 %v1505_v39  ;;  %v781_v9 = vadd.f32 %v4307_v12, %v3657_v46  ;;  %v1236_v12 = vadd.f32 %v4325_v31, %v3653_v43  ;;  %v1514_v31 = vmax.f32 %v779_v6, 0.0 }
 0x240   : > { %1938 = vmatprep.mubr.f32.mxu1 %v1503_v61  ;;  %v1517_v61 = vmax.f32 %v1230_v7, 0.0  ;;  %v1520_v7 = vmax.f32 %v1234_v30, 0.0 }
 0x241   : > { %v4429_v50 = vpop.f32.mrb[112].mxu0  ;;  %v1515_v13 = vmax.f32 %v781_v9, 0.0  ;;  %v791_v9 = vadd.f32 %v4333_v47, %v3672_v53  ;;  %v1246_v47 = vadd.f32 %v4353_v5, %v3667_v51 }
 0x242   : > { %v4433_v40 = vpop.f32.mrb[112].mxu1  ;;  %2324 = vmatmul.mubr.f32.gmra.mrb[218].mxu0 %v1504_v35  ;;  %v4435_v33 = vpop.f32.mrb[113].mxu0 }
 0x243   : > { %v4437_v32 = vpop.f32.mrb[113].mxu1  ;;  %1939 = vmatmul.mubr.f32.gmra.mrb[218].mxu1 %v1502_v14  ;;  %2328 = vmatprep.mubr.f32.mxu0 %v1509_v49  ;;  %v787_v14 = vadd.f32 %v4323_v17, %v3657_v46  ;;  %v1242_v17 = vadd.f32 %v4341_v38, %v3653_v43  ;;  %v1518_v38 = vmax.f32 %v785_v4, 0.0 }
 0x244   : > { %1943 = vmatprep.mubr.f32.mxu1 %v1507_v3  ;;  %v1521_v3 = vmax.f32 %v1236_v12, 0.0  ;;  %v1524_v12 = vmax.f32 %v1240_v37, 0.0 }
 0x245   : > { %v4445_v16 = vpop.f32.mrb[114].mxu0  ;;  %v1519_v18 = vmax.f32 %v787_v14, 0.0  ;;  %v797_v14 = vadd.f32 %v4349_v56, %v3672_v53  ;;  %v1252_v56 = vadd.f32 %v4369_v10, %v3667_v51 }
 0x246   : > { %v4449_v39 = vpop.f32.mrb[114].mxu1  ;;  %2329 = vmatmul.mubr.f32.gmra.mrb[220].mxu0 %v1508_v59  ;;  %v4451_v55 = vpop.f32.mrb[115].mxu0 }
 0x247   : > { %v4453_v52 = vpop.f32.mrb[115].mxu1  ;;  %1944 = vmatmul.mubr.f32.gmra.mrb[220].mxu1 %v1506_v19  ;;  %2333 = vmatprep.mubr.f32.mxu0 %v1513_v58  ;;  %v793_v19 = vadd.f32 %v4339_v23, %v3657_v46  ;;  %v1248_v23 = vadd.f32 %v4357_v48, %v3653_v43  ;;  %v1522_v48 = vmax.f32 %v791_v9, 0.0 }
 0x248   : > { %1948 = vmatprep.mubr.f32.mxu1 %v1511_v8  ;;  %v1525_v8 = vmax.f32 %v1242_v17, 0.0  ;;  %v1528_v17 = vmax.f32 %v1246_v47, 0.0 }
 0x249   : > { %v4461_v35 = vpop.f32.mrb[116].mxu0  ;;  %v1523_v24 = vmax.f32 %v793_v19, 0.0  ;;  %v803_v19 = vadd.f32 %v4365_v22, %v3672_v53  ;;  %v1258_v22 = vadd.f32 %v4385_v15, %v3667_v51 }
 0x24a   : > { %v4465_v49 = vpop.f32.mrb[116].mxu1  ;;  %2334 = vmatmul.mubr.f32.gmra.mrb[222].mxu0 %v1512_v60  ;;  %v4467_v0 = vpop.f32.mrb[117].mxu0 }
 0x24b   : > { %v4469_v21 = vpop.f32.mrb[117].mxu1  ;;  %1949 = vmatmul.mubr.f32.gmra.mrb[222].mxu1 %v1510_v25  ;;  %2338 = vmatprep.mubr.f32.mxu0 %v1517_v61  ;;  %v799_v25 = vadd.f32 %v4355_v29, %v3657_v46  ;;  %v1254_v29 = vadd.f32 %v4373_v57, %v3653_v43  ;;  %v1526_v57 = vmax.f32 %v797_v14, 0.0 }
 0x24c   : > { %1953 = vmatprep.mubr.f32.mxu1 %v1515_v13  ;;  %v1529_v13 = vmax.f32 %v1248_v23, 0.0  ;;  %v1532_v23 = vmax.f32 %v1252_v56, 0.0 }
 0x24d   : > { %v4477_v59 = vpop.f32.mrb[118].mxu0  ;;  %v1527_v30 = vmax.f32 %v799_v25, 0.0  ;;  %v809_v25 = vadd.f32 %v4381_v41, %v3672_v53  ;;  %v1264_v41 = vadd.f32 %v4401_v20, %v3667_v51 }
 0x24e   : > { %v4481_v58 = vpop.f32.mrb[118].mxu1  ;;  %2339 = vmatmul.mubr.f32.gmra.mrb[224].mxu0 %v1516_v2  ;;  %v4483_v44 = vpop.f32.mrb[119].mxu0 }
 0x24f   : > { %v4485_v36 = vpop.f32.mrb[119].mxu1  ;;  %1954 = vmatmul.mubr.f32.gmra.mrb[224].mxu1 %v1514_v31  ;;  %2343 = vmatprep.mubr.f32.mxu0 %v1521_v3  ;;  %v805_v31 = vadd.f32 %v4371_v34, %v3657_v46  ;;  %v1260_v34 = vadd.f32 %v4389_v27, %v3653_v43  ;;  %v1530_v27 = vmax.f32 %v803_v19, 0.0 }
 0x250   : > { %1958 = vmatprep.mubr.f32.mxu1 %v1519_v18  ;;  %v1533_v18 = vmax.f32 %v1254_v29, 0.0  ;;  %v1536_v29 = vmax.f32 %v1258_v22, 0.0 }
 0x251   : > { %v4493_v60 = vpop.f32.mrb[120].mxu0  ;;  %v1531_v37 = vmax.f32 %v805_v31, 0.0  ;;  %v815_v31 = vadd.f32 %v4397_v1, %v3672_v53  ;;  %v1270_v1 = vadd.f32 %v4417_v26, %v3667_v51 }
 0x252   : > { %v4497_v61 = vpop.f32.mrb[120].mxu1  ;;  %2344 = vmatmul.mubr.f32.gmra.mrb[226].mxu0 %v1520_v7  ;;  %v4499_v6 = vpop.f32.mrb[121].mxu0 }
 0x253   : > { %v4501_v63 = vpop.f32.mrb[121].mxu1  ;;  %1959 = vmatmul.mubr.f32.gmra.mrb[226].mxu1 %v1518_v38  ;;  %2348 = vmatprep.mubr.f32.mxu0 %v1525_v8  ;;  %v811_v38 = vadd.f32 %v4387_v45, %v3657_v46  ;;  %v1266_v45 = vadd.f32 %v4405_v42, %v3653_v43  ;;  %v4556_v42 = vld [vmem:[%s4814_s4] ss:$0 sm:$0xff] }
 0x254   : > { %1963 = vmatprep.mubr.f32.mxu1 %v1523_v24  ;;  %v1537_v24 = vmax.f32 %v1260_v34, 0.0 }
 0x255   : > { %v4509_v2 = vpop.f32.mrb[122].mxu0  ;;  %v1535_v47 = vmax.f32 %v811_v38, 0.0  ;;  %v1540_v38 = vmax.f32 %v1264_v41, 0.0  ;;  %v1276_v41 = vadd.f32 %v4433_v40, %v3667_v51 }
 0x256   : > { %v4513_v3 = vpop.f32.mrb[122].mxu1  ;;  %2349 = vmatmul.mubr.f32.gmra.mrb[228].mxu0 %v1524_v12  ;;  %v4515_v4 = vpop.f32.mrb[123].mxu0 }
 0x257   : > { %v4517_v5 = vpop.f32.mrb[123].mxu1  ;;  %1964 = vmatmul.mubr.f32.gmra.mrb[228].mxu1 %v1522_v48  ;;  %2353 = vmatprep.mubr.f32.mxu0 %v1529_v13  ;;  %v817_v48 = vadd.f32 %v4403_v54, %v3657_v46  ;;  %v1534_v54 = vmax.f32 %v809_v25, 0.0 }
 0x258   : > { %1968 = vmatprep.mubr.f32.mxu1 %v1527_v30  ;;  %v1541_v30 = vmax.f32 %v1266_v45, 0.0  ;;  %v829_v45 = vadd.f32 %v4435_v33, %v3657_v46 }
 0x259   : > { %v4525_v7 = vpop.f32.mrb[124].mxu0 }
 0x25a   : > { %v4529_v8 = vpop.f32.mrb[124].mxu1  ;;  %2354 = vmatmul.mubr.f32.gmra.mrb[230].mxu0 %v1528_v17  ;;  %v4531_v9 = vpop.f32.mrb[125].mxu0  ;;  %v1272_v17 = vadd.f32 %v4421_v62, %v3653_v43  ;;  %v821_v62 = vadd.f32 %v4413_v28, %v3672_v53 }
 0x25b   : > { %v4533_v10 = vpop.f32.mrb[125].mxu1  ;;  %1969 = vmatmul.mubr.f32.gmra.mrb[230].mxu1 %v1526_v57  ;;  %2358 = vmatprep.mubr.f32.mxu0 %v1533_v18  ;;  %v1539_v57 = vmax.f32 %v817_v48, 0.0  ;;  %v823_v18 = vadd.f32 %v4419_v11, %v3657_v46  ;;  %v1278_v11 = vadd.f32 %v4437_v32, %v3653_v43  ;;  %v1544_v32 = vmax.f32 %v1270_v1, 0.0 }
 0x25c   : > { %1973 = vmatprep.mubr.f32.mxu1 %v1531_v37  ;;  %v1545_v22 = vmax.f32 %v1272_v17, 0.0 }
 0x25d   : > { %v4541_v12 = vpop.f32.mrb[126].mxu0  ;;  %v1543_v25 = vmax.f32 %v823_v18, 0.0  ;;  %v1549_v33 = vmax.f32 %v1278_v11, 0.0 }
 0x25e   : > { %v4545_v13 = vpop.f32.mrb[126].mxu1  ;;  %2359 = vmatmul.mubr.f32.gmra.mrb[232].mxu0 %v1532_v23  ;;  %v4547_v14 = vpop.f32.mrb[127].mxu0  ;;  %v1538_v23 = vmax.f32 %v815_v31, 0.0 }
 0x25f   : > { %v4549_v15 = vpop.f32.mrb[127].mxu1  ;;  %1974 = vmatmul.mubr.f32.gmra.mrb[232].mxu1 %v1530_v27  ;;  %2363 = vmatprep.mubr.f32.mxu0 %v1537_v24 }
 0x260   : > { %1978 = vmatprep.mubr.f32.mxu1 %v1535_v47 }
 0x261   : > { %v2100_v56 = vpop.f32.mrb[128].mxu0 }
 0x262   : > { %v1715_v20 = vpop.f32.mrb[128].mxu1  ;;  %v2102_v19 = vpop.f32.mrb[129].mxu0  ;;  %2364 = vmatmul.mubr.f32.gmra.mrb[234].mxu0 %v1536_v29  ;;  %v1542_v29 = vmax.f32 %v821_v62, 0.0 }
 0x263   : > { %v1716_v34 = vadd.f32 %v4556_v42, %v1715_v20  ;;  %v1717_v37 = vpop.f32.mrb[129].mxu1  ;;  %1979 = vmatmul.mubr.f32.gmra.mrb[234].mxu1 %v1534_v54  ;;  %2368 = vmatprep.mubr.f32.mxu0 %v1541_v30  ;;  %v827_v54 = vadd.f32 %v4429_v50, %v3672_v53  ;;  %v1284_v30 = vadd.f32 %v4453_v52, %v3653_v43  ;;  %v1548_v50 = vmax.f32 %v1276_v41, 0.0 }
 0x264   : > { %1983 = vmatprep.mubr.f32.mxu1 %v1539_v57  ;;  %v835_v57 = vadd.f32 %v4451_v55, %v3657_v46  ;;  %v1282_v52 = vadd.f32 %v4449_v39, %v3667_v51 }
 0x265   : > { %v2101_v27 = vadd.f32 %v2100_v56, %v1716_v34  ;;  %v2105_v24 = vpop.f32.mrb[130].mxu0  ;;  %v1547_v56 = vmax.f32 %v829_v45, 0.0  ;;  %v833_v34 = vadd.f32 %v4445_v16, %v3672_v53  ;;  %v1546_v37 = vmax.f32 %v827_v54, 0.0 }
 0x266   : > { %v1720_v47 = vpop.f32.mrb[130].mxu1  ;;  %v2107_v48 = vpop.f32.mrb[131].mxu0  ;;  %2369 = vmatmul.mubr.f32.gmra.mrb[236].mxu0 %v1540_v38  ;;  %v1553_v55 = vmax.f32 %v1284_v30, 0.0  ;;  %v1290_v38 = vadd.f32 %v4469_v21, %v3653_v43  ;;  %v1552_v16 = vmax.f32 %v1282_v52, 0.0  ;;  %v1288_v21 = vadd.f32 %v4465_v49, %v3667_v51 }
 0x267   : > { %2419 = vst [vmem:[%s4575_s10] sm:$0xff] %v2101_v27  ;;  %v1721_v28 = vadd.f32 %v4556_v42, %v1720_v47  ;;  %v1722_v26 = vpop.f32.mrb[131].mxu1  ;;  %1984 = vmatmul.mubr.f32.gmra.mrb[236].mxu1 %v1538_v23  ;;  %2373 = vmatprep.mubr.f32.mxu0 %v1545_v22  ;;  %v1551_v23 = vmax.f32 %v835_v57, 0.0  ;;  %v841_v22 = vadd.f32 %v4467_v0, %v3657_v46 }
 0x268   : > { %1988 = vmatprep.mubr.f32.mxu1 %v1543_v25  ;;  %v1550_v25 = vmax.f32 %v833_v34, 0.0  ;;  %v1557_v45 = vmax.f32 %v1290_v38, 0.0  ;;  %v839_v0 = vadd.f32 %v4461_v35, %v3672_v53  ;;  %v1296_v47 = vadd.f32 %v4485_v36, %v3653_v43 }
 0x269   : > { %v2106_v31 = vadd.f32 %v2105_v24, %v1721_v28  ;;  %v2110_v17 = vpop.f32.mrb[132].mxu0  ;;  %v1555_v26 = vmax.f32 %v841_v22, 0.0  ;;  %v1556_v35 = vmax.f32 %v1288_v21, 0.0  ;;  %v1294_v36 = vadd.f32 %v4481_v58, %v3667_v51 }
 0x26a   : > { %v1725_v18 = vpop.f32.mrb[132].mxu1  ;;  %v2112_v20 = vpop.f32.mrb[133].mxu0  ;;  %2374 = vmatmul.mubr.f32.gmra.mrb[238].mxu0 %v1544_v32  ;;  %v847_v32 = vadd.f32 %v4483_v44, %v3657_v46  ;;  %v845_v54 = vadd.f32 %v4477_v59, %v3672_v53  ;;  %v1554_v30 = vmax.f32 %v839_v0, 0.0  ;;  %v1561_v44 = vmax.f32 %v1296_v47, 0.0 }
 0x26b   : > { %2420 = vst [vmem:[%s4575_s10 + $0x8] sm:$0xff] %v2106_v31  ;;  %v1726_v40 = vadd.f32 %v4556_v42, %v1725_v18  ;;  %v1727_v19 = vpop.f32.mrb[133].mxu1  ;;  %1989 = vmatmul.mubr.f32.gmra.mrb[238].mxu1 %v1542_v29  ;;  %2378 = vmatprep.mubr.f32.mxu0 %v1549_v33  ;;  %v1302_v31 = vadd.f32 %v4501_v63, %v3653_v43  ;;  %v1560_v59 = vmax.f32 %v1294_v36, 0.0 }
 0x26c   : > { %1993 = vmatprep.mubr.f32.mxu1 %v1547_v56  ;;  %v1559_v57 = vmax.f32 %v847_v32, 0.0  ;;  %v853_v18 = vadd.f32 %v4499_v6, %v3657_v46  ;;  %v1300_v63 = vadd.f32 %v4497_v61, %v3667_v51  ;;  %v851_v6 = vadd.f32 %v4493_v60, %v3672_v53 }
 0x26d   : > { %v2111_v1 = vadd.f32 %v2110_v17, %v1726_v40  ;;  %v2115_v62 = vpop.f32.mrb[134].mxu0  ;;  %v1565_v52 = vmax.f32 %v1302_v31, 0.0  ;;  %v1308_v34 = vadd.f32 %v4517_v5, %v3653_v43  ;;  %v1306_v5 = vadd.f32 %v4513_v3, %v3667_v51 }
 0x26e   : > { %v1730_v11 = vpop.f32.mrb[134].mxu1  ;;  %v2117_v27 = vpop.f32.mrb[135].mxu0  ;;  %2379 = vmatmul.mubr.f32.gmra.mrb[240].mxu0 %v1548_v50  ;;  %v1558_v50 = vmax.f32 %v845_v54, 0.0  ;;  %v1563_v38 = vmax.f32 %v853_v18, 0.0  ;;  %v1564_v60 = vmax.f32 %v1300_v63, 0.0  ;;  %v865_v21 = vadd.f32 %v4531_v9, %v3657_v46 }
 0x26f   : > { %2421 = vst [vmem:[%s4575_s10 + $0x10] sm:$0xff] %v2111_v1  ;;  %v1731_v39 = vadd.f32 %v4556_v42, %v1730_v11  ;;  %v1732_v24 = vpop.f32.mrb[135].mxu1  ;;  %1994 = vmatmul.mubr.f32.gmra.mrb[240].mxu1 %v1546_v37  ;;  %2383 = vmatprep.mubr.f32.mxu0 %v1553_v55  ;;  %v859_v1 = vadd.f32 %v4515_v4, %v3657_v46  ;;  %v1562_v27 = vmax.f32 %v851_v6, 0.0  ;;  %v1569_v4 = vmax.f32 %v1308_v34, 0.0 }
 0x270   : > { %1998 = vmatprep.mubr.f32.mxu1 %v1551_v23  ;;  %v857_v11 = vadd.f32 %v4509_v2, %v3672_v53  ;;  %v1568_v2 = vmax.f32 %v1306_v5, 0.0  ;;  %v863_v9 = vadd.f32 %v4525_v7, %v3672_v53 }
 0x271   : > { %v2116_v48 = vadd.f32 %v2115_v62, %v1731_v39  ;;  %v2120_v28 = vpop.f32.mrb[136].mxu0  ;;  %v1314_v39 = vadd.f32 %v4533_v10, %v3653_v43  ;;  %v1312_v10 = vadd.f32 %v4529_v8, %v3667_v51 }
 0x272   : > { %v1735_v29 = vpop.f32.mrb[136].mxu1  ;;  %v2122_v41 = vpop.f32.mrb[137].mxu0  ;;  %2384 = vmatmul.mubr.f32.gmra.mrb[242].mxu0 %v1552_v16 }
 0x273   : > { %2422 = vst [vmem:[%s4575_s10 + $0x18] sm:$0xff] %v2116_v48  ;;  %v1736_v49 = vadd.f32 %v4556_v42, %v1735_v29  ;;  %v1737_v33 = vpop.f32.mrb[137].mxu1  ;;  %1999 = vmatmul.mubr.f32.gmra.mrb[242].mxu1 %v1550_v25  ;;  %2388 = vmatprep.mubr.f32.mxu0 %v1557_v45  ;;  %v1567_v25 = vmax.f32 %v859_v1, 0.0  ;;  %v1566_v48 = vmax.f32 %v857_v11, 0.0  ;;  %v1571_v41 = vmax.f32 %v865_v21, 0.0 }
 0x274   : > { %2003 = vmatprep.mubr.f32.mxu1 %v1555_v26  ;;  %v1320_v26 = vadd.f32 %v4549_v15, %v3653_v43  ;;  %v1572_v7 = vmax.f32 %v1312_v10, 0.0  ;;  %v1318_v43 = vadd.f32 %v4545_v13, %v3667_v51  ;;  %v1570_v15 = vmax.f32 %v863_v9, 0.0 }
 0x275   : > { %v2121_v17 = vadd.f32 %v2120_v28, %v1736_v49  ;;  %v2125_v56 = vpop.f32.mrb[138].mxu0  ;;  %v1573_v28 = vmax.f32 %v1314_v39, 0.0  ;;  %v871_v49 = vadd.f32 %v4547_v14, %v3657_v46  ;;  %v869_v46 = vadd.f32 %v4541_v12, %v3672_v53 }
 0x276   : > { %v1740_v20 = vpop.f32.mrb[138].mxu1  ;;  %v2127_v40 = vpop.f32.mrb[139].mxu0  ;;  %2389 = vmatmul.mubr.f32.gmra.mrb[244].mxu0 %v1556_v35  ;;  %v1577_v54 = vmax.f32 %v1320_v26, 0.0  ;;  %v1576_v51 = vmax.f32 %v1318_v43, 0.0 }
 0x277   : > { %2423 = vst [vmem:[%s4575_s10 + $0x20] sm:$0xff] %v2121_v17  ;;  %v1741_v58 = vadd.f32 %v4556_v42, %v1740_v20  ;;  %v1742_v19 = vpop.f32.mrb[139].mxu1  ;;  %2004 = vmatmul.mubr.f32.gmra.mrb[244].mxu1 %v1554_v30  ;;  %2393 = vmatprep.mubr.f32.mxu0 %v1561_v44  ;;  %v1575_v44 = vmax.f32 %v871_v49, 0.0  ;;  %v1574_v13 = vmax.f32 %v869_v46, 0.0 }
 0x278   : > { %2008 = vmatprep.mubr.f32.mxu1 %v1559_v57 }
 0x279   : > { %v2126_v37 = vadd.f32 %v2125_v56, %v1741_v58  ;;  %v2130_v55 = vpop.f32.mrb[140].mxu0 }
 0x27a   : > { %v1745_v62 = vpop.f32.mrb[140].mxu1  ;;  %v2132_v23 = vpop.f32.mrb[141].mxu0  ;;  %2394 = vmatmul.mubr.f32.gmra.mrb[246].mxu0 %v1560_v59 }
 0x27b   : > { %2424 = vst [vmem:[%s4575_s10 + $0x28] sm:$0xff] %v2126_v37  ;;  %v1746_v61 = vadd.f32 %v4556_v42, %v1745_v62  ;;  %v1747_v22 = vpop.f32.mrb[141].mxu1  ;;  %2009 = vmatmul.mubr.f32.gmra.mrb[246].mxu1 %v1558_v50  ;;  %2398 = vmatprep.mubr.f32.mxu0 %v1565_v52 }
 0x27c   : > { %2013 = vmatprep.mubr.f32.mxu1 %v1563_v38 }
 0x27d   : > { %v2131_v24 = vadd.f32 %v2130_v55, %v1746_v61  ;;  %v2135_v16 = vpop.f32.mrb[142].mxu0 }
 0x27e   : > { %v1750_v45 = vpop.f32.mrb[142].mxu1  ;;  %v2137_v0 = vpop.f32.mrb[143].mxu0  ;;  %2399 = vmatmul.mubr.f32.gmra.mrb[248].mxu0 %v1564_v60 }
 0x27f   : > { %2425 = vst [vmem:[%s4575_s10 + $0x30] sm:$0xff] %v2131_v24  ;;  %v1751_v3 = vadd.f32 %v4556_v42, %v1750_v45  ;;  %v1752_v47 = vpop.f32.mrb[143].mxu1  ;;  %2014 = vmatmul.mubr.f32.gmra.mrb[248].mxu1 %v1562_v27  ;;  %2403 = vmatprep.mubr.f32.mxu0 %v1569_v4 }
 0x280   : > { %2018 = vmatprep.mubr.f32.mxu1 %v1567_v25 }
 0x281   : > { %v2136_v32 = vadd.f32 %v2135_v16, %v1751_v3  ;;  %v2140_v29 = vpop.f32.mrb[144].mxu0 }
 0x282   : > { %v1755_v33 = vpop.f32.mrb[144].mxu1  ;;  %v2142_v35 = vpop.f32.mrb[145].mxu0  ;;  %2404 = vmatmul.mubr.f32.gmra.mrb[250].mxu0 %v1568_v2 }
 0x283   : > { %2426 = vst [vmem:[%s4575_s10 + $0x38] sm:$0xff] %v2136_v32  ;;  %v1756_v8 = vadd.f32 %v4556_v42, %v1755_v33  ;;  %v1757_v36 = vpop.f32.mrb[145].mxu1  ;;  %2019 = vmatmul.mubr.f32.gmra.mrb[250].mxu1 %v1566_v48  ;;  %2408 = vmatprep.mubr.f32.mxu0 %v1573_v28 }
 0x284   : > { %2023 = vmatprep.mubr.f32.mxu1 %v1571_v41 }
 0x285   : > { %v2141_v14 = vadd.f32 %v2140_v29, %v1756_v8  ;;  %v2145_v30 = vpop.f32.mrb[146].mxu0 }
 0x286   : > { %v1760_v31 = vpop.f32.mrb[146].mxu1  ;;  %v2147_v17 = vpop.f32.mrb[147].mxu0  ;;  %2409 = vmatmul.mubr.f32.gmra.mrb[252].mxu0 %v1572_v7 }
 0x287   : > { %2427 = vst [vmem:[%s4575_s10 + $0x40] sm:$0xff] %v2141_v14  ;;  %v1761_v56 = vadd.f32 %v4556_v42, %v1760_v31  ;;  %v1762_v57 = vpop.f32.mrb[147].mxu1  ;;  %2024 = vmatmul.mubr.f32.gmra.mrb[252].mxu1 %v1570_v15  ;;  %2413 = vmatprep.mubr.f32.mxu0 %v1577_v54 }
 0x288   : > { %2028 = vmatprep.mubr.f32.mxu1 %v1575_v44 }
 0x289   : > { %v2146_v18 = vadd.f32 %v2145_v30, %v1761_v56  ;;  %v2150_v20 = vpop.f32.mrb[148].mxu0 }
 0x28a   : > { %v1765_v53 = vpop.f32.mrb[148].mxu1  ;;  %v2152_v12 = vpop.f32.mrb[149].mxu0  ;;  %2414 = vmatmul.mubr.f32.gmra.mrb[254].mxu0 %v1576_v51 }
 0x28b   : > { %2428 = vst [vmem:[%s4575_s10 + $0x48] sm:$0xff] %v2146_v18  ;;  %v1766_v40 = vadd.f32 %v4556_v42, %v1765_v53  ;;  %v1767_v58 = vpop.f32.mrb[149].mxu1  ;;  %2029 = vmatmul.mubr.f32.gmra.mrb[254].mxu1 %v1574_v13 }
 0x28d   : > { %v2151_v19 = vadd.f32 %v2150_v20, %v1766_v40  ;;  %v2155_v59 = vpop.f32.mrb[150].mxu0 }
 0x28e   : > { %v1770_v50 = vpop.f32.mrb[150].mxu1  ;;  %v2157_v63 = vpop.f32.mrb[151].mxu0 }
 0x28f   : > { %2429 = vst [vmem:[%s4575_s10 + $0x50] sm:$0xff] %v2151_v19  ;;  %v1771_v52 = vadd.f32 %v4556_v42, %v1770_v50  ;;  %v1772_v6 = vpop.f32.mrb[151].mxu1 }
 0x291   : > { %v2156_v34 = vadd.f32 %v2155_v59, %v1771_v52  ;;  %v2160_v37 = vpop.f32.mrb[152].mxu0 }
 0x292   : > { %v1775_v55 = vpop.f32.mrb[152].mxu1  ;;  %v2162_v38 = vpop.f32.mrb[153].mxu0 }
 0x293   : > { %2430 = vst [vmem:[%s4575_s10 + $0x58] sm:$0xff] %v2156_v34  ;;  %v1776_v1 = vadd.f32 %v4556_v42, %v1775_v55  ;;  %v1777_v62 = vpop.f32.mrb[153].mxu1 }
 0x295   : > { %v2161_v23 = vadd.f32 %v2160_v37, %v1776_v1  ;;  %v2165_v61 = vpop.f32.mrb[154].mxu0 }
 0x296   : > { %v1780_v22 = vpop.f32.mrb[154].mxu1  ;;  %v2167_v60 = vpop.f32.mrb[155].mxu0 }
 0x297   : > { %2431 = vst [vmem:[%s4575_s10 + $0x60] sm:$0xff] %v2161_v23  ;;  %v1781_v5 = vadd.f32 %v4556_v42, %v1780_v22  ;;  %v1782_v11 = vpop.f32.mrb[155].mxu1 }
 0x299   : > { %v2166_v27 = vadd.f32 %v2165_v61, %v1781_v5  ;;  %v2170_v4 = vpop.f32.mrb[156].mxu0 }
 0x29a   : > { %v1785_v39 = vpop.f32.mrb[156].mxu1  ;;  %v2172_v24 = vpop.f32.mrb[157].mxu0 }
 0x29b   : > { %2432 = vst [vmem:[%s4575_s10 + $0x68] sm:$0xff] %v2166_v27  ;;  %v1786_v16 = vadd.f32 %v4556_v42, %v1785_v39  ;;  %v1787_v25 = vpop.f32.mrb[157].mxu1 }
 0x29d   : > { %v2171_v21 = vadd.f32 %v2170_v4, %v1786_v16  ;;  %v2175_v45 = vpop.f32.mrb[158].mxu0 }
 0x29e   : > { %v1790_v0 = vpop.f32.mrb[158].mxu1  ;;  %v2177_v3 = vpop.f32.mrb[159].mxu0 }
 0x29f   : > { %2433 = vst [vmem:[%s4575_s10 + $0x70] sm:$0xff] %v2171_v21  ;;  %v1791_v47 = vadd.f32 %v4556_v42, %v1790_v0  ;;  %v1792_v2 = vpop.f32.mrb[159].mxu1 }
 0x2a1   : > { %v2176_v48 = vadd.f32 %v2175_v45, %v1791_v47  ;;  %v2180_v10 = vpop.f32.mrb[160].mxu0 }
 0x2a2   : > { %v1795_v28 = vpop.f32.mrb[160].mxu1  ;;  %v2182_v9 = vpop.f32.mrb[161].mxu0 }
 0x2a3   : > { %2434 = vst [vmem:[%s4575_s10 + $0x78] sm:$0xff] %v2176_v48  ;;  %v1796_v26 = vadd.f32 %v4556_v42, %v1795_v28  ;;  %v1797_v32 = vpop.f32.mrb[161].mxu1 }
 0x2a5   : > { %v2181_v29 = vadd.f32 %v2180_v10, %v1796_v26  ;;  %v2185_v41 = vpop.f32.mrb[162].mxu0 }
 0x2a6   : > { %v1800_v49 = vpop.f32.mrb[162].mxu1  ;;  %v2187_v33 = vpop.f32.mrb[163].mxu0 }
 0x2a7   : > { %2435 = vst [vmem:[%s4575_s10 + $0x80] sm:$0xff] %v2181_v29  ;;  %v1801_v35 = vadd.f32 %v4556_v42, %v1800_v49  ;;  %v1802_v8 = vpop.f32.mrb[163].mxu1 }
 0x2a9   : > { %v2186_v36 = vadd.f32 %v2185_v41, %v1801_v35  ;;  %v2190_v7 = vpop.f32.mrb[164].mxu0 }
 0x2aa   : > { %v1805_v43 = vpop.f32.mrb[164].mxu1  ;;  %v2192_v15 = vpop.f32.mrb[165].mxu0 }
 0x2ab   : > { %2436 = vst [vmem:[%s4575_s10 + $0x88] sm:$0xff] %v2186_v36  ;;  %v1806_v54 = vadd.f32 %v4556_v42, %v1805_v43  ;;  %v1807_v46 = vpop.f32.mrb[165].mxu1 }
 0x2ad   : > { %v2191_v14 = vadd.f32 %v2190_v7, %v1806_v54  ;;  %v2195_v30 = vpop.f32.mrb[166].mxu0 }
 0x2ae   : > { %v1810_v44 = vpop.f32.mrb[166].mxu1  ;;  %v2197_v31 = vpop.f32.mrb[167].mxu0 }
 0x2af   : > { %2437 = vst [vmem:[%s4575_s10 + $0x90] sm:$0xff] %v2191_v14  ;;  %v1811_v17 = vadd.f32 %v4556_v42, %v1810_v44  ;;  %v1812_v56 = vpop.f32.mrb[167].mxu1 }
 0x2b1   : > { %v2196_v57 = vadd.f32 %v2195_v30, %v1811_v17  ;;  %v2200_v51 = vpop.f32.mrb[168].mxu0 }
 0x2b2   : > { %v1815_v13 = vpop.f32.mrb[168].mxu1  ;;  %v2202_v18 = vpop.f32.mrb[169].mxu0 }
 0x2b3   : > { %2438 = vst [vmem:[%s4575_s10 + $0x98] sm:$0xff] %v2196_v57  ;;  %v1816_v20 = vadd.f32 %v4556_v42, %v1815_v13  ;;  %v1817_v53 = vpop.f32.mrb[169].mxu1 }
 0x2b5   : > { %v2201_v12 = vadd.f32 %v2200_v51, %v1816_v20  ;;  %v2205_v40 = vpop.f32.mrb[170].mxu0 }
 0x2b6   : > { %v1820_v58 = vpop.f32.mrb[170].mxu1  ;;  %v2207_v19 = vpop.f32.mrb[171].mxu0 }
 0x2b7   : > { %2439 = vst [vmem:[%s4575_s10 + $0xa0] sm:$0xff] %v2201_v12  ;;  %v1821_v59 = vadd.f32 %v4556_v42, %v1820_v58  ;;  %v1822_v50 = vpop.f32.mrb[171].mxu1 }
 0x2b9   : > { %v2206_v63 = vadd.f32 %v2205_v40, %v1821_v59  ;;  %v2210_v52 = vpop.f32.mrb[172].mxu0 }
 0x2ba   : > { %v1825_v6 = vpop.f32.mrb[172].mxu1  ;;  %v2212_v34 = vpop.f32.mrb[173].mxu0 }
 0x2bb   : > { %2440 = vst [vmem:[%s4575_s10 + $0xa8] sm:$0xff] %v2206_v63  ;;  %v1826_v37 = vadd.f32 %v4556_v42, %v1825_v6  ;;  %v1827_v55 = vpop.f32.mrb[173].mxu1 }
 0x2bd   : > { %v2211_v38 = vadd.f32 %v2210_v52, %v1826_v37  ;;  %v2215_v1 = vpop.f32.mrb[174].mxu0 }
 0x2be   : > { %v1830_v62 = vpop.f32.mrb[174].mxu1  ;;  %v2217_v23 = vpop.f32.mrb[175].mxu0 }
 0x2bf   : > { %2441 = vst [vmem:[%s4575_s10 + $0xb0] sm:$0xff] %v2211_v38  ;;  %v1831_v61 = vadd.f32 %v4556_v42, %v1830_v62  ;;  %v1832_v22 = vpop.f32.mrb[175].mxu1 }
 0x2c1   : > { %v2216_v60 = vadd.f32 %v2215_v1, %v1831_v61  ;;  %v2220_v5 = vpop.f32.mrb[176].mxu0 }
 0x2c2   : > { %v1835_v11 = vpop.f32.mrb[176].mxu1  ;;  %v2222_v27 = vpop.f32.mrb[177].mxu0 }
 0x2c3   : > { %2442 = vst [vmem:[%s4575_s10 + $0xb8] sm:$0xff] %v2216_v60  ;;  %v1836_v4 = vadd.f32 %v4556_v42, %v1835_v11  ;;  %v1837_v39 = vpop.f32.mrb[177].mxu1 }
 0x2c5   : > { %v2221_v24 = vadd.f32 %v2220_v5, %v1836_v4  ;;  %v2225_v16 = vpop.f32.mrb[178].mxu0 }
 0x2c6   : > { %v1840_v25 = vpop.f32.mrb[178].mxu1  ;;  %v2227_v21 = vpop.f32.mrb[179].mxu0 }
 0x2c7   : > { %2443 = vst [vmem:[%s4575_s10 + $0xc0] sm:$0xff] %v2221_v24  ;;  %v1841_v45 = vadd.f32 %v4556_v42, %v1840_v25  ;;  %v1842_v0 = vpop.f32.mrb[179].mxu1 }
 0x2c9   : > { %v2226_v3 = vadd.f32 %v2225_v16, %v1841_v45  ;;  %v2230_v47 = vpop.f32.mrb[180].mxu0 }
 0x2ca   : > { %v1845_v2 = vpop.f32.mrb[180].mxu1  ;;  %v2232_v48 = vpop.f32.mrb[181].mxu0 }
 0x2cb   : > { %2444 = vst [vmem:[%s4575_s10 + $0xc8] sm:$0xff] %v2226_v3  ;;  %v1846_v10 = vadd.f32 %v4556_v42, %v1845_v2  ;;  %v1847_v28 = vpop.f32.mrb[181].mxu1 }
 0x2cd   : > { %v2231_v9 = vadd.f32 %v2230_v47, %v1846_v10  ;;  %v2235_v26 = vpop.f32.mrb[182].mxu0 }
 0x2ce   : > { %v1850_v32 = vpop.f32.mrb[182].mxu1  ;;  %v2237_v29 = vpop.f32.mrb[183].mxu0 }
 0x2cf   : > { %2445 = vst [vmem:[%s4575_s10 + $0xd0] sm:$0xff] %v2231_v9  ;;  %v1851_v41 = vadd.f32 %v4556_v42, %v1850_v32  ;;  %v1852_v49 = vpop.f32.mrb[183].mxu1 }
 0x2d1   : > { %v2236_v33 = vadd.f32 %v2235_v26, %v1851_v41  ;;  %v2240_v35 = vpop.f32.mrb[184].mxu0 }
 0x2d2   : > { %v1855_v8 = vpop.f32.mrb[184].mxu1  ;;  %v2242_v36 = vpop.f32.mrb[185].mxu0 }
 0x2d3   : > { %2446 = vst [vmem:[%s4575_s10 + $0xd8] sm:$0xff] %v2236_v33  ;;  %v1856_v7 = vadd.f32 %v4556_v42, %v1855_v8  ;;  %v1857_v43 = vpop.f32.mrb[185].mxu1 }
 0x2d5   : > { %v2241_v15 = vadd.f32 %v2240_v35, %v1856_v7  ;;  %v2245_v54 = vpop.f32.mrb[186].mxu0 }
 0x2d6   : > { %v1860_v46 = vpop.f32.mrb[186].mxu1  ;;  %v2247_v14 = vpop.f32.mrb[187].mxu0 }
 0x2d7   : > { %2447 = vst [vmem:[%s4575_s10 + $0xe0] sm:$0xff] %v2241_v15  ;;  %v1861_v30 = vadd.f32 %v4556_v42, %v1860_v46  ;;  %v1862_v44 = vpop.f32.mrb[187].mxu1 }
 0x2d9   : > { %v2246_v31 = vadd.f32 %v2245_v54, %v1861_v30  ;;  %v2250_v17 = vpop.f32.mrb[188].mxu0 }
 0x2da   : > { %v1865_v56 = vpop.f32.mrb[188].mxu1  ;;  %v2252_v57 = vpop.f32.mrb[189].mxu0 }
 0x2db   : > { %2448 = vst [vmem:[%s4575_s10 + $0xe8] sm:$0xff] %v2246_v31  ;;  %v1866_v51 = vadd.f32 %v4556_v42, %v1865_v56  ;;  %v1867_v13 = vpop.f32.mrb[189].mxu1 }
 0x2dd   : > { %v2251_v18 = vadd.f32 %v2250_v17, %v1866_v51  ;;  %v2255_v20 = vpop.f32.mrb[190].mxu0 }
 0x2de   : > { %v1870_v53 = vpop.f32.mrb[190].mxu1  ;;  %v2257_v12 = vpop.f32.mrb[191].mxu0 }
 0x2df   : > { %2449 = vst [vmem:[%s4575_s10 + $0xf0] sm:$0xff] %v2251_v18  ;;  %v1871_v40 = vadd.f32 %v4556_v42, %v1870_v53  ;;  %v1872_v58 = vpop.f32.mrb[191].mxu1 }
 0x2e1   : > { %v2256_v19 = vadd.f32 %v2255_v20, %v1871_v40  ;;  %v2260_v59 = vpop.f32.mrb[192].mxu0 }
 0x2e2   : > { %v1875_v50 = vpop.f32.mrb[192].mxu1  ;;  %v2262_v63 = vpop.f32.mrb[193].mxu0 }
 0x2e3   : > { %2450 = vst [vmem:[%s4575_s10 + $0xf8] sm:$0xff] %v2256_v19  ;;  %v1876_v52 = vadd.f32 %v4556_v42, %v1875_v50  ;;  %v1877_v6 = vpop.f32.mrb[193].mxu1 }
 0x2e5   : > { %v2261_v34 = vadd.f32 %v2260_v59, %v1876_v52  ;;  %v2265_v37 = vpop.f32.mrb[194].mxu0 }
 0x2e6   : > { %v1880_v55 = vpop.f32.mrb[194].mxu1  ;;  %v2267_v38 = vpop.f32.mrb[195].mxu0 }
 0x2e7   : > { %2451 = vst [vmem:[%s4575_s10 + $0x100] sm:$0xff] %v2261_v34  ;;  %v1881_v1 = vadd.f32 %v4556_v42, %v1880_v55  ;;  %v1882_v62 = vpop.f32.mrb[195].mxu1 }
 0x2e9   : > { %v2266_v23 = vadd.f32 %v2265_v37, %v1881_v1  ;;  %v2270_v61 = vpop.f32.mrb[196].mxu0 }
 0x2ea   : > { %v1885_v22 = vpop.f32.mrb[196].mxu1  ;;  %v2272_v60 = vpop.f32.mrb[197].mxu0 }
 0x2eb   : > { %2452 = vst [vmem:[%s4575_s10 + $0x108] sm:$0xff] %v2266_v23  ;;  %v1886_v5 = vadd.f32 %v4556_v42, %v1885_v22  ;;  %v1887_v11 = vpop.f32.mrb[197].mxu1 }
 0x2ed   : > { %v2271_v27 = vadd.f32 %v2270_v61, %v1886_v5  ;;  %v2275_v4 = vpop.f32.mrb[198].mxu0 }
 0x2ee   : > { %v1890_v39 = vpop.f32.mrb[198].mxu1  ;;  %v2277_v24 = vpop.f32.mrb[199].mxu0 }
 0x2ef   : > { %2453 = vst [vmem:[%s4575_s10 + $0x110] sm:$0xff] %v2271_v27  ;;  %v1891_v16 = vadd.f32 %v4556_v42, %v1890_v39  ;;  %v1892_v25 = vpop.f32.mrb[199].mxu1 }
 0x2f1   : > { %v2276_v21 = vadd.f32 %v2275_v4, %v1891_v16  ;;  %v2280_v45 = vpop.f32.mrb[200].mxu0 }
 0x2f2   : > { %v1895_v0 = vpop.f32.mrb[200].mxu1  ;;  %v2282_v3 = vpop.f32.mrb[201].mxu0 }
 0x2f3   : > { %2454 = vst [vmem:[%s4575_s10 + $0x118] sm:$0xff] %v2276_v21  ;;  %v1896_v47 = vadd.f32 %v4556_v42, %v1895_v0  ;;  %v1897_v2 = vpop.f32.mrb[201].mxu1 }
 0x2f5   : > { %v2281_v48 = vadd.f32 %v2280_v45, %v1896_v47  ;;  %v2285_v10 = vpop.f32.mrb[202].mxu0 }
 0x2f6   : > { %v1900_v28 = vpop.f32.mrb[202].mxu1  ;;  %v2287_v9 = vpop.f32.mrb[203].mxu0 }
 0x2f7   : > { %2455 = vst [vmem:[%s4575_s10 + $0x120] sm:$0xff] %v2281_v48  ;;  %v1901_v26 = vadd.f32 %v4556_v42, %v1900_v28  ;;  %v1902_v32 = vpop.f32.mrb[203].mxu1 }
 0x2f9   : > { %v2286_v29 = vadd.f32 %v2285_v10, %v1901_v26  ;;  %v2290_v41 = vpop.f32.mrb[204].mxu0 }
 0x2fa   : > { %v1905_v49 = vpop.f32.mrb[204].mxu1  ;;  %v2292_v33 = vpop.f32.mrb[205].mxu0 }
 0x2fb   : > { %2456 = vst [vmem:[%s4575_s10 + $0x128] sm:$0xff] %v2286_v29  ;;  %v1906_v35 = vadd.f32 %v4556_v42, %v1905_v49  ;;  %v1907_v8 = vpop.f32.mrb[205].mxu1 }
 0x2fd   : > { %v2291_v36 = vadd.f32 %v2290_v41, %v1906_v35  ;;  %v2295_v7 = vpop.f32.mrb[206].mxu0 }
 0x2fe   : > { %v1910_v43 = vpop.f32.mrb[206].mxu1  ;;  %v2297_v15 = vpop.f32.mrb[207].mxu0 }
 0x2ff   : > { %2457 = vst [vmem:[%s4575_s10 + $0x130] sm:$0xff] %v2291_v36  ;;  %v1911_v54 = vadd.f32 %v4556_v42, %v1910_v43  ;;  %v1912_v46 = vpop.f32.mrb[207].mxu1 }
 0x301   : > { %v2296_v14 = vadd.f32 %v2295_v7, %v1911_v54  ;;  %v2300_v30 = vpop.f32.mrb[208].mxu0 }
 0x302   : > { %v1915_v44 = vpop.f32.mrb[208].mxu1  ;;  %v2302_v31 = vpop.f32.mrb[209].mxu0 }
 0x303   : > { %2458 = vst [vmem:[%s4575_s10 + $0x138] sm:$0xff] %v2296_v14  ;;  %v1916_v17 = vadd.f32 %v4556_v42, %v1915_v44  ;;  %v1917_v56 = vpop.f32.mrb[209].mxu1 }
 0x305   : > { %v2301_v57 = vadd.f32 %v2300_v30, %v1916_v17  ;;  %v2305_v51 = vpop.f32.mrb[210].mxu0 }
 0x306   : > { %v1920_v13 = vpop.f32.mrb[210].mxu1  ;;  %v2307_v18 = vpop.f32.mrb[211].mxu0 }
 0x307   : > { %2459 = vst [vmem:[%s4575_s10 + $0x140] sm:$0xff] %v2301_v57  ;;  %v1921_v20 = vadd.f32 %v4556_v42, %v1920_v13  ;;  %v1922_v53 = vpop.f32.mrb[211].mxu1 }
 0x309   : > { %v2306_v12 = vadd.f32 %v2305_v51, %v1921_v20  ;;  %v2310_v40 = vpop.f32.mrb[212].mxu0 }
 0x30a   : > { %v1925_v58 = vpop.f32.mrb[212].mxu1  ;;  %v2312_v19 = vpop.f32.mrb[213].mxu0 }
 0x30b   : > { %2460 = vst [vmem:[%s4575_s10 + $0x148] sm:$0xff] %v2306_v12  ;;  %v1926_v59 = vadd.f32 %v4556_v42, %v1925_v58  ;;  %v1927_v50 = vpop.f32.mrb[213].mxu1 }
 0x30d   : > { %v2311_v63 = vadd.f32 %v2310_v40, %v1926_v59  ;;  %v2315_v52 = vpop.f32.mrb[214].mxu0 }
 0x30e   : > { %v1930_v6 = vpop.f32.mrb[214].mxu1  ;;  %v2317_v34 = vpop.f32.mrb[215].mxu0 }
 0x30f   : > { %2461 = vst [vmem:[%s4575_s10 + $0x150] sm:$0xff] %v2311_v63  ;;  %v1931_v37 = vadd.f32 %v4556_v42, %v1930_v6  ;;  %v1932_v55 = vpop.f32.mrb[215].mxu1 }
 0x311   : > { %v2316_v38 = vadd.f32 %v2315_v52, %v1931_v37  ;;  %v2320_v1 = vpop.f32.mrb[216].mxu0 }
 0x312   : > { %v1935_v62 = vpop.f32.mrb[216].mxu1  ;;  %v2322_v23 = vpop.f32.mrb[217].mxu0 }
 0x313   : > { %2462 = vst [vmem:[%s4575_s10 + $0x158] sm:$0xff] %v2316_v38  ;;  %v1936_v61 = vadd.f32 %v4556_v42, %v1935_v62  ;;  %v1937_v22 = vpop.f32.mrb[217].mxu1 }
 0x315   : > { %v2321_v60 = vadd.f32 %v2320_v1, %v1936_v61  ;;  %v2325_v5 = vpop.f32.mrb[218].mxu0 }
 0x316   : > { %v1940_v11 = vpop.f32.mrb[218].mxu1  ;;  %v2327_v27 = vpop.f32.mrb[219].mxu0 }
 0x317   : > { %2463 = vst [vmem:[%s4575_s10 + $0x160] sm:$0xff] %v2321_v60  ;;  %v1941_v4 = vadd.f32 %v4556_v42, %v1940_v11  ;;  %v1942_v39 = vpop.f32.mrb[219].mxu1 }
 0x319   : > { %v2326_v24 = vadd.f32 %v2325_v5, %v1941_v4  ;;  %v2330_v16 = vpop.f32.mrb[220].mxu0 }
 0x31a   : > { %v1945_v25 = vpop.f32.mrb[220].mxu1  ;;  %v2332_v21 = vpop.f32.mrb[221].mxu0 }
 0x31b   : > { %2464 = vst [vmem:[%s4575_s10 + $0x168] sm:$0xff] %v2326_v24  ;;  %v1946_v45 = vadd.f32 %v4556_v42, %v1945_v25  ;;  %v1947_v0 = vpop.f32.mrb[221].mxu1 }
 0x31d   : > { %v2331_v3 = vadd.f32 %v2330_v16, %v1946_v45  ;;  %v2335_v47 = vpop.f32.mrb[222].mxu0  ;;  %v2973_v16 = vld [vmem:[%s4814_s4] ss:$0 sm:$0xff] }
 0x31e   : > { %v1950_v2 = vpop.f32.mrb[222].mxu1  ;;  %v2337_v48 = vpop.f32.mrb[223].mxu0 }
 0x31f   : > { %2465 = vst [vmem:[%s4575_s10 + $0x170] sm:$0xff] %v2331_v3  ;;  %v1951_v10 = vadd.f32 %v4556_v42, %v1950_v2  ;;  %v1952_v28 = vpop.f32.mrb[223].mxu1 }
 0x321   : > { %v2336_v9 = vadd.f32 %v2335_v47, %v1951_v10  ;;  %v2340_v26 = vpop.f32.mrb[224].mxu0 }
 0x322   : > { %v1955_v32 = vpop.f32.mrb[224].mxu1  ;;  %v2342_v29 = vpop.f32.mrb[225].mxu0 }
 0x323   : > { %2466 = vst [vmem:[%s4575_s10 + $0x178] sm:$0xff] %v2336_v9  ;;  %v1956_v41 = vadd.f32 %v4556_v42, %v1955_v32  ;;  %v1957_v49 = vpop.f32.mrb[225].mxu1 }
 0x325   : > { %v2341_v33 = vadd.f32 %v2340_v26, %v1956_v41  ;;  %v2345_v35 = vpop.f32.mrb[226].mxu0 }
 0x326   : > { %v1960_v8 = vpop.f32.mrb[226].mxu1  ;;  %v2347_v36 = vpop.f32.mrb[227].mxu0 }
 0x327   : > { %2467 = vst [vmem:[%s4575_s10 + $0x180] sm:$0xff] %v2341_v33  ;;  %v1961_v7 = vadd.f32 %v4556_v42, %v1960_v8  ;;  %v1962_v43 = vpop.f32.mrb[227].mxu1 }
 0x329   : > { %v2346_v15 = vadd.f32 %v2345_v35, %v1961_v7  ;;  %v2350_v54 = vpop.f32.mrb[228].mxu0 }
 0x32a   : > { %v1965_v46 = vpop.f32.mrb[228].mxu1  ;;  %v2352_v14 = vpop.f32.mrb[229].mxu0 }
 0x32b   : > { %2468 = vst [vmem:[%s4575_s10 + $0x188] sm:$0xff] %v2346_v15  ;;  %v1966_v30 = vadd.f32 %v4556_v42, %v1965_v46  ;;  %v1967_v44 = vpop.f32.mrb[229].mxu1 }
 0x32d   : > { %v2351_v31 = vadd.f32 %v2350_v54, %v1966_v30  ;;  %v2355_v17 = vpop.f32.mrb[230].mxu0 }
 0x32e   : > { %v1970_v56 = vpop.f32.mrb[230].mxu1  ;;  %v2357_v57 = vpop.f32.mrb[231].mxu0 }
 0x32f   : > { %2469 = vst [vmem:[%s4575_s10 + $0x190] sm:$0xff] %v2351_v31  ;;  %v1971_v51 = vadd.f32 %v4556_v42, %v1970_v56  ;;  %v1972_v13 = vpop.f32.mrb[231].mxu1 }
 0x331   : > { %v2356_v18 = vadd.f32 %v2355_v17, %v1971_v51  ;;  %v2360_v20 = vpop.f32.mrb[232].mxu0 }
 0x332   : > { %v1975_v53 = vpop.f32.mrb[232].mxu1  ;;  %v2362_v12 = vpop.f32.mrb[233].mxu0 }
 0x333   : > { %2470 = vst [vmem:[%s4575_s10 + $0x198] sm:$0xff] %v2356_v18  ;;  %v1976_v40 = vadd.f32 %v4556_v42, %v1975_v53  ;;  %v1977_v58 = vpop.f32.mrb[233].mxu1 }
 0x335   : > { %v2361_v19 = vadd.f32 %v2360_v20, %v1976_v40  ;;  %v2365_v59 = vpop.f32.mrb[234].mxu0 }
 0x336   : > { %v1980_v50 = vpop.f32.mrb[234].mxu1  ;;  %v2367_v63 = vpop.f32.mrb[235].mxu0 }
 0x337   : > { %2471 = vst [vmem:[%s4575_s10 + $0x1a0] sm:$0xff] %v2361_v19  ;;  %v1981_v52 = vadd.f32 %v4556_v42, %v1980_v50  ;;  %v1982_v6 = vpop.f32.mrb[235].mxu1 }
 0x339   : > { %v2366_v34 = vadd.f32 %v2365_v59, %v1981_v52  ;;  %v2370_v37 = vpop.f32.mrb[236].mxu0 }
 0x33a   : > { %v1985_v55 = vpop.f32.mrb[236].mxu1  ;;  %v2372_v38 = vpop.f32.mrb[237].mxu0 }
 0x33b   : > { %2472 = vst [vmem:[%s4575_s10 + $0x1a8] sm:$0xff] %v2366_v34  ;;  %v1986_v1 = vadd.f32 %v4556_v42, %v1985_v55  ;;  %v1987_v62 = vpop.f32.mrb[237].mxu1 }
 0x33d   : > { %v2371_v23 = vadd.f32 %v2370_v37, %v1986_v1  ;;  %v2375_v61 = vpop.f32.mrb[238].mxu0 }
 0x33e   : > { %v1990_v22 = vpop.f32.mrb[238].mxu1  ;;  %v2377_v60 = vpop.f32.mrb[239].mxu0 }
 0x33f   : > { %2473 = vst [vmem:[%s4575_s10 + $0x1b0] sm:$0xff] %v2371_v23  ;;  %v1991_v5 = vadd.f32 %v4556_v42, %v1990_v22  ;;  %v1992_v11 = vpop.f32.mrb[239].mxu1 }
 0x341   : > { %v2376_v27 = vadd.f32 %v2375_v61, %v1991_v5  ;;  %v2380_v4 = vpop.f32.mrb[240].mxu0 }
 0x342   : > { %v1995_v39 = vpop.f32.mrb[240].mxu1  ;;  %v2382_v24 = vpop.f32.mrb[241].mxu0 }
 0x343   : > { %2474 = vst [vmem:[%s4575_s10 + $0x1b8] sm:$0xff] %v2376_v27  ;;  %v1996_v25 = vadd.f32 %v2973_v16, %v1995_v39  ;;  %v1997_v21 = vpop.f32.mrb[241].mxu1 }
 0x345   : > { %v2381_v45 = vadd.f32 %v2380_v4, %v1996_v25  ;;  %v2385_v0 = vpop.f32.mrb[242].mxu0 }
 0x346   : > { %v2000_v3 = vpop.f32.mrb[242].mxu1  ;;  %v2387_v47 = vpop.f32.mrb[243].mxu0 }
 0x347   : > { %2475 = vst [vmem:[%s4575_s10 + $0x1c0] sm:$0xff] %v2381_v45  ;;  %v2001_v42 = vadd.f32 %v2973_v16, %v2000_v3  ;;  %v2002_v2 = vpop.f32.mrb[243].mxu1 }
 0x349   : > { %v2386_v48 = vadd.f32 %v2385_v0, %v2001_v42  ;;  %v2390_v10 = vpop.f32.mrb[244].mxu0 }
 0x34a   : > { %v2005_v28 = vpop.f32.mrb[244].mxu1  ;;  %v2392_v9 = vpop.f32.mrb[245].mxu0 }
 0x34b   : > { %2476 = vst [vmem:[%s4575_s10 + $0x1c8] sm:$0xff] %v2386_v48  ;;  %v2006_v26 = vadd.f32 %v2973_v16, %v2005_v28  ;;  %v2007_v32 = vpop.f32.mrb[245].mxu1 }
 0x34d   : > { %v2391_v29 = vadd.f32 %v2390_v10, %v2006_v26  ;;  %v2395_v41 = vpop.f32.mrb[246].mxu0 }
 0x34e   : > { %v2010_v49 = vpop.f32.mrb[246].mxu1  ;;  %v2397_v33 = vpop.f32.mrb[247].mxu0 }
 0x34f   : > { %2477 = vst [vmem:[%s4575_s10 + $0x1d0] sm:$0xff] %v2391_v29  ;;  %v2011_v35 = vadd.f32 %v2973_v16, %v2010_v49  ;;  %v2012_v8 = vpop.f32.mrb[247].mxu1 }
 0x351   : > { %v2396_v36 = vadd.f32 %v2395_v41, %v2011_v35  ;;  %v2400_v7 = vpop.f32.mrb[248].mxu0 }
 0x352   : > { %v2015_v43 = vpop.f32.mrb[248].mxu1  ;;  %v2402_v15 = vpop.f32.mrb[249].mxu0 }
 0x353   : > { %2478 = vst [vmem:[%s4575_s10 + $0x1d8] sm:$0xff] %v2396_v36  ;;  %v2016_v54 = vadd.f32 %v2973_v16, %v2015_v43  ;;  %v2017_v46 = vpop.f32.mrb[249].mxu1 }
 0x355   : > { %v2401_v14 = vadd.f32 %v2400_v7, %v2016_v54  ;;  %v2405_v30 = vpop.f32.mrb[250].mxu0 }
 0x356   : > { %v2020_v44 = vpop.f32.mrb[250].mxu1  ;;  %v2407_v31 = vpop.f32.mrb[251].mxu0 }
 0x357   : > { %2479 = vst [vmem:[%s4575_s10 + $0x1e0] sm:$0xff] %v2401_v14  ;;  %v2021_v17 = vadd.f32 %v2973_v16, %v2020_v44  ;;  %v2022_v56 = vpop.f32.mrb[251].mxu1 }
 0x359   : > { %v2406_v57 = vadd.f32 %v2405_v30, %v2021_v17  ;;  %v2410_v51 = vpop.f32.mrb[252].mxu0 }
 0x35a   : > { %v2025_v13 = vpop.f32.mrb[252].mxu1  ;;  %v2412_v18 = vpop.f32.mrb[253].mxu0 }
 0x35b   : > { %2480 = vst [vmem:[%s4575_s10 + $0x1e8] sm:$0xff] %v2406_v57  ;;  %v2026_v20 = vadd.f32 %v2973_v16, %v2025_v13  ;;  %v2027_v53 = vpop.f32.mrb[253].mxu1 }
 0x35d   : > { %v2411_v12 = vadd.f32 %v2410_v51, %v2026_v20  ;;  %v2415_v40 = vpop.f32.mrb[254].mxu0 }
 0x35e   : > { %v2030_v58 = vpop.f32.mrb[254].mxu1  ;;  %v2417_v19 = vpop.f32.mrb[255].mxu0 }
 0x35f   : > { %2481 = vst [vmem:[%s4575_s10 + $0x1f0] sm:$0xff] %v2411_v12  ;;  %v2031_v59 = vadd.f32 %v2973_v16, %v2030_v58  ;;  %v2032_v50 = vpop.f32.mrb[255].mxu1 }
 0x361   : > { %v2416_v63 = vadd.f32 %v2415_v40, %v2031_v59 }
 0x363   : > { %2482 = vst [vmem:[%s4575_s10 + $0x1f8] sm:$0xff] %v2416_v63 }
 0x364   : > { %3073 = shalt.err (!%p3070_p2)
}
 0x365   : > { %s3074_s26 = scalar_lea.hbm %s4763_s7, 8192  ;;  %s3078_s10 = scalar_lea.hbm %s4815_s5, 16384 }
 0x366   : > { %p3075_p13 = scmp.ne.s32.totalorder %s4763_s7, %s3074_s26  ;;  %p3079_p4 = scmp.lt.u32.totalorder %s4763_s7, %s4815_s5 }
 0x367   : > { %p3080_p7 = scmp.lt.u32.totalorder %s3078_s10, %s3074_s26  ;;  %p3082_p11 = scmp.lt.u32.totalorder %s3074_s26, %s4763_s7 }
 0x368   : > { %p3076_p6 = pnand %p3075_p13, %p4829_p0 }
 0x369   : > { %p3081_p8 = por %p3080_p7, %p3079_p4 }
 0x36a   : > { %p3077_p10 = pneg %p3076_p6 }
 0x36b   : > { %p3083_p1 = por %p3082_p11, %p3081_p8 }
 0x36d   : > { %p3084_p3 = pnand %p3083_p1, %p3077_p10 }
 0x36f   : > { %3087 = shalt.err (!%p3084_p3)
}
 0x370   : > { %s3142_s9 = smov 128   ;;  %s3143_s11 = smov 8  }
 0x371   : > { %2908 = dma.vmem_to_hbm [thread:$0]  (%p4829_p0), %s4765_s30, 8192, %s4763_s7, %s2484_s6, %s3142_s9, %s3142_s9, %s3143_s11  }
 0x372 PF: > { %s2512_s23 = sand.u32 1, %s3118_s18   ;;  %p4830_p5 = scmp.ne.s32.totalorder %s4820_s25, 0 }
 0x373   : > { %p4831_p9 = scmp.ge.s32.totalorder %s3130_s21, 2  ;;  %s2513_s22 = scalar_lea.sflag [#allocation4], %s2512_s23 }
 0x375   : > { %p2922_p12 = pnand %p4831_p9, %p4830_p5 }
 0x377   : > { %3113 = dma.done.wait (!%p2922_p12), %s2513_s22, 8192  }
 0x378   : > { %3115 = vsyncadd (!%p2922_p12), %s2513_s22, 4294959104  ;;  %p19_p2 = scmp.ge.s32.totalorder %s3287_s16, 4   ;;  %s4832_s18 = smov %s3122_s19 }
 0x379   : > { %s4833_s19 = smov %s3126_s20  ;;  %s4834_s20 = smov %s3296_s27 }
 0x37a   : > { %s4835_s21 = smov %s3287_s16  ;;  %21 = sbr.rel (!%p19_p2) target bundleno = 6 (0x6), region = 93 }
 0x381   :  { %2518 = vsyncpa [#allocation3], 1 }
 0x382   :  { %2520 = vsyncpa [#allocation3 + $0x1], 1 }
 0x383   :  { %2521 = vsyncpa [#allocation6], 1 }
 0x384   :  { %2522 = vsyncpa [#allocation4], 1 }
 0x385   :  { %2524 = vsyncpa [#allocation4 + $0x1], 1 }

</bundles_post_ra>
